<compile_context>
chip_gen: v7x
topology: tpu7x:2x2x1
jax: 0.10.0
libtpu: 0.0.40
codegen_flags: <defaults>
</compile_context>

<pallas_src>
import functools

import jax
import jax.numpy as jnp
import numpy as np
from jax import lax
from jax.experimental import pallas as pl
from jax.experimental.pallas import tpu as pltpu

K = 5          # conv kernel size (both layers)
LANES = 128    # lane-padding target for channel / feature dims


# ---------------------------------------------------------------------------
# Fused Pallas kernel: conv1 + bias + ReLU + pool + conv2 + bias + ReLU + pool
# ---------------------------------------------------------------------------
def _fused_features_kernel(p1_ref, w1_ref, b1_ref, s2_ref, w2_ref, b2_ref,
                           o_ref, *, p1_rows, p2_rows):
    """One grid step = one batch element; both layers stay in VMEM.

    p1_ref : (1, 4*P1, 128)  layer-1 im2col patches (pool-quadrant row order),
                             feature dim zero-padded 25 -> 128, bf16
    w1_ref : (128, 128)      layer-1 weights (F1 x C1, zero-padded), bf16
    b1_ref : (1, 128)        layer-1 bias (zero-padded), f32
    s2_ref : (25*4*P2, P1)   constant 0/1 gather matrix building layer-2
                             shifted windows (pool-quadrant row order), bf16
    w2_ref : (25, 128, 128)  layer-2 weights per filter tap (C1 x C2), bf16
    b2_ref : (1, 128)        layer-2 bias (zero-padded), f32
    o_ref  : (1, P2, 128)    pooled layer-2 output (lane-dense), f32
    """
    P1, P2 = p1_rows, p2_rows

    # ---- layer 1: conv (MXU) + bias + ReLU + 2x2 max-pool -----------------
    z1 = jnp.dot(p1_ref[0], w1_ref[...],
                 preferred_element_type=jnp.float32)            # (4*P1, 128)
    z1 = jnp.maximum(z1 + b1_ref[...], 0.0)
    y1 = jnp.maximum(jnp.maximum(z1[0:P1], z1[P1:2 * P1]),
                     jnp.maximum(z1[2 * P1:3 * P1], z1[3 * P1:4 * P1]))
    y1 = y1.astype(jnp.bfloat16)                                # (P1, 128)

    # ---- layer 2: in-kernel patch gather + conv + bias + ReLU + pool ------
    # Gather every (filter-tap, output-position) row of the layer-2 im2col
    # with a single MXU matmul against a constant 0/1 selection matrix.
    g = jnp.dot(s2_ref[...], y1,
                preferred_element_type=jnp.float32)             # (25*4*P2, 128)
    z2 = jnp.zeros((4 * P2, LANES), jnp.float32)
    for k in range(K * K):                                      # 25 taps
        gk = g[k * 4 * P2:(k + 1) * 4 * P2].astype(jnp.bfloat16)
        z2 = z2 + jnp.dot(gk, w2_ref[k],
                          preferred_element_type=jnp.float32)   # (4*P2, 128)
    z2 = jnp.maximum(z2 + b2_ref[...], 0.0)
    y2 = jnp.maximum(jnp.maximum(z2[0:P2], z2[P2:2 * P2]),
                     jnp.maximum(z2[2 * P2:3 * P2], z2[3 * P2:4 * P2]))
    o_ref[0] = y2.astype(o_ref.dtype)                           # (P2, 128)


# ---------------------------------------------------------------------------
# Wrapper-side prep (minimal XLA glue)
# ---------------------------------------------------------------------------
def _pool_grouped_patches(x):
    """Layer-1 im2col with rows grouped by 2x2 pool quadrant.

    x: (N, 1, H, W) f32  ->  ((N, 4*P1, 128) bf16, (H2, W2))
    """
    N, C, H, W = x.shape
    H1, W1 = H - K + 1, W - K + 1
    assert H1 % 2 == 0 and W1 % 2 == 0, "conv output must be even for 2x2 pool"
    H2, W2 = H1 // 2, W1 // 2
    F1 = C * K * K
    assert F1 <= LANES
    pat = lax.conv_general_dilated_patches(
        x, filter_shape=(K, K), window_strides=(1, 1), padding="VALID")
    pat = pat.transpose(0, 2, 3, 1)                   # (N, H1, W1, F1)
    pat = pat.reshape(N, H2, 2, W2, 2, F1)
    pat = pat.transpose(0, 2, 4, 1, 3, 5)             # (N, a, b, i, j, F1)
    pat = pat.reshape(N, 4 * H2 * W2, F1)
    pat = jnp.pad(pat, ((0, 0), (0, 0), (0, LANES - F1)))
    return pat.astype(jnp.bfloat16), (H2, W2)


def _layer2_gather_matrix(h_in, w_in, h_out, w_out):
    """0/1 matrix gathering the KxK shifted windows of the (h_in x w_in)
    layer-1 pooled map; rows ordered (filter tap k, pool quadrant, i, j)."""
    rows_per_tap = 4 * h_out * w_out
    S = np.zeros((K * K * rows_per_tap, h_in * w_in), np.float32)
    for kh in range(K):
        for kw in range(K):
            k = kh * K + kw
            r = 0
            for a in range(2):
                for b in range(2):
                    for i in range(h_out):
                        for j in range(w_out):
                            oh, ow = 2 * i + a, 2 * j + b
                            S[k * rows_per_tap + r,
                              (oh + kh) * w_in + (ow + kw)] = 1.0
                            r += 1
    return jnp.asarray(S, jnp.bfloat16)


@jax.jit
def feature_extractor(x, params):
    """x: (N, 1, H, W) f32; params = ((w1, b1), (w2, b2)) in PyTorch layouts."""
    (w1, b1), (w2, b2) = params
    N = x.shape[0]
    C1, C2 = w1.shape[0], w2.shape[0]
    F1 = w1.shape[1] * K * K

    # layer-1 patches (pool-quadrant-grouped rows, lane-padded, bf16)
    p1, (H2a, W2a) = _pool_grouped_patches(x.astype(jnp.float32))
    P1 = H2a * W2a

    # layer-2 geometry
    H1b, W1b = H2a - K + 1, W2a - K + 1
    assert H1b % 2 == 0 and W1b % 2 == 0
    H2b, W2b = H1b // 2, W1b // 2
    P2 = H2b * W2b

    # parameters, zero-padded to lane-dense shapes
    w1m = jnp.pad(w1.reshape(C1, F1).T,
                  ((0, LANES - F1), (0, LANES - C1))).astype(jnp.bfloat16)
    b1m = jnp.pad(b1, (0, LANES - C1)).reshape(1, LANES).astype(jnp.float32)
    w2k = w2.transpose(2, 3, 1, 0).reshape(K * K, C1, C2)   # (25, C1, C2)
    w2m = jnp.pad(w2k, ((0, 0), (0, LANES - C1),
                        (0, LANES - C2))).astype(jnp.bfloat16)
    b2m = jnp.pad(b2, (0, LANES - C2)).reshape(1, LANES).astype(jnp.float32)
    s2 = _layer2_gather_matrix(H2a, W2a, H2b, W2b)           # (25*4*P2, P1)

    kernel = functools.partial(_fused_features_kernel,
                               p1_rows=P1, p2_rows=P2)
    out = pl.pallas_call(
        kernel,
        out_shape=jax.ShapeDtypeStruct((N, P2, LANES), jnp.float32),
        grid_spec=pltpu.PrefetchScalarGridSpec(
            num_scalar_prefetch=0,
            grid=(N,),
            in_specs=[
                pl.BlockSpec((1, 4 * P1, LANES), lambda n: (n, 0, 0)),
                pl.BlockSpec((LANES, LANES), lambda n: (0, 0)),
                pl.BlockSpec((1, LANES), lambda n: (0, 0)),
                pl.BlockSpec((K * K * 4 * P2, P1), lambda n: (0, 0)),
                pl.BlockSpec((K * K, LANES, LANES), lambda n: (0, 0, 0)),
                pl.BlockSpec((1, LANES), lambda n: (0, 0)),
            ],
            out_specs=pl.BlockSpec((1, P2, LANES), lambda n: (n, 0, 0)),
        ),
        compiler_params=pltpu.CompilerParams(
            dimension_semantics=("parallel",)),
    )(p1, w1m, b1m, s2, w2m, b2m)

    # (N, P2, 128) -> NCHW (N, C2, H2b, W2b); only the final tiny transpose.
    return out[:, :, :C2].reshape(N, H2b, W2b, C2).transpose(0, 3, 1, 2)


# ---------------------------------------------------------------------------
# Deterministic parameter init (PyTorch default-style uniform bounds)
# ---------------------------------------------------------------------------
def init_params(key):
    k1, k2, k3, k4 = jax.random.split(key, 4)

    def u(k, shape, fan_in):
        bound = 1.0 / np.sqrt(fan_in)
        return jax.random.uniform(k, shape, jnp.float32, -bound, bound)

    w1 = u(k1, (6, 1, K, K), 1 * K * K)
    b1 = u(k2, (6,), 1 * K * K)
    w2 = u(k3, (12, 6, K, K), 6 * K * K)
    b2 = u(k4, (12,), 6 * K * K)
    return ((w1, b1), (w2, b2))


# ---------------------------------------------------------------------------
# Pure-JAX reference (mirrors the PyTorch nn.Sequential semantics)
# ---------------------------------------------------------------------------
def _ref_layer(x, w, b):
    y = lax.conv_general_dilated(x, w, (1, 1), "VALID",
                                 dimension_numbers=("NCHW", "OIHW", "NCHW"))
    y = y + b.reshape(1, -1, 1, 1)
    y = jnp.maximum(y, 0.0)
    y = lax.reduce_window(y, -jnp.inf, lax.max,
                          (1, 1, 2, 2), (1, 1, 2, 2), "VALID")
    return y


def reference(x, params):
    (w1, b1), (w2, b2) = params
    return _ref_layer(_ref_layer(x, w1, b1), w2, b2)


if __name__ == "__main__":
    key = jax.random.PRNGKey(0)
    kx, kp = jax.random.split(key)
    # batch=2, 1 input channel, 28x28 spatial (LeNet/MNIST-style input)
    x = jax.random.normal(kx, (2, 1, 28, 28), jnp.float32)
    params = init_params(kp)

    out = jax.block_until_ready(feature_extractor(x, params))
    assert out.shape == (2, 12, 4, 4), out.shape

    ref = jax.block_until_ready(reference(x, params))
    # bf16 MXU inputs (f32 accumulation) introduce ~1e-3-level rounding.
    np.testing.assert_allclose(np.asarray(out), np.asarray(ref),
                               rtol=1e-2, atol=1e-2)
    print("KERNEL_OK")
</pallas_src>

<mosaic_0001>
module attributes {stable_mosaic.version = 11 : i64} {
  func.func @_fused_features_kernel(%arg0: i32, %arg1: memref<1x576x128xbf16, #tpu.memory_space<vmem>>, %arg2: memref<128x128xbf16, #tpu.memory_space<vmem>>, %arg3: memref<1x128xf32, #tpu.memory_space<vmem>>, %arg4: memref<1600x144xbf16, #tpu.memory_space<vmem>>, %arg5: memref<25x128x128xbf16, #tpu.memory_space<vmem>>, %arg6: memref<1x128xf32, #tpu.memory_space<vmem>>, %arg7: memref<1x16x128xf32, #tpu.memory_space<vmem>>) attributes {dimension_semantics = [#tpu.dimension_semantics<parallel>], iteration_bounds = array<i64: 2>, scalar_prefetch = 0 : i64, scratch_operands = 0 : i64, tpu.core_type = #tpu.core_type<tc>, window_params = [{transform_indices = @transform_0, window_bounds = array<i64: 1, 576, 128>}, {pipeline_mode = #tpu.pipeline_mode<synchronous>, transform_indices = @transform_1, window_bounds = array<i64: 128, 128>}, {pipeline_mode = #tpu.pipeline_mode<synchronous>, transform_indices = @transform_2, window_bounds = array<i64: 1, 128>}, {pipeline_mode = #tpu.pipeline_mode<synchronous>, transform_indices = @transform_3, window_bounds = array<i64: 1600, 144>}, {pipeline_mode = #tpu.pipeline_mode<synchronous>, transform_indices = @transform_4, window_bounds = array<i64: 25, 128, 128>}, {pipeline_mode = #tpu.pipeline_mode<synchronous>, transform_indices = @transform_5, window_bounds = array<i64: 1, 128>}, {transform_indices = @transform_6, window_bounds = array<i64: 1, 16, 128>}]} {
    %c0 = arith.constant 0 : index
    %c0_0 = arith.constant 0 : index
    %c0_1 = arith.constant 0 : index
    %0 = vector.load %arg1[%c0, %c0_0, %c0_1] : memref<1x576x128xbf16, #tpu.memory_space<vmem>>, vector<1x576x128xbf16>
    %1 = vector.shape_cast %0 : vector<1x576x128xbf16> to vector<576x128xbf16>
    %c0_2 = arith.constant 0 : index
    %c0_3 = arith.constant 0 : index
    %2 = vector.load %arg2[%c0_2, %c0_3] : memref<128x128xbf16, #tpu.memory_space<vmem>>, vector<128x128xbf16>
    %cst = arith.constant dense<0.000000e+00> : vector<576x128xf32>
    %3 = tpu.matmul %1, %2, %cst {dimension_numbers = #tpu.dot_dimension_numbers<[1], [0], [0], [1], [0, 0, 1, 1], [], []>} : vector<576x128xbf16>, vector<128x128xbf16>, vector<576x128xf32> -> vector<576x128xf32>
    %c0_4 = arith.constant 0 : index
    %c0_5 = arith.constant 0 : index
    %4 = vector.load %arg3[%c0_4, %c0_5] : memref<1x128xf32, #tpu.memory_space<vmem>>, vector<1x128xf32>
    %5 = vector.broadcast %4 : vector<1x128xf32> to vector<576x128xf32>
    %6 = arith.addf %3, %5 : vector<576x128xf32>
    %cst_6 = arith.constant 0.000000e+00 : f32
    %7 = vector.broadcast %cst_6 : f32 to vector<576x128xf32>
    %8 = arith.maximumf %6, %7 : vector<576x128xf32>
    %9 = vector.extract_strided_slice %8 {offsets = [0, 0], sizes = [144, 128], strides = [1, 1]} : vector<576x128xf32> to vector<144x128xf32>
    %10 = vector.extract_strided_slice %8 {offsets = [144, 0], sizes = [144, 128], strides = [1, 1]} : vector<576x128xf32> to vector<144x128xf32>
    %11 = arith.maximumf %9, %10 : vector<144x128xf32>
    %12 = vector.extract_strided_slice %8 {offsets = [288, 0], sizes = [144, 128], strides = [1, 1]} : vector<576x128xf32> to vector<144x128xf32>
    %13 = vector.extract_strided_slice %8 {offsets = [432, 0], sizes = [144, 128], strides = [1, 1]} : vector<576x128xf32> to vector<144x128xf32>
    %14 = arith.maximumf %12, %13 : vector<144x128xf32>
    %15 = arith.maximumf %11, %14 : vector<144x128xf32>
    %16 = arith.truncf %15 : vector<144x128xf32> to vector<144x128xbf16>
    %c0_7 = arith.constant 0 : index
    %c0_8 = arith.constant 0 : index
    %17 = vector.load %arg4[%c0_7, %c0_8] : memref<1600x144xbf16, #tpu.memory_space<vmem>>, vector<1600x144xbf16>
    %cst_9 = arith.constant dense<0.000000e+00> : vector<1600x128xf32>
    %18 = tpu.matmul %17, %16, %cst_9 {dimension_numbers = #tpu.dot_dimension_numbers<[1], [0], [0], [1], [0, 0, 1, 1], [], []>} : vector<1600x144xbf16>, vector<144x128xbf16>, vector<1600x128xf32> -> vector<1600x128xf32>
    %cst_10 = arith.constant 0.000000e+00 : f32
    %19 = vector.broadcast %cst_10 : f32 to vector<64x128xf32>
    %20 = vector.extract_strided_slice %18 {offsets = [0, 0], sizes = [64, 128], strides = [1, 1]} : vector<1600x128xf32> to vector<64x128xf32>
    %21 = arith.truncf %20 : vector<64x128xf32> to vector<64x128xbf16>
    %c0_11 = arith.constant 0 : index
    %c0_12 = arith.constant 0 : index
    %c0_13 = arith.constant 0 : index
    %22 = vector.load %arg5[%c0_11, %c0_12, %c0_13] : memref<25x128x128xbf16, #tpu.memory_space<vmem>>, vector<1x128x128xbf16>
    %23 = vector.shape_cast %22 : vector<1x128x128xbf16> to vector<128x128xbf16>
    %cst_14 = arith.constant dense<0.000000e+00> : vector<64x128xf32>
    %24 = tpu.matmul %21, %23, %cst_14 {dimension_numbers = #tpu.dot_dimension_numbers<[1], [0], [0], [1], [0, 0, 1, 1], [], []>} : vector<64x128xbf16>, vector<128x128xbf16>, vector<64x128xf32> -> vector<64x128xf32>
    %25 = arith.addf %19, %24 : vector<64x128xf32>
    %26 = vector.extract_strided_slice %18 {offsets = [64, 0], sizes = [64, 128], strides = [1, 1]} : vector<1600x128xf32> to vector<64x128xf32>
    %27 = arith.truncf %26 : vector<64x128xf32> to vector<64x128xbf16>
    %c1 = arith.constant 1 : index
    %c0_15 = arith.constant 0 : index
    %c0_16 = arith.constant 0 : index
    %28 = vector.load %arg5[%c1, %c0_15, %c0_16] : memref<25x128x128xbf16, #tpu.memory_space<vmem>>, vector<1x128x128xbf16>
    %29 = vector.shape_cast %28 : vector<1x128x128xbf16> to vector<128x128xbf16>
    %cst_17 = arith.constant dense<0.000000e+00> : vector<64x128xf32>
    %30 = tpu.matmul %27, %29, %cst_17 {dimension_numbers = #tpu.dot_dimension_numbers<[1], [0], [0], [1], [0, 0, 1, 1], [], []>} : vector<64x128xbf16>, vector<128x128xbf16>, vector<64x128xf32> -> vector<64x128xf32>
    %31 = arith.addf %25, %30 : vector<64x128xf32>
    %32 = vector.extract_strided_slice %18 {offsets = [128, 0], sizes = [64, 128], strides = [1, 1]} : vector<1600x128xf32> to vector<64x128xf32>
    %33 = arith.truncf %32 : vector<64x128xf32> to vector<64x128xbf16>
    %c2 = arith.constant 2 : index
    %c0_18 = arith.constant 0 : index
    %c0_19 = arith.constant 0 : index
    %34 = vector.load %arg5[%c2, %c0_18, %c0_19] : memref<25x128x128xbf16, #tpu.memory_space<vmem>>, vector<1x128x128xbf16>
    %35 = vector.shape_cast %34 : vector<1x128x128xbf16> to vector<128x128xbf16>
    %cst_20 = arith.constant dense<0.000000e+00> : vector<64x128xf32>
    %36 = tpu.matmul %33, %35, %cst_20 {dimension_numbers = #tpu.dot_dimension_numbers<[1], [0], [0], [1], [0, 0, 1, 1], [], []>} : vector<64x128xbf16>, vector<128x128xbf16>, vector<64x128xf32> -> vector<64x128xf32>
    %37 = arith.addf %31, %36 : vector<64x128xf32>
    %38 = vector.extract_strided_slice %18 {offsets = [192, 0], sizes = [64, 128], strides = [1, 1]} : vector<1600x128xf32> to vector<64x128xf32>
    %39 = arith.truncf %38 : vector<64x128xf32> to vector<64x128xbf16>
    %c3 = arith.constant 3 : index
    %c0_21 = arith.constant 0 : index
    %c0_22 = arith.constant 0 : index
    %40 = vector.load %arg5[%c3, %c0_21, %c0_22] : memref<25x128x128xbf16, #tpu.memory_space<vmem>>, vector<1x128x128xbf16>
    %41 = vector.shape_cast %40 : vector<1x128x128xbf16> to vector<128x128xbf16>
    %cst_23 = arith.constant dense<0.000000e+00> : vector<64x128xf32>
    %42 = tpu.matmul %39, %41, %cst_23 {dimension_numbers = #tpu.dot_dimension_numbers<[1], [0], [0], [1], [0, 0, 1, 1], [], []>} : vector<64x128xbf16>, vector<128x128xbf16>, vector<64x128xf32> -> vector<64x128xf32>
    %43 = arith.addf %37, %42 : vector<64x128xf32>
    %44 = vector.extract_strided_slice %18 {offsets = [256, 0], sizes = [64, 128], strides = [1, 1]} : vector<1600x128xf32> to vector<64x128xf32>
    %45 = arith.truncf %44 : vector<64x128xf32> to vector<64x128xbf16>
    %c4 = arith.constant 4 : index
    %c0_24 = arith.constant 0 : index
    %c0_25 = arith.constant 0 : index
    %46 = vector.load %arg5[%c4, %c0_24, %c0_25] : memref<25x128x128xbf16, #tpu.memory_space<vmem>>, vector<1x128x128xbf16>
    %47 = vector.shape_cast %46 : vector<1x128x128xbf16> to vector<128x128xbf16>
    %cst_26 = arith.constant dense<0.000000e+00> : vector<64x128xf32>
    %48 = tpu.matmul %45, %47, %cst_26 {dimension_numbers = #tpu.dot_dimension_numbers<[1], [0], [0], [1], [0, 0, 1, 1], [], []>} : vector<64x128xbf16>, vector<128x128xbf16>, vector<64x128xf32> -> vector<64x128xf32>
    %49 = arith.addf %43, %48 : vector<64x128xf32>
    %50 = vector.extract_strided_slice %18 {offsets = [320, 0], sizes = [64, 128], strides = [1, 1]} : vector<1600x128xf32> to vector<64x128xf32>
    %51 = arith.truncf %50 : vector<64x128xf32> to vector<64x128xbf16>
    %c5 = arith.constant 5 : index
    %c0_27 = arith.constant 0 : index
    %c0_28 = arith.constant 0 : index
    %52 = vector.load %arg5[%c5, %c0_27, %c0_28] : memref<25x128x128xbf16, #tpu.memory_space<vmem>>, vector<1x128x128xbf16>
    %53 = vector.shape_cast %52 : vector<1x128x128xbf16> to vector<128x128xbf16>
    %cst_29 = arith.constant dense<0.000000e+00> : vector<64x128xf32>
    %54 = tpu.matmul %51, %53, %cst_29 {dimension_numbers = #tpu.dot_dimension_numbers<[1], [0], [0], [1], [0, 0, 1, 1], [], []>} : vector<64x128xbf16>, vector<128x128xbf16>, vector<64x128xf32> -> vector<64x128xf32>
    %55 = arith.addf %49, %54 : vector<64x128xf32>
    %56 = vector.extract_strided_slice %18 {offsets = [384, 0], sizes = [64, 128], strides = [1, 1]} : vector<1600x128xf32> to vector<64x128xf32>
    %57 = arith.truncf %56 : vector<64x128xf32> to vector<64x128xbf16>
    %c6 = arith.constant 6 : index
    %c0_30 = arith.constant 0 : index
    %c0_31 = arith.constant 0 : index
    %58 = vector.load %arg5[%c6, %c0_30, %c0_31] : memref<25x128x128xbf16, #tpu.memory_space<vmem>>, vector<1x128x128xbf16>
    %59 = vector.shape_cast %58 : vector<1x128x128xbf16> to vector<128x128xbf16>
    %cst_32 = arith.constant dense<0.000000e+00> : vector<64x128xf32>
    %60 = tpu.matmul %57, %59, %cst_32 {dimension_numbers = #tpu.dot_dimension_numbers<[1], [0], [0], [1], [0, 0, 1, 1], [], []>} : vector<64x128xbf16>, vector<128x128xbf16>, vector<64x128xf32> -> vector<64x128xf32>
    %61 = arith.addf %55, %60 : vector<64x128xf32>
    %62 = vector.extract_strided_slice %18 {offsets = [448, 0], sizes = [64, 128], strides = [1, 1]} : vector<1600x128xf32> to vector<64x128xf32>
    %63 = arith.truncf %62 : vector<64x128xf32> to vector<64x128xbf16>
    %c7 = arith.constant 7 : index
    %c0_33 = arith.constant 0 : index
    %c0_34 = arith.constant 0 : index
    %64 = vector.load %arg5[%c7, %c0_33, %c0_34] : memref<25x128x128xbf16, #tpu.memory_space<vmem>>, vector<1x128x128xbf16>
    %65 = vector.shape_cast %64 : vector<1x128x128xbf16> to vector<128x128xbf16>
    %cst_35 = arith.constant dense<0.000000e+00> : vector<64x128xf32>
    %66 = tpu.matmul %63, %65, %cst_35 {dimension_numbers = #tpu.dot_dimension_numbers<[1], [0], [0], [1], [0, 0, 1, 1], [], []>} : vector<64x128xbf16>, vector<128x128xbf16>, vector<64x128xf32> -> vector<64x128xf32>
    %67 = arith.addf %61, %66 : vector<64x128xf32>
    %68 = vector.extract_strided_slice %18 {offsets = [512, 0], sizes = [64, 128], strides = [1, 1]} : vector<1600x128xf32> to vector<64x128xf32>
    %69 = arith.truncf %68 : vector<64x128xf32> to vector<64x128xbf16>
    %c8 = arith.constant 8 : index
    %c0_36 = arith.constant 0 : index
    %c0_37 = arith.constant 0 : index
    %70 = vector.load %arg5[%c8, %c0_36, %c0_37] : memref<25x128x128xbf16, #tpu.memory_space<vmem>>, vector<1x128x128xbf16>
    %71 = vector.shape_cast %70 : vector<1x128x128xbf16> to vector<128x128xbf16>
    %cst_38 = arith.constant dense<0.000000e+00> : vector<64x128xf32>
    %72 = tpu.matmul %69, %71, %cst_38 {dimension_numbers = #tpu.dot_dimension_numbers<[1], [0], [0], [1], [0, 0, 1, 1], [], []>} : vector<64x128xbf16>, vector<128x128xbf16>, vector<64x128xf32> -> vector<64x128xf32>
    %73 = arith.addf %67, %72 : vector<64x128xf32>
    %74 = vector.extract_strided_slice %18 {offsets = [576, 0], sizes = [64, 128], strides = [1, 1]} : vector<1600x128xf32> to vector<64x128xf32>
    %75 = arith.truncf %74 : vector<64x128xf32> to vector<64x128xbf16>
    %c9 = arith.constant 9 : index
    %c0_39 = arith.constant 0 : index
    %c0_40 = arith.constant 0 : index
    %76 = vector.load %arg5[%c9, %c0_39, %c0_40] : memref<25x128x128xbf16, #tpu.memory_space<vmem>>, vector<1x128x128xbf16>
    %77 = vector.shape_cast %76 : vector<1x128x128xbf16> to vector<128x128xbf16>
    %cst_41 = arith.constant dense<0.000000e+00> : vector<64x128xf32>
    %78 = tpu.matmul %75, %77, %cst_41 {dimension_numbers = #tpu.dot_dimension_numbers<[1], [0], [0], [1], [0, 0, 1, 1], [], []>} : vector<64x128xbf16>, vector<128x128xbf16>, vector<64x128xf32> -> vector<64x128xf32>
    %79 = arith.addf %73, %78 : vector<64x128xf32>
    %80 = vector.extract_strided_slice %18 {offsets = [640, 0], sizes = [64, 128], strides = [1, 1]} : vector<1600x128xf32> to vector<64x128xf32>
    %81 = arith.truncf %80 : vector<64x128xf32> to vector<64x128xbf16>
    %c10 = arith.constant 10 : index
    %c0_42 = arith.constant 0 : index
    %c0_43 = arith.constant 0 : index
    %82 = vector.load %arg5[%c10, %c0_42, %c0_43] : memref<25x128x128xbf16, #tpu.memory_space<vmem>>, vector<1x128x128xbf16>
    %83 = vector.shape_cast %82 : vector<1x128x128xbf16> to vector<128x128xbf16>
    %cst_44 = arith.constant dense<0.000000e+00> : vector<64x128xf32>
    %84 = tpu.matmul %81, %83, %cst_44 {dimension_numbers = #tpu.dot_dimension_numbers<[1], [0], [0], [1], [0, 0, 1, 1], [], []>} : vector<64x128xbf16>, vector<128x128xbf16>, vector<64x128xf32> -> vector<64x128xf32>
    %85 = arith.addf %79, %84 : vector<64x128xf32>
    %86 = vector.extract_strided_slice %18 {offsets = [704, 0], sizes = [64, 128], strides = [1, 1]} : vector<1600x128xf32> to vector<64x128xf32>
    %87 = arith.truncf %86 : vector<64x128xf32> to vector<64x128xbf16>
    %c11 = arith.constant 11 : index
    %c0_45 = arith.constant 0 : index
    %c0_46 = arith.constant 0 : index
    %88 = vector.load %arg5[%c11, %c0_45, %c0_46] : memref<25x128x128xbf16, #tpu.memory_space<vmem>>, vector<1x128x128xbf16>
    %89 = vector.shape_cast %88 : vector<1x128x128xbf16> to vector<128x128xbf16>
    %cst_47 = arith.constant dense<0.000000e+00> : vector<64x128xf32>
    %90 = tpu.matmul %87, %89, %cst_47 {dimension_numbers = #tpu.dot_dimension_numbers<[1], [0], [0], [1], [0, 0, 1, 1], [], []>} : vector<64x128xbf16>, vector<128x128xbf16>, vector<64x128xf32> -> vector<64x128xf32>
    %91 = arith.addf %85, %90 : vector<64x128xf32>
    %92 = vector.extract_strided_slice %18 {offsets = [768, 0], sizes = [64, 128], strides = [1, 1]} : vector<1600x128xf32> to vector<64x128xf32>
    %93 = arith.truncf %92 : vector<64x128xf32> to vector<64x128xbf16>
    %c12 = arith.constant 12 : index
    %c0_48 = arith.constant 0 : index
    %c0_49 = arith.constant 0 : index
    %94 = vector.load %arg5[%c12, %c0_48, %c0_49] : memref<25x128x128xbf16, #tpu.memory_space<vmem>>, vector<1x128x128xbf16>
    %95 = vector.shape_cast %94 : vector<1x128x128xbf16> to vector<128x128xbf16>
    %cst_50 = arith.constant dense<0.000000e+00> : vector<64x128xf32>
    %96 = tpu.matmul %93, %95, %cst_50 {dimension_numbers = #tpu.dot_dimension_numbers<[1], [0], [0], [1], [0, 0, 1, 1], [], []>} : vector<64x128xbf16>, vector<128x128xbf16>, vector<64x128xf32> -> vector<64x128xf32>
    %97 = arith.addf %91, %96 : vector<64x128xf32>
    %98 = vector.extract_strided_slice %18 {offsets = [832, 0], sizes = [64, 128], strides = [1, 1]} : vector<1600x128xf32> to vector<64x128xf32>
    %99 = arith.truncf %98 : vector<64x128xf32> to vector<64x128xbf16>
    %c13 = arith.constant 13 : index
    %c0_51 = arith.constant 0 : index
    %c0_52 = arith.constant 0 : index
    %100 = vector.load %arg5[%c13, %c0_51, %c0_52] : memref<25x128x128xbf16, #tpu.memory_space<vmem>>, vector<1x128x128xbf16>
    %101 = vector.shape_cast %100 : vector<1x128x128xbf16> to vector<128x128xbf16>
    %cst_53 = arith.constant dense<0.000000e+00> : vector<64x128xf32>
    %102 = tpu.matmul %99, %101, %cst_53 {dimension_numbers = #tpu.dot_dimension_numbers<[1], [0], [0], [1], [0, 0, 1, 1], [], []>} : vector<64x128xbf16>, vector<128x128xbf16>, vector<64x128xf32> -> vector<64x128xf32>
    %103 = arith.addf %97, %102 : vector<64x128xf32>
    %104 = vector.extract_strided_slice %18 {offsets = [896, 0], sizes = [64, 128], strides = [1, 1]} : vector<1600x128xf32> to vector<64x128xf32>
    %105 = arith.truncf %104 : vector<64x128xf32> to vector<64x128xbf16>
    %c14 = arith.constant 14 : index
    %c0_54 = arith.constant 0 : index
    %c0_55 = arith.constant 0 : index
    %106 = vector.load %arg5[%c14, %c0_54, %c0_55] : memref<25x128x128xbf16, #tpu.memory_space<vmem>>, vector<1x128x128xbf16>
    %107 = vector.shape_cast %106 : vector<1x128x128xbf16> to vector<128x128xbf16>
    %cst_56 = arith.constant dense<0.000000e+00> : vector<64x128xf32>
    %108 = tpu.matmul %105, %107, %cst_56 {dimension_numbers = #tpu.dot_dimension_numbers<[1], [0], [0], [1], [0, 0, 1, 1], [], []>} : vector<64x128xbf16>, vector<128x128xbf16>, vector<64x128xf32> -> vector<64x128xf32>
    %109 = arith.addf %103, %108 : vector<64x128xf32>
    %110 = vector.extract_strided_slice %18 {offsets = [960, 0], sizes = [64, 128], strides = [1, 1]} : vector<1600x128xf32> to vector<64x128xf32>
    %111 = arith.truncf %110 : vector<64x128xf32> to vector<64x128xbf16>
    %c15 = arith.constant 15 : index
    %c0_57 = arith.constant 0 : index
    %c0_58 = arith.constant 0 : index
    %112 = vector.load %arg5[%c15, %c0_57, %c0_58] : memref<25x128x128xbf16, #tpu.memory_space<vmem>>, vector<1x128x128xbf16>
    %113 = vector.shape_cast %112 : vector<1x128x128xbf16> to vector<128x128xbf16>
    %cst_59 = arith.constant dense<0.000000e+00> : vector<64x128xf32>
    %114 = tpu.matmul %111, %113, %cst_59 {dimension_numbers = #tpu.dot_dimension_numbers<[1], [0], [0], [1], [0, 0, 1, 1], [], []>} : vector<64x128xbf16>, vector<128x128xbf16>, vector<64x128xf32> -> vector<64x128xf32>
    %115 = arith.addf %109, %114 : vector<64x128xf32>
    %116 = vector.extract_strided_slice %18 {offsets = [1024, 0], sizes = [64, 128], strides = [1, 1]} : vector<1600x128xf32> to vector<64x128xf32>
    %117 = arith.truncf %116 : vector<64x128xf32> to vector<64x128xbf16>
    %c16 = arith.constant 16 : index
    %c0_60 = arith.constant 0 : index
    %c0_61 = arith.constant 0 : index
    %118 = vector.load %arg5[%c16, %c0_60, %c0_61] : memref<25x128x128xbf16, #tpu.memory_space<vmem>>, vector<1x128x128xbf16>
    %119 = vector.shape_cast %118 : vector<1x128x128xbf16> to vector<128x128xbf16>
    %cst_62 = arith.constant dense<0.000000e+00> : vector<64x128xf32>
    %120 = tpu.matmul %117, %119, %cst_62 {dimension_numbers = #tpu.dot_dimension_numbers<[1], [0], [0], [1], [0, 0, 1, 1], [], []>} : vector<64x128xbf16>, vector<128x128xbf16>, vector<64x128xf32> -> vector<64x128xf32>
    %121 = arith.addf %115, %120 : vector<64x128xf32>
    %122 = vector.extract_strided_slice %18 {offsets = [1088, 0], sizes = [64, 128], strides = [1, 1]} : vector<1600x128xf32> to vector<64x128xf32>
    %123 = arith.truncf %122 : vector<64x128xf32> to vector<64x128xbf16>
    %c17 = arith.constant 17 : index
    %c0_63 = arith.constant 0 : index
    %c0_64 = arith.constant 0 : index
    %124 = vector.load %arg5[%c17, %c0_63, %c0_64] : memref<25x128x128xbf16, #tpu.memory_space<vmem>>, vector<1x128x128xbf16>
    %125 = vector.shape_cast %124 : vector<1x128x128xbf16> to vector<128x128xbf16>
    %cst_65 = arith.constant dense<0.000000e+00> : vector<64x128xf32>
    %126 = tpu.matmul %123, %125, %cst_65 {dimension_numbers = #tpu.dot_dimension_numbers<[1], [0], [0], [1], [0, 0, 1, 1], [], []>} : vector<64x128xbf16>, vector<128x128xbf16>, vector<64x128xf32> -> vector<64x128xf32>
    %127 = arith.addf %121, %126 : vector<64x128xf32>
    %128 = vector.extract_strided_slice %18 {offsets = [1152, 0], sizes = [64, 128], strides = [1, 1]} : vector<1600x128xf32> to vector<64x128xf32>
    %129 = arith.truncf %128 : vector<64x128xf32> to vector<64x128xbf16>
    %c18 = arith.constant 18 : index
    %c0_66 = arith.constant 0 : index
    %c0_67 = arith.constant 0 : index
    %130 = vector.load %arg5[%c18, %c0_66, %c0_67] : memref<25x128x128xbf16, #tpu.memory_space<vmem>>, vector<1x128x128xbf16>
    %131 = vector.shape_cast %130 : vector<1x128x128xbf16> to vector<128x128xbf16>
    %cst_68 = arith.constant dense<0.000000e+00> : vector<64x128xf32>
    %132 = tpu.matmul %129, %131, %cst_68 {dimension_numbers = #tpu.dot_dimension_numbers<[1], [0], [0], [1], [0, 0, 1, 1], [], []>} : vector<64x128xbf16>, vector<128x128xbf16>, vector<64x128xf32> -> vector<64x128xf32>
    %133 = arith.addf %127, %132 : vector<64x128xf32>
    %134 = vector.extract_strided_slice %18 {offsets = [1216, 0], sizes = [64, 128], strides = [1, 1]} : vector<1600x128xf32> to vector<64x128xf32>
    %135 = arith.truncf %134 : vector<64x128xf32> to vector<64x128xbf16>
    %c19 = arith.constant 19 : index
    %c0_69 = arith.constant 0 : index
    %c0_70 = arith.constant 0 : index
    %136 = vector.load %arg5[%c19, %c0_69, %c0_70] : memref<25x128x128xbf16, #tpu.memory_space<vmem>>, vector<1x128x128xbf16>
    %137 = vector.shape_cast %136 : vector<1x128x128xbf16> to vector<128x128xbf16>
    %cst_71 = arith.constant dense<0.000000e+00> : vector<64x128xf32>
    %138 = tpu.matmul %135, %137, %cst_71 {dimension_numbers = #tpu.dot_dimension_numbers<[1], [0], [0], [1], [0, 0, 1, 1], [], []>} : vector<64x128xbf16>, vector<128x128xbf16>, vector<64x128xf32> -> vector<64x128xf32>
    %139 = arith.addf %133, %138 : vector<64x128xf32>
    %140 = vector.extract_strided_slice %18 {offsets = [1280, 0], sizes = [64, 128], strides = [1, 1]} : vector<1600x128xf32> to vector<64x128xf32>
    %141 = arith.truncf %140 : vector<64x128xf32> to vector<64x128xbf16>
    %c20 = arith.constant 20 : index
    %c0_72 = arith.constant 0 : index
    %c0_73 = arith.constant 0 : index
    %142 = vector.load %arg5[%c20, %c0_72, %c0_73] : memref<25x128x128xbf16, #tpu.memory_space<vmem>>, vector<1x128x128xbf16>
    %143 = vector.shape_cast %142 : vector<1x128x128xbf16> to vector<128x128xbf16>
    %cst_74 = arith.constant dense<0.000000e+00> : vector<64x128xf32>
    %144 = tpu.matmul %141, %143, %cst_74 {dimension_numbers = #tpu.dot_dimension_numbers<[1], [0], [0], [1], [0, 0, 1, 1], [], []>} : vector<64x128xbf16>, vector<128x128xbf16>, vector<64x128xf32> -> vector<64x128xf32>
    %145 = arith.addf %139, %144 : vector<64x128xf32>
    %146 = vector.extract_strided_slice %18 {offsets = [1344, 0], sizes = [64, 128], strides = [1, 1]} : vector<1600x128xf32> to vector<64x128xf32>
    %147 = arith.truncf %146 : vector<64x128xf32> to vector<64x128xbf16>
    %c21 = arith.constant 21 : index
    %c0_75 = arith.constant 0 : index
    %c0_76 = arith.constant 0 : index
    %148 = vector.load %arg5[%c21, %c0_75, %c0_76] : memref<25x128x128xbf16, #tpu.memory_space<vmem>>, vector<1x128x128xbf16>
    %149 = vector.shape_cast %148 : vector<1x128x128xbf16> to vector<128x128xbf16>
    %cst_77 = arith.constant dense<0.000000e+00> : vector<64x128xf32>
    %150 = tpu.matmul %147, %149, %cst_77 {dimension_numbers = #tpu.dot_dimension_numbers<[1], [0], [0], [1], [0, 0, 1, 1], [], []>} : vector<64x128xbf16>, vector<128x128xbf16>, vector<64x128xf32> -> vector<64x128xf32>
    %151 = arith.addf %145, %150 : vector<64x128xf32>
    %152 = vector.extract_strided_slice %18 {offsets = [1408, 0], sizes = [64, 128], strides = [1, 1]} : vector<1600x128xf32> to vector<64x128xf32>
    %153 = arith.truncf %152 : vector<64x128xf32> to vector<64x128xbf16>
    %c22 = arith.constant 22 : index
    %c0_78 = arith.constant 0 : index
    %c0_79 = arith.constant 0 : index
    %154 = vector.load %arg5[%c22, %c0_78, %c0_79] : memref<25x128x128xbf16, #tpu.memory_space<vmem>>, vector<1x128x128xbf16>
    %155 = vector.shape_cast %154 : vector<1x128x128xbf16> to vector<128x128xbf16>
    %cst_80 = arith.constant dense<0.000000e+00> : vector<64x128xf32>
    %156 = tpu.matmul %153, %155, %cst_80 {dimension_numbers = #tpu.dot_dimension_numbers<[1], [0], [0], [1], [0, 0, 1, 1], [], []>} : vector<64x128xbf16>, vector<128x128xbf16>, vector<64x128xf32> -> vector<64x128xf32>
    %157 = arith.addf %151, %156 : vector<64x128xf32>
    %158 = vector.extract_strided_slice %18 {offsets = [1472, 0], sizes = [64, 128], strides = [1, 1]} : vector<1600x128xf32> to vector<64x128xf32>
    %159 = arith.truncf %158 : vector<64x128xf32> to vector<64x128xbf16>
    %c23 = arith.constant 23 : index
    %c0_81 = arith.constant 0 : index
    %c0_82 = arith.constant 0 : index
    %160 = vector.load %arg5[%c23, %c0_81, %c0_82] : memref<25x128x128xbf16, #tpu.memory_space<vmem>>, vector<1x128x128xbf16>
    %161 = vector.shape_cast %160 : vector<1x128x128xbf16> to vector<128x128xbf16>
    %cst_83 = arith.constant dense<0.000000e+00> : vector<64x128xf32>
    %162 = tpu.matmul %159, %161, %cst_83 {dimension_numbers = #tpu.dot_dimension_numbers<[1], [0], [0], [1], [0, 0, 1, 1], [], []>} : vector<64x128xbf16>, vector<128x128xbf16>, vector<64x128xf32> -> vector<64x128xf32>
    %163 = arith.addf %157, %162 : vector<64x128xf32>
    %164 = vector.extract_strided_slice %18 {offsets = [1536, 0], sizes = [64, 128], strides = [1, 1]} : vector<1600x128xf32> to vector<64x128xf32>
    %165 = arith.truncf %164 : vector<64x128xf32> to vector<64x128xbf16>
    %c24 = arith.constant 24 : index
    %c0_84 = arith.constant 0 : index
    %c0_85 = arith.constant 0 : index
    %166 = vector.load %arg5[%c24, %c0_84, %c0_85] : memref<25x128x128xbf16, #tpu.memory_space<vmem>>, vector<1x128x128xbf16>
    %167 = vector.shape_cast %166 : vector<1x128x128xbf16> to vector<128x128xbf16>
    %cst_86 = arith.constant dense<0.000000e+00> : vector<64x128xf32>
    %168 = tpu.matmul %165, %167, %cst_86 {dimension_numbers = #tpu.dot_dimension_numbers<[1], [0], [0], [1], [0, 0, 1, 1], [], []>} : vector<64x128xbf16>, vector<128x128xbf16>, vector<64x128xf32> -> vector<64x128xf32>
    %169 = arith.addf %163, %168 : vector<64x128xf32>
    %c0_87 = arith.constant 0 : index
    %c0_88 = arith.constant 0 : index
    %170 = vector.load %arg6[%c0_87, %c0_88] : memref<1x128xf32, #tpu.memory_space<vmem>>, vector<1x128xf32>
    %171 = vector.broadcast %170 : vector<1x128xf32> to vector<64x128xf32>
    %172 = arith.addf %169, %171 : vector<64x128xf32>
    %cst_89 = arith.constant 0.000000e+00 : f32
    %173 = vector.broadcast %cst_89 : f32 to vector<64x128xf32>
    %174 = arith.maximumf %172, %173 : vector<64x128xf32>
    %175 = vector.extract_strided_slice %174 {offsets = [0, 0], sizes = [16, 128], strides = [1, 1]} : vector<64x128xf32> to vector<16x128xf32>
    %176 = vector.extract_strided_slice %174 {offsets = [16, 0], sizes = [16, 128], strides = [1, 1]} : vector<64x128xf32> to vector<16x128xf32>
    %177 = arith.maximumf %175, %176 : vector<16x128xf32>
    %178 = vector.extract_strided_slice %174 {offsets = [32, 0], sizes = [16, 128], strides = [1, 1]} : vector<64x128xf32> to vector<16x128xf32>
    %179 = vector.extract_strided_slice %174 {offsets = [48, 0], sizes = [16, 128], strides = [1, 1]} : vector<64x128xf32> to vector<16x128xf32>
    %180 = arith.maximumf %178, %179 : vector<16x128xf32>
    %181 = arith.maximumf %177, %180 : vector<16x128xf32>
    %c0_90 = arith.constant 0 : index
    %c0_91 = arith.constant 0 : index
    %c0_92 = arith.constant 0 : index
    %182 = vector.load %arg7[%c0_90, %c0_91, %c0_92] : memref<1x16x128xf32, #tpu.memory_space<vmem>>, vector<1x16x128xf32>
    %183 = vector.shape_cast %182 : vector<1x16x128xf32> to vector<16x128xf32>
    %184 = vector.shape_cast %181 : vector<16x128xf32> to vector<1x16x128xf32>
    tpu.vector_store %arg7[%c0_90, %c0_91, %c0_92], %184 {strides = array<i32>} : memref<1x16x128xf32, #tpu.memory_space<vmem>>, vector<1x16x128xf32>,
    return
  }
  func.func @transform_0(%arg0: i32) -> (i32, i32, i32) {
    %c0_i32 = arith.constant 0 : i32
    %c0_i32_0 = arith.constant 0 : i32
    %c0_i32_1 = arith.constant 0 : i32
    return %arg0, %c0_i32, %c0_i32_0 : i32, i32, i32
  }
  func.func @transform_1(%arg0: i32) -> (i32, i32) {
    %c0_i32 = arith.constant 0 : i32
    %c0_i32_0 = arith.constant 0 : i32
    %c0_i32_1 = arith.constant 0 : i32
    return %c0_i32, %c0_i32_0 : i32, i32
  }
  func.func @transform_2(%arg0: i32) -> (i32, i32) {
    %c0_i32 = arith.constant 0 : i32
    %c0_i32_0 = arith.constant 0 : i32
    %c0_i32_1 = arith.constant 0 : i32
    return %c0_i32, %c0_i32_0 : i32, i32
  }
  func.func @transform_3(%arg0: i32) -> (i32, i32) {
    %c0_i32 = arith.constant 0 : i32
    %c0_i32_0 = arith.constant 0 : i32
    %c0_i32_1 = arith.constant 0 : i32
    return %c0_i32, %c0_i32_0 : i32, i32
  }
  func.func @transform_4(%arg0: i32) -> (i32, i32, i32) {
    %c0_i32 = arith.constant 0 : i32
    %c0_i32_0 = arith.constant 0 : i32
    %c0_i32_1 = arith.constant 0 : i32
    %c0_i32_2 = arith.constant 0 : i32
    return %c0_i32, %c0_i32_0, %c0_i32_1 : i32, i32, i32
  }
  func.func @transform_5(%arg0: i32) -> (i32, i32) {
    %c0_i32 = arith.constant 0 : i32
    %c0_i32_0 = arith.constant 0 : i32
    %c0_i32_1 = arith.constant 0 : i32
    return %c0_i32, %c0_i32_0 : i32, i32
  }
  func.func @transform_6(%arg0: i32) -> (i32, i32, i32) {
    %c0_i32 = arith.constant 0 : i32
    %c0_i32_0 = arith.constant 0 : i32
    %c0_i32_1 = arith.constant 0 : i32
    return %arg0, %c0_i32, %c0_i32_0 : i32, i32, i32
  }
}

</mosaic_0001>

<bundles_post_ra>
// kernel: feature_extractor.1
= control target key start
LH: loop header
LB: loop body
LE: loop exit
PB: predicated region body
PF: predicated region fallthrough
CT: control target
= control target key end

     0   :  { %11 = vsyncpa [#allocation3], 0  ;;  %s11734_s0 = inlined_call_operand.vmem [shape: bf16[2,576,128], index: 0, kind: input, shape index: {}]   ;;  %s11735_s1 = inlined_call_operand.vmem [shape: bf16[128,128], index: 1, kind: input, shape index: {}]   ;;  %s11736_s2 = inlined_call_operand.vmem [shape: f32[1,128], index: 2, kind: input, shape index: {}]   ;;  %s11737_s3 = inlined_call_operand.vmem [shape: bf16[1600,144], index: 3, kind: input, shape index: {}]   ;;  %s11738_s4 = inlined_call_operand.vmem [shape: bf16[25,128,128], index: 4, kind: input, shape index: {}]   ;;  %s11739_s5 = inlined_call_operand.vmem [shape: f32[1,128], index: 5, kind: input, shape index: {}]   ;;  %s11740_s6 = inlined_call_operand.hbm [shape: f32[2,16,128], index: 6, kind: output, shape index: {}]  }
   0x1   :  { %13 = vsyncpa [#allocation3 + $0x1], 0  ;;  %s9812_s21 = smov 0   ;;  %s9814_s22 = smov 0  }
   0x2   :  { %s9816_s23 = smov 0   ;;  %s9818_s24 = smov 0  }
   0x3 LB: > { %s9833_s25 = sadd.s32 4294967295, %s9771_s24   ;;  %s6940_s26 = sadd.s32 4294967294, %s9771_s24   ;;  %s9771_s24 = sphi %s9818_s24, %s11756_s24   ;;  %s9767_s23 = sphi %s9816_s23, %s11755_s23   ;;  %s9763_s22 = sphi %s9814_s22, %s11754_s22   ;;  %s9759_s21 = sphi %s9812_s21, %s11753_s21  }
   0x4   : > { %s9837_s27 = sadd.s32 1, %s9771_s24   ;;  %s157_s28 = sadd.s32 1, %s9767_s23 }
   0x5   : > { %s154_s29 = ssub.s32 %s9771_s24, %s9837_s27  ;;  %p167_p0 = scmp.ne.s32.totalorder %s9767_s23, %s9763_s22 }
   0x6   : > { %p155_p1 = scmp.eq.s32.totalorder %s154_s29, 0  ;;  %p168_p2 = scmp.eq.s32.totalorder %s9833_s25, 1 }
   0x7   : > { %p173_p3 = scmp.ne.s32.totalorder %s9763_s22, %s9759_s21  ;;  %p174_p4 = scmp.eq.s32.totalorder %s6940_s26, 1 }
   0x8   : > { %s9848_s30 = scalar_select %p155_p1, %s9767_s23, %s157_s28  }
   0x9   : > { %p9850_p5 = por %p168_p2, %p167_p0  ;;  %p9854_p6 = por %p174_p4, %p173_p3 }
   0xa   : > { %p6943_p7 = scmp.ge.s32.totalorder %s9771_s24, 1  ;;  %p215_p8 = scmp.lt.s32.totalorder %s9771_s24, 3 }
   0xc   : > { %p216_p9 = pnand %p6943_p7, %p215_p8 }
   0xd   : > { %v9165_v0 = vld [vmem:[%s11735_s1] sm:$0xff] (!%p216_p9)   ;;  %p245_p10 = scmp.lt.s32.totalorder (!%p216_p9), %s9833_s25, 1  ;;  %v9166_v1 = vld [vmem:[%s11735_s1 + $0x8] sm:$0xff] (!%p216_p9)   ;;  %v9167_v2 = vld [vmem:[%s11735_s1 + $0x10] sm:$0xff] (!%p216_p9)   ;;  %v11741_v44 = vmov (!%p216_p9), 0   ;;  %vm2166_vm0 = vcmask (!%p216_p9), 130048  }
   0xe   : > { %219 = sbr.rel (%p216_p9) target bundleno = 1648 (0x670), region = 44  ;;  %8226 = vmatprep.subr.bf16.mxu0 (!%p216_p9), %v9165_v0  ;;  %8914 = vmatprep.subr.bf16.mxu1 (!%p216_p9), %v9165_v0  ;;  %v9168_v3 = vld [vmem:[%s11735_s1 + $0x18] sm:$0xff] (!%p216_p9)   ;;  %v9169_v6 = vld [vmem:[%s11735_s1 + $0x20] sm:$0xff] (!%p216_p9)   ;;  %v9170_v7 = vld [vmem:[%s11735_s1 + $0x28] sm:$0xff] (!%p216_p9)   ;;  %s242_s9 = sand.u32 (!%p216_p9), 1, %s9763_s22  }
   0xf   : > { %8227 = vmatpush3.bf16.msra.mxu0 (!%p216_p9), %v9165_v0  ;;  %8922 = vmatpush3.bf16.msra.mxu1 (!%p216_p9), %v9165_v0  ;;  %v9171_v8 = vld [vmem:[%s11735_s1 + $0x30] sm:$0xff] (!%p216_p9)   ;;  %v9172_v9 = vld [vmem:[%s11735_s1 + $0x38] sm:$0xff] (!%p216_p9)   ;;  %v9211_v45 = vld [vmem:[%s11737_s3 + $0x4] ss:$8 sps:$4 sm:$0xff] (!%p216_p9)   ;;  %s6944_s10 = sshll.u32 (!%p216_p9), %s242_s9, 4  ;;  %s11693_s17 = scalar_lea.sflag (!%p216_p9), [#allocation3], %s242_s9 }
  0x10   : > { %8228 = vmatprep.subr.bf16.mxu0 (!%p216_p9), %v9166_v1  ;;  %8915 = vmatprep.subr.bf16.mxu1 (!%p216_p9), %v9166_v1  ;;  %s244_s11 = scalar_lea.vmem (!%p216_p9), [#allocation2], %s6944_s10 }
  0x11   : > { %s6878_s12 = sshll.u32 (!%p216_p9), %s244_s11, 4  ;;  %s11691_s12 = int_to_ptr.vmem [resolvable:$true] %s6878_s12 }
  0x12   : > { %s9709_s18 = scalar_lea.vmem (!%p216_p9), %s11691_s12, 256 }
  0x13   : > { %8229 = vmatpush3.bf16.msra.mxu0 (!%p216_p9), %v9166_v1  ;;  %8923 = vmatpush3.bf16.msra.mxu1 (!%p216_p9), %v9166_v1  ;;  %p9710_p11 = scmp.ne.s32.totalorder (!%p216_p9), %s11691_s12, %s9709_s18 }
  0x14   : > { %8230 = vmatprep.subr.bf16.mxu0 (!%p216_p9), %v9167_v2  ;;  %8916 = vmatprep.subr.bf16.mxu1 (!%p216_p9), %v9167_v2 }
  0x15   : > { %s246_s13 = scalar_select %p245_p10, %s9833_s25, 1 }
  0x16   : > { %p9711_p12 = pnand %p9710_p11, %p9850_p5 }
  0x17   : > { %s9122_s16 = smul.u32 288, %s246_s13  ;;  %8231 = vmatpush3.bf16.msra.mxu0 %v9167_v2  ;;  %8924 = vmatpush3.bf16.msra.mxu1 %v9167_v2  ;;  %s7881_s13 = sshll.u32 %s9833_s25, 8 }
  0x18   : > { %8232 = vmatprep.subr.bf16.mxu0 %v9168_v3  ;;  %8917 = vmatprep.subr.bf16.mxu1 %v9168_v3  ;;  %p9712_p13 = pneg %p9711_p12  ;;  %s9774_s25 = smov [#allocation2]  }
  0x19   : > { %s9874_s19 = scalar_lea.vmem %s11734_s0, %s9122_s16  ;;  %s11689_s16 = scalar_lea.hbm %s11740_s6, %s7881_s13 }
  0x1a   : > { %v9173_v4 = vld [vmem:[%s9874_s19] sm:$0xff]   ;;  %v9174_v10 = vld [vmem:[%s9874_s19 + $0x8] sm:$0xff]   ;;  %v9177_v12 = vld [vmem:[%s9874_s19 + $0x10] sm:$0xff]  }
  0x1b   : > { %8242 = vmatprep.mubr.bf16.mxu0 %v9173_v4  ;;  %v9175_v5 = vld [vmem:[%s9874_s19 + $0xa0] sm:$0xff]   ;;  %8233 = vmatpush3.bf16.msra.mxu0 %v9168_v3  ;;  %v9176_v11 = vld [vmem:[%s9874_s19 + $0xa8] sm:$0xff]   ;;  %v9179_v13 = vld [vmem:[%s9874_s19 + $0xb0] sm:$0xff]  }
  0x1c   : > { %8282 = vmatprep.mubr.bf16.mxu1 %v9175_v5  ;;  %8925 = vmatpush3.bf16.msra.mxu1 %v9168_v3  ;;  %v9178_v14 = vld [vmem:[%s9874_s19 + $0x18] sm:$0xff]   ;;  %v9181_v16 = vld [vmem:[%s9874_s19 + $0x20] sm:$0xff]   ;;  %v9182_v18 = vld [vmem:[%s9874_s19 + $0x28] sm:$0xff]  }
  0x1d   : > { %8234 = vmatprep.subr.bf16.mxu0 %v9169_v6  ;;  %8918 = vmatprep.subr.bf16.mxu1 %v9169_v6  ;;  %v9180_v15 = vld [vmem:[%s9874_s19 + $0xb8] sm:$0xff]   ;;  %v9183_v17 = vld [vmem:[%s9874_s19 + $0xc0] sm:$0xff]   ;;  %v9184_v19 = vld [vmem:[%s9874_s19 + $0xc8] sm:$0xff]  }
  0x1e   : > { %v9185_v20 = vld [vmem:[%s9874_s19 + $0x30] sm:$0xff]   ;;  %v9186_v22 = vld [vmem:[%s9874_s19 + $0x38] sm:$0xff]   ;;  %v9189_v24 = vld [vmem:[%s9874_s19 + $0x40] sm:$0xff]  }
  0x1f   : > { %8235 = vmatpush3.bf16.msra.mxu0 %v9169_v6  ;;  %v9187_v21 = vld [vmem:[%s9874_s19 + $0xd0] sm:$0xff]   ;;  %v9188_v23 = vld [vmem:[%s9874_s19 + $0xd8] sm:$0xff]   ;;  %v9191_v25 = vld [vmem:[%s9874_s19 + $0xe0] sm:$0xff]  }
  0x20   : > { %8926 = vmatpush3.bf16.msra.mxu1 %v9169_v6  ;;  %8236 = vmatprep.subr.bf16.mxu0 %v9170_v7  ;;  %v9190_v26 = vld [vmem:[%s9874_s19 + $0x48] sm:$0xff]   ;;  %v9193_v28 = vld [vmem:[%s9874_s19 + $0x50] sm:$0xff]   ;;  %v9194_v30 = vld [vmem:[%s9874_s19 + $0x58] sm:$0xff]  }
  0x21   : > { %8919 = vmatprep.subr.bf16.mxu1 %v9170_v7  ;;  %v9192_v27 = vld [vmem:[%s9874_s19 + $0xe8] sm:$0xff]   ;;  %v9195_v29 = vld [vmem:[%s9874_s19 + $0xf0] sm:$0xff]   ;;  %v9196_v31 = vld [vmem:[%s9874_s19 + $0xf8] sm:$0xff]  }
  0x22   : > { %v9197_v32 = vld [vmem:[%s9874_s19 + $0x60] sm:$0xff]   ;;  %v9198_v34 = vld [vmem:[%s9874_s19 + $0x68] sm:$0xff]   ;;  %v9201_v36 = vld [vmem:[%s9874_s19 + $0x70] sm:$0xff]  }
  0x23   : > { %8237 = vmatpush3.bf16.msra.mxu0 %v9170_v7  ;;  %v9199_v33 = vld [vmem:[%s9874_s19 + $0x100] sm:$0xff]   ;;  %v9200_v35 = vld [vmem:[%s9874_s19 + $0x108] sm:$0xff]   ;;  %v9203_v37 = vld [vmem:[%s9874_s19 + $0x110] sm:$0xff]  }
  0x24   : > { %8927 = vmatpush3.bf16.msra.mxu1 %v9170_v7  ;;  %8238 = vmatprep.subr.bf16.mxu0 %v9171_v8  ;;  %v9202_v38 = vld [vmem:[%s9874_s19 + $0x78] sm:$0xff]   ;;  %v9205_v40 = vld [vmem:[%s9874_s19 + $0x80] sm:$0xff]   ;;  %v9206_v41 = vld [vmem:[%s9874_s19 + $0x88] sm:$0xff]  }
  0x25   : > { %8920 = vmatprep.subr.bf16.mxu1 %v9171_v8  ;;  %v9204_v39 = vld [vmem:[%s9874_s19 + $0x118] sm:$0xff]   ;;  %v9207_v42 = vld [vmem:[%s9874_s19 + $0x90] sm:$0xff]   ;;  %v9941_v6 = vld [vmem:[%s11736_s2] ss:$0 sm:$0xff] }
  0x26   : > { %v9208_v43 = vld [vmem:[%s9874_s19 + $0x98] sm:$0xff]   ;;  %s9713_s19 = sshll.u32 %s9774_s25, 4  ;;  %s9714_s19 = int_to_ptr.vmem [resolvable:$false] %s9713_s19 }
  0x27   : > { %8239 = vmatpush3.bf16.msra.mxu0 %v9171_v8  ;;  %s9715_s20 = scalar_lea.vmem %s9714_s19, 512  ;;  %p9716_p0 = scmp.lt.s32.totalorder %s11691_s12, %s9714_s19 }
  0x28   : > { %8928 = vmatpush3.bf16.msra.mxu1 %v9171_v8  ;;  %8240 = vmatprep.subr.bf16.mxu0 %v9172_v9  ;;  %p9717_p1 = scmp.lt.s32.totalorder %s9715_s20, %s9709_s18 }
  0x29   : > { %8921 = vmatprep.subr.bf16.mxu1 %v9172_v9 }
  0x2a   : > { %p9718_p2 = por %p9717_p1, %p9716_p0 }
  0x2b   : > { %8241 = vmatpush3.bf16.msra.mxu0 %v9172_v9 }
  0x2c   : > { %8929 = vmatpush3.bf16.msra.mxu1 %v9172_v9  ;;  %p9719_p3 = pnand %p9718_p2, %p9712_p13 }
  0x2d   : > { %2467 = vmatprep.subr.bf16.mxu1 %v11741_v44 }
  0x2e   : > { %8243 = vmatmul.mubr.bf16.vlgmr.msra.gmra.mrb[0].mxu0 %v9174_v10 }
  0x2f   : > { %8283 = vmatmul.mubr.bf16.vlgmr.msra.gmra.mrb[0].mxu1 %v9176_v11  ;;  %8246 = vmatprep.mubr.bf16.mxu0 %v9177_v12 }
  0x30   : > { %8286 = vmatprep.mubr.bf16.mxu1 %v9179_v13 }
  0x36   : > { %8247 = vmatmul.mubr.bf16.gmra.mrb[4].mxu0 %v9178_v14 }
  0x37   : > { %8287 = vmatmul.mubr.bf16.gmra.mrb[4].mxu1 %v9180_v15  ;;  %8250 = vmatprep.mubr.bf16.mxu0 %v9181_v16 }
  0x38   : > { %8290 = vmatprep.mubr.bf16.mxu1 %v9183_v17 }
  0x3e   : > { %8251 = vmatmul.mubr.bf16.gmra.mrb[8].mxu0 %v9182_v18 }
  0x3f   : > { %8291 = vmatmul.mubr.bf16.gmra.mrb[8].mxu1 %v9184_v19  ;;  %8254 = vmatprep.mubr.bf16.mxu0 %v9185_v20 }
  0x40   : > { %8294 = vmatprep.mubr.bf16.mxu1 %v9187_v21 }
  0x46   : > { %8255 = vmatmul.mubr.bf16.gmra.mrb[12].mxu0 %v9186_v22 }
  0x47   : > { %8295 = vmatmul.mubr.bf16.gmra.mrb[12].mxu1 %v9188_v23  ;;  %8258 = vmatprep.mubr.bf16.mxu0 %v9189_v24 }
  0x48   : > { %8298 = vmatprep.mubr.bf16.mxu1 %v9191_v25 }
  0x4e   : > { %8259 = vmatmul.mubr.bf16.gmra.mrb[16].mxu0 %v9190_v26 }
  0x4f   : > { %8299 = vmatmul.mubr.bf16.gmra.mrb[16].mxu1 %v9192_v27  ;;  %8262 = vmatprep.mubr.bf16.mxu0 %v9193_v28 }
  0x50   : > { %8302 = vmatprep.mubr.bf16.mxu1 %v9195_v29 }
  0x56   : > { %8263 = vmatmul.mubr.bf16.gmra.mrb[20].mxu0 %v9194_v30 }
  0x57   : > { %8303 = vmatmul.mubr.bf16.gmra.mrb[20].mxu1 %v9196_v31  ;;  %8266 = vmatprep.mubr.bf16.mxu0 %v9197_v32 }
  0x58   : > { %8306 = vmatprep.mubr.bf16.mxu1 %v9199_v33 }
  0x5e   : > { %8267 = vmatmul.mubr.bf16.gmra.mrb[24].mxu0 %v9198_v34 }
  0x5f   : > { %8307 = vmatmul.mubr.bf16.gmra.mrb[24].mxu1 %v9200_v35  ;;  %8270 = vmatprep.mubr.bf16.mxu0 %v9201_v36 }
  0x60   : > { %8310 = vmatprep.mubr.bf16.mxu1 %v9203_v37 }
  0x66   : > { %8271 = vmatmul.mubr.bf16.gmra.mrb[28].mxu0 %v9202_v38 }
  0x67   : > { %8311 = vmatmul.mubr.bf16.gmra.mrb[28].mxu1 %v9204_v39  ;;  %8274 = vmatprep.mubr.bf16.mxu0 %v9205_v40 }
  0x68   : > { %7191 = vmatprep.mubr.msk.bf16.mxu1 %vm2166_vm0, %v9211_v45 }
  0x6e   : > { %8275 = vmatmul.mubr.bf16.gmra.mrb[32].mxu0 %v9206_v41 }
  0x6f   : > { %8278 = vmatprep.mubr.bf16.mxu0 %v9207_v42 }
  0x76   : > { %8279 = vmatmul.mubr.bf16.gmra.mrb[36].mxu0 %v9208_v43 }
 0x101   : > { %v8244_v46 = vpop.f32.mrb[0].mxu0 }
 0x102   : > { %v8284_v47 = vpop.f32.mrb[0].mxu1  ;;  %v644_v48 = vpop.f32.mrb[1].mxu0  ;;  %v9952_v11 = vadd.f32 %v8244_v46, %v9941_v6 }
 0x103   : > { %v804_v49 = vpop.f32.mrb[1].mxu1  ;;  %v8245_v50 = vpop.f32.mrb[2].mxu0  ;;  %v645_v12 = vadd.f32 %v9941_v6, %v644_v48  ;;  %v9956_v13 = vadd.f32 %v8284_v47, %v9941_v6 }
 0x104   : > { %v8285_v51 = vpop.f32.mrb[2].mxu1  ;;  %v647_v52 = vpop.f32.mrb[3].mxu0  ;;  %v9963_v16 = vadd.f32 %v8245_v50, %v9941_v6  ;;  %v805_v18 = vadd.f32 %v9941_v6, %v804_v49  ;;  %v933_v26 = vmax.f32 %v9952_v11, 0.0 }
 0x105   : > { %v807_v53 = vpop.f32.mrb[3].mxu1  ;;  %v648_v17 = vadd.f32 %v9941_v6, %v647_v52  ;;  %v9968_v19 = vadd.f32 %v8285_v51, %v9941_v6  ;;  %v931_v27 = vmax.f32 %v645_v12, 0.0  ;;  %v973_v28 = vmax.f32 %v9956_v13, 0.0 }
 0x106   : > { %v808_v23 = vadd.f32 %v9941_v6, %v807_v53  ;;  %v934_v30 = vmax.f32 %v9963_v16, 0.0  ;;  %v971_v32 = vmax.f32 %v805_v18, 0.0 }
 0x107   : > { %v932_v31 = vmax.f32 %v648_v17, 0.0  ;;  %v974_v33 = vmax.f32 %v9968_v19, 0.0 }
 0x108   : > { %v972_v36 = vmax.f32 %v808_v23, 0.0 }
 0x109   : > { %v8248_v54 = vpop.f32.mrb[4].mxu0 }
 0x10a   : > { %v8288_v55 = vpop.f32.mrb[4].mxu1  ;;  %v660_v56 = vpop.f32.mrb[5].mxu0  ;;  %v9975_v22 = vadd.f32 %v8248_v54, %v9941_v6 }
 0x10b   : > { %v820_v57 = vpop.f32.mrb[5].mxu1  ;;  %v8249_v58 = vpop.f32.mrb[6].mxu0  ;;  %v9979_v24 = vadd.f32 %v8288_v55, %v9941_v6  ;;  %v9982_v25 = vadd.f32 %v9941_v6, %v660_v56 }
 0x10c   : > { %v8289_v59 = vpop.f32.mrb[6].mxu1  ;;  %v663_v60 = vpop.f32.mrb[7].mxu0  ;;  %v9987_v29 = vadd.f32 %v9941_v6, %v820_v57  ;;  %v937_v34 = vmax.f32 %v9975_v22, 0.0  ;;  %v9993_v35 = vadd.f32 %v8249_v58, %v9941_v6 }
 0x10d   : > { %v823_v61 = vpop.f32.mrb[7].mxu1  ;;  %v935_v40 = vmax.f32 %v9982_v25, 0.0  ;;  %v9998_v41 = vadd.f32 %v8289_v59, %v9941_v6  ;;  %v10007_v47 = vadd.f32 %v9941_v6, %v663_v60 }
 0x10e   : > { %v975_v49 = vmax.f32 %v9987_v29, 0.0  ;;  %v10014_v50 = vadd.f32 %v9941_v6, %v823_v61 }
 0x111   : > { %v8252_v62 = vpop.f32.mrb[8].mxu0 }
 0x112   : > { %v8292_v63 = vpop.f32.mrb[8].mxu1  ;;  %v676_v0 = vpop.f32.mrb[9].mxu0  ;;  %v10010_v48 = vadd.f32 %v8252_v62, %v9941_v6 }
 0x113   : > { %v836_v1 = vpop.f32.mrb[9].mxu1  ;;  %v8253_v2 = vpop.f32.mrb[10].mxu0  ;;  %v10023_v59 = vadd.f32 %v9941_v6, %v676_v0  ;;  %v10029_v61 = vadd.f32 %v8292_v63, %v9941_v6  ;;  %v936_v0 = vmax.f32 %v10007_v47, 0.0 }
 0x114   : > { %v9932_v3 = vpop.f32.mrb[10].mxu1  ;;  %v9934_v4 = vpop.f32.mrb[11].mxu0  ;;  %v10026_v60 = vadd.f32 %v8253_v2, %v9941_v6  ;;  %v10032_v62 = vadd.f32 %v9941_v6, %v836_v1  ;;  %v976_v1 = vmax.f32 %v10014_v50, 0.0 }
 0x115   : > { %v9936_v5 = vpop.f32.mrb[11].mxu1  ;;  %v10043_v2 = vadd.f32 %v9932_v3, %v9941_v6 }
 0x119   : > { %v9943_v7 = vpop.f32.mrb[12].mxu0 }
 0x11a   : > { %v9945_v8 = vpop.f32.mrb[12].mxu1  ;;  %v9947_v9 = vpop.f32.mrb[13].mxu0 }
 0x11b   : > { %v9949_v10 = vpop.f32.mrb[13].mxu1  ;;  %v9958_v14 = vpop.f32.mrb[14].mxu0 }
 0x11c   : > { %v9960_v15 = vpop.f32.mrb[14].mxu1  ;;  %v9970_v20 = vpop.f32.mrb[15].mxu0 }
 0x11d   : > { %v9972_v21 = vpop.f32.mrb[15].mxu1  ;;  %v10105_v16 = vadd.f32 %v9941_v6, %v9970_v20 }
 0x121   : > { %v8260_v38 = vpop.f32.mrb[16].mxu0 }
 0x122   : > { %v8300_v39 = vpop.f32.mrb[16].mxu1  ;;  %v717_v42 = vadd.f32 %v8260_v38, %v9941_v6  ;;  %v10001_v43 = vpop.f32.mrb[17].mxu0 }
 0x123   : > { %v877_v45 = vadd.f32 %v8300_v39, %v9941_v6  ;;  %v10004_v46 = vpop.f32.mrb[17].mxu1  ;;  %v8261_v51 = vpop.f32.mrb[18].mxu0  ;;  %v10054_v39 = vadd.f32 %v9941_v6, %v9934_v4  ;;  %v10067_v4 = vadd.f32 %v9941_v6, %v9947_v9 }
 0x124   : > { %v8301_v52 = vpop.f32.mrb[18].mxu1  ;;  %v949_v53 = vmax.f32 %v717_v42, 0.0  ;;  %v720_v54 = vadd.f32 %v8261_v51, %v9941_v6  ;;  %v10017_v55 = vpop.f32.mrb[19].mxu0 }
 0x125   : > { %v989_v56 = vmax.f32 %v877_v45, 0.0  ;;  %v880_v57 = vadd.f32 %v8301_v52, %v9941_v6  ;;  %v10020_v58 = vpop.f32.mrb[19].mxu1  ;;  %v979_v45 = vmax.f32 %v10032_v62, 0.0 }
 0x126   : > { %v10034_v12 = vmax.f32 %v931_v27, %v949_v53  ;;  %v950_v17 = vmax.f32 %v720_v54, 0.0 }
 0x127   : > { %v10036_v18 = vmax.f32 %v971_v32, %v989_v56  ;;  %v990_v23 = vmax.f32 %v880_v57, 0.0  ;;  %v939_v32 = vmax.f32 %v10023_v59, 0.0 }
 0x128   : > { %v10047_v27 = vmax.f32 %v932_v31, %v950_v17  ;;  %v10061_v31 = vadd.f32 %v9941_v6, %v9936_v5 }
 0x129   : > { %v10049_v38 = vmax.f32 %v972_v36, %v990_v23  ;;  %v8264_v3 = vpop.f32.mrb[20].mxu0 }
 0x12a   : > { %v8304_v47 = vpop.f32.mrb[20].mxu1  ;;  %v733_v36 = vadd.f32 %v8264_v3, %v9941_v6  ;;  %v724_v50 = vpop.f32.mrb[21].mxu0 }
 0x12b   : > { %v893_v52 = vadd.f32 %v8304_v47, %v9941_v6  ;;  %v884_v53 = vpop.f32.mrb[21].mxu1  ;;  %v725_v56 = vadd.f32 %v9941_v6, %v724_v50  ;;  %v8265_v57 = vpop.f32.mrb[22].mxu0 }
 0x12c   : > { %v885_v17 = vadd.f32 %v9941_v6, %v884_v53  ;;  %v8305_v23 = vpop.f32.mrb[22].mxu1  ;;  %v953_v5 = vmax.f32 %v733_v36, 0.0  ;;  %v736_v44 = vadd.f32 %v8265_v57, %v9941_v6  ;;  %v727_v3 = vpop.f32.mrb[23].mxu0 }
 0x12d   : > { %v993_v51 = vmax.f32 %v893_v52, 0.0  ;;  %v896_v47 = vadd.f32 %v8305_v23, %v9941_v6  ;;  %v887_v42 = vpop.f32.mrb[23].mxu1  ;;  %v951_v63 = vmax.f32 %v725_v56, 0.0  ;;  %v728_v9 = vadd.f32 %v9941_v6, %v727_v3 }
 0x12e   : > { %v991_v29 = vmax.f32 %v885_v17, 0.0  ;;  %v888_v54 = vadd.f32 %v9941_v6, %v887_v42  ;;  %v1007_v25 = vmax.f32 %v935_v40, %v953_v5  ;;  %v954_v50 = vmax.f32 %v736_v44, 0.0 }
 0x12f   : > { %v10076_v37 = vmax.f32 %v975_v49, %v993_v51  ;;  %v994_v53 = vmax.f32 %v896_v47, 0.0  ;;  %v10080_v36 = vmax.f32 %v933_v26, %v951_v63  ;;  %v952_v57 = vmax.f32 %v728_v9, 0.0 }
 0x130   : > { %v10084_v52 = vmax.f32 %v973_v28, %v991_v29  ;;  %v992_v56 = vmax.f32 %v888_v54, 0.0  ;;  %v940_v23 = vmax.f32 %v10054_v39, 0.0  ;;  %v1043_v17 = vmax.f32 %v1007_v25, %v10036_v18 }
 0x131   : > { %v1008_v42 = vmax.f32 %v936_v0, %v954_v50  ;;  %v1030_v40 = vmax.f32 %v976_v1, %v994_v53  ;;  %v980_v44 = vmax.f32 %v10061_v31, 0.0  ;;  %v10091_v49 = vadd.f32 %v9941_v6, %v9949_v10  ;;  %v8268_v13 = vpop.f32.mrb[24].mxu0 }
 0x132   : > { %v10095_v11 = vmax.f32 %v934_v30, %v952_v57  ;;  %v1028_v26 = vmax.f32 %v974_v33, %v992_v56  ;;  %v8308_v28 = vpop.f32.mrb[24].mxu1  ;;  %v943_v29 = vmax.f32 %v10067_v4, 0.0  ;;  %v749_v25 = vadd.f32 %v8268_v13, %v9941_v6  ;;  %v740_v0 = vpop.f32.mrb[25].mxu0 }
 0x133   : > { %v1044_v18 = vmax.f32 %v1008_v42, %v10049_v38  ;;  %v909_v63 = vadd.f32 %v8308_v28, %v9941_v6  ;;  %v900_v10 = vpop.f32.mrb[25].mxu1  ;;  %v10109_v30 = vadd.f32 %v9941_v6, %v9972_v21  ;;  %v741_v19 = vadd.f32 %v9941_v6, %v740_v0  ;;  %v8269_v33 = vpop.f32.mrb[26].mxu0 }
 0x134   : > { %v901_v1 = vadd.f32 %v9941_v6, %v900_v10  ;;  %v8309_v38 = vpop.f32.mrb[26].mxu1  ;;  %v957_v39 = vmax.f32 %v749_v25, 0.0  ;;  %v752_v51 = vadd.f32 %v8269_v33, %v9941_v6  ;;  %v743_v31 = vpop.f32.mrb[27].mxu0  ;;  %v11745_v13 = vmax.f32 %v9979_v24, 0.0 }
 0x135   : > { %v997_v4 = vmax.f32 %v909_v63, 0.0  ;;  %v912_v54 = vadd.f32 %v8309_v38, %v9941_v6  ;;  %v903_v5 = vpop.f32.mrb[27].mxu1  ;;  %v955_v20 = vmax.f32 %v741_v19, 0.0  ;;  %v744_v3 = vadd.f32 %v9941_v6, %v743_v31 }
 0x136   : > { %v995_v47 = vmax.f32 %v901_v1, 0.0  ;;  %v904_v21 = vadd.f32 %v9941_v6, %v903_v5  ;;  %v1011_v9 = vmax.f32 %v939_v32, %v957_v39  ;;  %v958_v50 = vmax.f32 %v752_v51, 0.0 }
 0x137   : > { %v10121_v53 = vmax.f32 %v979_v45, %v997_v4  ;;  %v998_v57 = vmax.f32 %v912_v54, 0.0  ;;  %v1009_v56 = vmax.f32 %v937_v34, %v955_v20  ;;  %v956_v42 = vmax.f32 %v744_v3, 0.0 }
 0x138   : > { %v10127_v28 = vmax.f32 %v11745_v13, %v995_v47  ;;  %v996_v25 = vmax.f32 %v904_v21, 0.0  ;;  %v1047_v0 = vmax.f32 %v1011_v9, %v10076_v37  ;;  %v1012_v63 = vmax.f32 %v940_v23, %v958_v50 }
 0x139   : > { %v1034_v59 = vmax.f32 %v980_v44, %v998_v57  ;;  %v10130_v32 = vpack.c.bf16 %v1044_v18, %v1043_v17  ;;  %v983_v62 = vmax.f32 %v10091_v49, 0.0  ;;  %v1045_v45 = vmax.f32 %v1009_v56, %v10084_v52  ;;  %v8272_v34 = vpop.f32.mrb[28].mxu0 }
 0x13a   : > { %v11746_v10 = vmax.f32 %v9993_v35, 0.0  ;;  %v11747_v19 = vmax.f32 %v9998_v41, 0.0  ;;  %v8312_v33 = vpop.f32.mrb[28].mxu1  ;;  %v944_v1 = vmax.f32 %v10105_v16, 0.0  ;;  %v1048_v38 = vmax.f32 %v1012_v63, %v1030_v40  ;;  %v756_v23 = vpop.f32.mrb[29].mxu0 }
 0x13b   : > { %v765_v37 = vadd.f32 %v8272_v34, %v9941_v6  ;;  %v925_v17 = vadd.f32 %v8312_v33, %v9941_v6  ;;  %v916_v44 = vpop.f32.mrb[29].mxu1  ;;  %v984_v49 = vmax.f32 %v10109_v30, 0.0  ;;  %v757_v35 = vadd.f32 %v9941_v6, %v756_v23  ;;  %v8273_v18 = vpop.f32.mrb[30].mxu0 }
 0x13c   : > { %v1010_v22 = vmax.f32 %v11746_v10, %v956_v42  ;;  %v1032_v24 = vmax.f32 %v11747_v19, %v996_v25  ;;  %v917_v39 = vadd.f32 %v9941_v6, %v916_v44  ;;  %v8313_v41 = vpop.f32.mrb[30].mxu1  ;;  %v10144_v51 = vpack.c.bf16 %v1048_v38, %v1047_v0  ;;  %v759_v16 = vpop.f32.mrb[31].mxu0 }
 0x13d   : > { %v961_v31 = vmax.f32 %v765_v37, 0.0  ;;  %v768_v40 = vadd.f32 %v8273_v18, %v9941_v6  ;;  %v1001_v4 = vmax.f32 %v925_v17, 0.0  ;;  %v919_v54 = vpop.f32.mrb[31].mxu1  ;;  %v959_v20 = vmax.f32 %v757_v35, 0.0 }
 0x13e   : > { %v1046_v52 = vmax.f32 %v1010_v22, %v1028_v26  ;;  %v760_v30 = vadd.f32 %v9941_v6, %v759_v16  ;;  %v999_v26 = vmax.f32 %v917_v39, 0.0  ;;  %v928_v9 = vadd.f32 %v8313_v41, %v9941_v6 }
 0x13f   : > { %v1015_v3 = vmax.f32 %v943_v29, %v961_v31  ;;  %v962_v47 = vmax.f32 %v768_v40, 0.0  ;;  %v1037_v21 = vmax.f32 %v983_v62, %v1001_v4  ;;  %v11748_v50 = vmax.f32 %v10010_v48, 0.0 }
 0x140   : > { %v10147_v5 = vpack.c.bf16 %v1046_v52, %v1045_v45  ;;  %v960_v56 = vmax.f32 %v760_v30, 0.0  ;;  %v11749_v42 = vmax.f32 %v10029_v61, 0.0  ;;  %v920_v25 = vadd.f32 %v9941_v6, %v919_v54 }
 0x141   : > { %v1013_v57 = vmax.f32 %v11748_v50, %v959_v20  ;;  %v709_v0 = vadd.f32 %v9941_v6, %v10001_v43  ;;  %v1051_v63 = vmax.f32 %v1015_v3, %v10121_v53  ;;  %v1016_v45 = vmax.f32 %v944_v1, %v962_v47  ;;  %v8276_v34 = vpop.f32.mrb[32].mxu0 }
 0x142   : > { %v1035_v13 = vmax.f32 %v11749_v42, %v999_v26  ;;  %v1002_v29 = vmax.f32 %v928_v9, 0.0  ;;  %v701_v62 = vadd.f32 %v9943_v7, %v9941_v6  ;;  %v11750_v48 = vmax.f32 %v10026_v60, 0.0  ;;  %v772_v53 = vpop.f32.mrb[33].mxu0 }
 0x143   : > { %v1049_v10 = vmax.f32 %v1013_v57, %v10127_v28  ;;  %v1000_v61 = vmax.f32 %v920_v25, 0.0  ;;  %v712_v19 = vadd.f32 %v9941_v6, %v10017_v55  ;;  %v1052_v33 = vmax.f32 %v1016_v45, %v1034_v59  ;;  %v8277_v23 = vpop.f32.mrb[34].mxu0 }
 0x144   : > { %v1014_v22 = vmax.f32 %v11750_v48, %v960_v56  ;;  %v1038_v38 = vmax.f32 %v984_v49, %v1002_v29  ;;  %v781_v43 = vadd.f32 %v8276_v34, %v9941_v6  ;;  %v704_v1 = vadd.f32 %v9958_v14, %v9941_v6  ;;  %v775_v59 = vpop.f32.mrb[35].mxu0 }
 0x145   : > { %v11751_v7 = vmax.f32 %v10043_v2, 0.0  ;;  %v773_v60 = vadd.f32 %v9941_v6, %v772_v53  ;;  %v947_v17 = vmax.f32 %v709_v0, 0.0  ;;  %v10172_v44 = vpack.c.bf16 %v1052_v33, %v1051_v63 }
 0x146   : > { %v1050_v37 = vmax.f32 %v1014_v22, %v1032_v24  ;;  %v965_v52 = vmax.f32 %v781_v43, 0.0  ;;  %v784_v55 = vadd.f32 %v8277_v23, %v9941_v6  ;;  %v945_v49 = vmax.f32 %v701_v62, 0.0  ;;  %v9224_v23 = vld [vmem:[%s11737_s3 + $0x54] ss:$8 sps:$4 sm:$0xff]  }
 0x147   : > { %v1036_v28 = vmax.f32 %v11751_v7, %v1000_v61  ;;  %v963_v18 = vmax.f32 %v773_v60, 0.0  ;;  %v776_v39 = vadd.f32 %v9941_v6, %v775_v59  ;;  %v948_v14 = vmax.f32 %v712_v19, 0.0  ;;  %v9223_v60 = vld [vmem:[%s11737_s3 + $0x40] ss:$8 sps:$4 sm:$0xff]  }
 0x148   : > { %v1062_v35 = vpack.c.bf16 %v1050_v37, %v1049_v10  ;;  %v869_v2 = vadd.f32 %v9941_v6, %v10004_v46  ;;  %v1019_v24 = vmax.f32 %v947_v17, %v965_v52  ;;  %v966_v41 = vmax.f32 %v784_v55, 0.0  ;;  %v9226_v17 = vld [vmem:[%s11737_s3 + $0x50] ss:$8 sps:$4 sm:$0xff]   ;;  %v9229_v52 = vld [vmem:[%s11737_s3 + $0x60] ss:$8 sps:$4 sm:$0xff]  }
 0x149   : > { %v946_v31 = vmax.f32 %v704_v1, 0.0  ;;  %v1017_v40 = vmax.f32 %v945_v49, %v963_v18  ;;  %v964_v16 = vmax.f32 %v776_v39, 0.0  ;;  %v872_v4 = vadd.f32 %v9941_v6, %v10020_v58  ;;  %v8280_v47 = vpop.f32.mrb[36].mxu0  ;;  %v9230_v55 = vld [vmem:[%s11737_s3 + $0x74] ss:$8 sps:$4 sm:$0xff]   ;;  %v9278_v59 = vld [vmem:[%s11738_s4 + $0x40] sm:$0xff]  }
 0x14a   : > { %v1055_v54 = vmax.f32 %v1019_v24, %v1037_v21  ;;  %v1020_v20 = vmax.f32 %v948_v14, %v966_v41  ;;  %v861_v30 = vadd.f32 %v9945_v8, %v9941_v6  ;;  %v987_v9 = vmax.f32 %v869_v2, 0.0  ;;  %v788_v57 = vpop.f32.mrb[37].mxu0  ;;  %8314 = vmatprep.subr.bf16.mxu0 %v9278_v59  ;;  %v9232_v49 = vld [vmem:[%s11737_s3 + $0x70] ss:$8 sps:$4 sm:$0xff]   ;;  %v9284_v18 = vld [vmem:[%s11738_s4 + $0x48] sm:$0xff]  }
 0x14b   : > { %v1053_v26 = vmax.f32 %v1017_v40, %v1035_v13  ;;  %v1018_v3 = vmax.f32 %v946_v31, %v964_v16  ;;  %v797_v46 = vadd.f32 %v8280_v47, %v9941_v6  ;;  %v864_v56 = vadd.f32 %v9960_v15, %v9941_v6  ;;  %v8281_v58 = vpop.f32.mrb[38].mxu0  ;;  %8315 = vmatpush3.bf16.msra.mxu0 %v9278_v59  ;;  %v9235_v39 = vld [vmem:[%s11737_s3 + $0x80] ss:$8 sps:$4 sm:$0xff]   ;;  %v9236_v14 = vld [vmem:[%s11737_s3 + $0x94] ss:$8 sps:$4 sm:$0xff]  }
 0x14c   : > { %v1056_v50 = vmax.f32 %v1020_v20, %v1038_v38  ;;  %v789_v25 = vadd.f32 %v9941_v6, %v788_v57  ;;  %v988_v21 = vmax.f32 %v872_v4, 0.0  ;;  %v800_v8 = vadd.f32 %v8281_v58, %v9941_v6  ;;  %v791_v13 = vpop.f32.mrb[39].mxu0  ;;  %8316 = vmatprep.subr.bf16.mxu0 %v9284_v18  ;;  %v9238_v2 = vld [vmem:[%s11737_s3 + $0x90] ss:$8 sps:$4 sm:$0xff]   ;;  %v9239_v24 = vld [vmem:[%s11737_s3 + $0xa4] ss:$8 sps:$4 sm:$0xff]  }
 0x14d   : > { %v1054_v42 = vmax.f32 %v1018_v3, %v1036_v28  ;;  %v969_v63 = vmax.f32 %v797_v46, 0.0  ;;  %v985_v45 = vmax.f32 %v861_v30, 0.0  ;;  %v792_v10 = vadd.f32 %v9941_v6, %v791_v13  ;;  %v9209_v6 = vld [vmem:[%s11737_s3] ss:$8 sps:$4 sm:$0xff]   ;;  %v9289_v41 = vld [vmem:[%s11738_s4 + $0x50] sm:$0xff]  }
 0x14e   : > { %v1065_v0 = vpack.c.bf16 %v1056_v50, %v1055_v54  ;;  %v967_v62 = vmax.f32 %v789_v25, 0.0  ;;  %v970_v22 = vmax.f32 %v800_v8, 0.0  ;;  %v986_v34 = vmax.f32 %v864_v56, 0.0  ;;  %v9241_v31 = vld [vmem:[%s11737_s3 + $0xa0] ss:$8 sps:$4 sm:$0xff]   ;;  %v9293_v54 = vld [vmem:[%s11738_s4 + $0x58] sm:$0xff]  }
 0x14f   : > { %v1064_v29 = vpack.c.bf16 %v1054_v42, %v1053_v26  ;;  %v1023_v48 = vmax.f32 %v969_v63, %v987_v9  ;;  %v968_v15 = vmax.f32 %v792_v10, 0.0  ;;  %v11752_v28 = vmov 0   ;;  %8317 = vmatpush3.bf16.msra.mxu0 %v9284_v18  ;;  %v9242_v40 = vld [vmem:[%s11737_s3 + $0xb4] ss:$8 sps:$4 sm:$0xff]   ;;  %v9244_v16 = vld [vmem:[%s11737_s3 + $0xb0] ss:$8 sps:$4 sm:$0xff]  }
 0x150   : > { %v1021_v61 = vmax.f32 %v967_v62, %v985_v45  ;;  %v1024_v33 = vmax.f32 %v970_v22, %v988_v21  ;;  %8318 = vmatprep.subr.bf16.mxu0 %v9289_v41  ;;  %v9245_v4 = vld [vmem:[%s11737_s3 + $0xc4] ss:$8 sps:$4 sm:$0xff]   ;;  %v9247_v20 = vld [vmem:[%s11737_s3 + $0xc0] ss:$8 sps:$4 sm:$0xff]   ;;  %v9248_v30 = vld [vmem:[%s11737_s3 + $0xd4] ss:$8 sps:$4 sm:$0xff]  }
 0x151   : > { %v1041_v19 = vmax.f32 %v10080_v36, %v1023_v48  ;;  %v1022_v43 = vmax.f32 %v968_v15, %v986_v34  ;;  %v9215_v36 = vld [vmem:[%s11737_s3 + $0x24] ss:$8 sps:$4 sm:$0xff]   ;;  %v9250_v3 = vld [vmem:[%s11737_s3 + $0xd0] ss:$8 sps:$4 sm:$0xff]   ;;  %v9253_v50 = vld [vmem:[%s11737_s3 + $0xe0] ss:$8 sps:$4 sm:$0xff]  }
 0x152   : > { %v1039_v38 = vmax.f32 %v10034_v12, %v1021_v61  ;;  %v1042_v53 = vmax.f32 %v10095_v11, %v1024_v33  ;;  %v9212_v12 = vld [vmem:[%s11737_s3 + $0x14] ss:$8 sps:$4 sm:$0xff]   ;;  %v9217_v11 = vld [vmem:[%s11737_s3 + $0x20] ss:$8 sps:$4 sm:$0xff]   ;;  %v9251_v47 = vld [vmem:[%s11737_s3 + $0xe4] ss:$8 sps:$4 sm:$0xff]  }
 0x153   : > { %v1040_v1 = vmax.f32 %v10047_v27, %v1022_v43  ;;  %v9214_v27 = vld [vmem:[%s11737_s3 + $0x10] ss:$8 sps:$4 sm:$0xff]   ;;  %8319 = vmatpush3.bf16.msra.mxu0 %v9289_v41  ;;  %v9297_v26 = vld [vmem:[%s11738_s4 + $0x60] sm:$0xff]   ;;  %v9298_v9 = vld [vmem:[%s11738_s4 + $0x68] sm:$0xff]  }
 0x154   : > { %v1058_v37 = vpack.c.bf16 %v1042_v53, %v1041_v19  ;;  %8320 = vmatprep.subr.bf16.mxu0 %v9293_v54  ;;  %v9254_v46 = vld [vmem:[%s11737_s3 + $0xf4] ss:$8 sps:$4 sm:$0xff]   ;;  %v9256_v56 = vld [vmem:[%s11737_s3 + $0xf0] ss:$8 sps:$4 sm:$0xff]   ;;  %v9257_v42 = vld [vmem:[%s11737_s3 + $0x104] ss:$8 sps:$4 sm:$0xff]  }
 0x155   : > { %v1057_v7 = vpack.c.bf16 %v1040_v1, %v1039_v38  ;;  %v9302_v57 = vld [vmem:[%s11738_s4 + $0x70] sm:$0xff]   ;;  %v9303_v25 = vld [vmem:[%s11738_s4 + $0x78] sm:$0xff]   ;;  %v9259_v58 = vld [vmem:[%s11737_s3 + $0x100] ss:$8 sps:$4 sm:$0xff]  }
 0x156   : > { %v9260_v21 = vld [vmem:[%s11737_s3 + $0x114] ss:$8 sps:$4 sm:$0xff]   ;;  %v9262_v63 = vld [vmem:[%s11737_s3 + $0x110] ss:$8 sps:$4 sm:$0xff]   ;;  %v9263_v8 = vld [vmem:[%s11737_s3 + $0x124] ss:$8 sps:$4 sm:$0xff]  }
 0x157   : > { %2468 = vmatpush1.bf16.msra.mxu1 %v1057_v7  ;;  %8321 = vmatpush3.bf16.msra.mxu0 %v9293_v54  ;;  %v9265_v13 = vld [vmem:[%s11737_s3 + $0x120] ss:$8 sps:$4 sm:$0xff]   ;;  %v9266_v45 = vld [vmem:[%s11737_s3 + $0x134] ss:$8 sps:$4 sm:$0xff]   ;;  %v9269_v62 = vld [vmem:[%s11737_s3 + $0x144] ss:$8 sps:$4 sm:$0xff]  }
 0x158   : > { %2469 = vmatprep.subr.bf16.mxu1 %v11752_v28  ;;  %8322 = vmatprep.subr.bf16.mxu0 %v9297_v26  ;;  %v9271_v10 = vld [vmem:[%s11737_s3 + $0x140] ss:$8 sps:$4 sm:$0xff]   ;;  %v9272_v48 = vld [vmem:[%s11737_s3 + $0x154] ss:$8 sps:$4 sm:$0xff]   ;;  %v9274_v22 = vld [vmem:[%s11737_s3 + $0x150] ss:$8 sps:$4 sm:$0xff]  }
 0x159   : > { %v9275_v34 = vld [vmem:[%s11737_s3 + $0x164] ss:$8 sps:$4 sm:$0xff]   ;;  %v9277_v61 = vld [vmem:[%s11737_s3 + $0x160] ss:$8 sps:$4 sm:$0xff]   ;;  %v9279_v15 = vld [vmem:[%s11737_s3 + $0x174] ss:$8 sps:$4 sm:$0xff]  }
 0x15a   : > { %v9281_v19 = vld [vmem:[%s11737_s3 + $0x170] ss:$8 sps:$4 sm:$0xff]   ;;  %v9282_v33 = vld [vmem:[%s11737_s3 + $0x184] ss:$8 sps:$4 sm:$0xff]   ;;  %v9285_v38 = vld [vmem:[%s11737_s3 + $0x180] ss:$8 sps:$4 sm:$0xff]  }
 0x15b   : > { %2470 = vmatpush1.bf16.msra.mxu1 %v1058_v37  ;;  %8323 = vmatpush3.bf16.msra.mxu0 %v9297_v26  ;;  %v9286_v43 = vld [vmem:[%s11737_s3 + $0x194] ss:$8 sps:$4 sm:$0xff]   ;;  %v9288_v53 = vld [vmem:[%s11737_s3 + $0x190] ss:$8 sps:$4 sm:$0xff]   ;;  %v9290_v1 = vld [vmem:[%s11737_s3 + $0x1a4] ss:$8 sps:$4 sm:$0xff]  }
 0x15c   : > { %2471 = vmatprep.subr.bf16.mxu1 %v11752_v28  ;;  %8324 = vmatprep.subr.bf16.mxu0 %v9298_v9  ;;  %v9292_v37 = vld [vmem:[%s11737_s3 + $0x1a0] ss:$8 sps:$4 sm:$0xff]   ;;  %v9294_v7 = vld [vmem:[%s11737_s3 + $0x1b4] ss:$8 sps:$4 sm:$0xff]   ;;  %v9309_v18 = vld [vmem:[%s11737_s3 + $0x1e4] ss:$8 sps:$4 sm:$0xff]  }
 0x15d   : > { %v9311_v41 = vld [vmem:[%s11737_s3 + $0x1e0] ss:$8 sps:$4 sm:$0xff]  }
 0x15f   : > { %2472 = vmatpush1.bf16.msra.mxu1 %v10130_v32  ;;  %v9218_v32 = vld [vmem:[%s11737_s3 + $0x34] ss:$8 sps:$4 sm:$0xff]   ;;  %8325 = vmatpush3.bf16.msra.mxu0 %v9298_v9 }
 0x160   : > { %2473 = vmatprep.subr.bf16.mxu1 %v11752_v28  ;;  %8326 = vmatprep.subr.bf16.mxu0 %v9302_v57 }
 0x163   : > { %2474 = vmatpush1.bf16.msra.mxu1 %v10147_v5  ;;  %v9221_v5 = vld [vmem:[%s11737_s3 + $0x44] ss:$8 sps:$4 sm:$0xff]   ;;  %8327 = vmatpush3.bf16.msra.mxu0 %v9302_v57  ;;  %v9321_v57 = vld [vmem:[%s11737_s3 + $0x200] ss:$8 sps:$4 sm:$0xff]  }
 0x164   : > { %2475 = vmatprep.subr.bf16.mxu1 %v11752_v28  ;;  %8328 = vmatprep.subr.bf16.mxu0 %v9303_v25 }
 0x167   : > { %2476 = vmatpush1.bf16.msra.mxu1 %v10144_v51  ;;  %v9220_v51 = vld [vmem:[%s11737_s3 + $0x30] ss:$8 sps:$4 sm:$0xff]   ;;  %8329 = vmatpush3.bf16.msra.mxu0 %v9303_v25 }
 0x168   : > { %2477 = vmatprep.subr.bf16.mxu1 %v11752_v28 }
 0x16b   : > { %2478 = vmatpush1.bf16.msra.mxu1 %v1062_v35  ;;  %v9233_v35 = vld [vmem:[%s11737_s3 + $0x84] ss:$8 sps:$4 sm:$0xff]  }
 0x16c   : > { %2479 = vmatprep.subr.bf16.mxu1 %v11752_v28 }
 0x16f   : > { %2480 = vmatpush1.bf16.msra.mxu1 %v10172_v44  ;;  %v9227_v44 = vld [vmem:[%s11737_s3 + $0x64] ss:$8 sps:$4 sm:$0xff]  }
 0x170   : > { %2481 = vmatprep.subr.bf16.mxu1 %v11752_v28 }
 0x173   : > { %2482 = vmatpush1.bf16.msra.mxu1 %v1064_v29  ;;  %v9268_v29 = vld [vmem:[%s11737_s3 + $0x130] ss:$8 sps:$4 sm:$0xff]  }
 0x174   : > { %2483 = vmatprep.subr.bf16.mxu1 %v11752_v28 }
 0x177   : > { %2484 = vmatpush1.bf16.msra.mxu1 %v1065_v0  ;;  %v10349_v0 = vld [vmem:[%s11738_s4] sm:$0xff]  }
 0x178   : > { %8338 = vmatprep.subr.bf16.mxu0 %v10349_v0 }
 0x17a   : > { %2500 = vmatmul.mubr.bf16.vlgmr.msra.gmra.mrb[32].mxu1 %v9209_v6 }
 0x17b   : > { %7192 = vmatprep.mubr.msk.bf16.mxu1 %vm2166_vm0, %v9212_v12  ;;  %v9296_v12 = vld [vmem:[%s11737_s3 + $0x1b0] ss:$8 sps:$4 sm:$0xff]  }
 0x182   : > { %2508 = vmatmul.mubr.bf16.gmra.mrb[36].mxu1 %v9214_v27 }
 0x183   : > { %7193 = vmatprep.mubr.msk.bf16.mxu1 %vm2166_vm0, %v9215_v36  ;;  %v9299_v36 = vld [vmem:[%s11737_s3 + $0x1c4] ss:$8 sps:$4 sm:$0xff]  }
 0x18a   : > { %2516 = vmatmul.mubr.bf16.gmra.mrb[40].mxu1 %v9217_v11 }
 0x18b   : > { %7194 = vmatprep.mubr.msk.bf16.mxu1 %vm2166_vm0, %v9218_v32 }
 0x192   : > { %2524 = vmatmul.mubr.bf16.gmra.mrb[44].mxu1 %v9220_v51 }
 0x193   : > { %7195 = vmatprep.mubr.msk.bf16.mxu1 %vm2166_vm0, %v9221_v5 }
 0x19a   : > { %2532 = vmatmul.mubr.bf16.gmra.mrb[48].mxu1 %v9223_v60  ;;  %v9301_v60 = vld [vmem:[%s11737_s3 + $0x1c0] ss:$8 sps:$4 sm:$0xff]  }
 0x19b   : > { %7196 = vmatprep.mubr.msk.bf16.mxu1 %vm2166_vm0, %v9224_v23 }
 0x1a2   : > { %2540 = vmatmul.mubr.bf16.gmra.mrb[52].mxu1 %v9226_v17  ;;  %v9304_v17 = vld [vmem:[%s11737_s3 + $0x1d4] ss:$8 sps:$4 sm:$0xff]  }
 0x1a3   : > { %7197 = vmatprep.mubr.msk.bf16.mxu1 %vm2166_vm0, %v9227_v44 }
 0x1aa   : > { %2548 = vmatmul.mubr.bf16.gmra.mrb[56].mxu1 %v9229_v52 }
 0x1ab   : > { %7198 = vmatprep.mubr.msk.bf16.mxu1 %vm2166_vm0, %v9230_v55 }
 0x1b2   : > { %2556 = vmatmul.mubr.bf16.gmra.mrb[60].mxu1 %v9232_v49  ;;  %v9306_v49 = vld [vmem:[%s11737_s3 + $0x1d0] ss:$8 sps:$4 sm:$0xff]  }
 0x1b3   : > { %7199 = vmatprep.mubr.msk.bf16.mxu1 %vm2166_vm0, %v9233_v35 }
 0x1ba   : > { %2564 = vmatmul.mubr.bf16.gmra.mrb[64].mxu1 %v9235_v39 }
 0x1bb   : > { %7200 = vmatprep.mubr.msk.bf16.mxu1 %vm2166_vm0, %v9236_v14 }
 0x1c2   : > { %2572 = vmatmul.mubr.bf16.gmra.mrb[68].mxu1 %v9238_v2 }
 0x1c3   : > { %7201 = vmatprep.mubr.msk.bf16.mxu1 %vm2166_vm0, %v9239_v24 }
 0x1ca   : > { %2580 = vmatmul.mubr.bf16.gmra.mrb[72].mxu1 %v9241_v31 }
 0x1cb   : > { %7202 = vmatprep.mubr.msk.bf16.mxu1 %vm2166_vm0, %v9242_v40  ;;  %v9314_v40 = vld [vmem:[%s11737_s3 + $0x1f4] ss:$8 sps:$4 sm:$0xff]  }
 0x1d2   : > { %2588 = vmatmul.mubr.bf16.gmra.mrb[76].mxu1 %v9244_v16 }
 0x1d3   : > { %7203 = vmatprep.mubr.msk.bf16.mxu1 %vm2166_vm0, %v9245_v4 }
 0x1da   : > { %2596 = vmatmul.mubr.bf16.gmra.mrb[80].mxu1 %v9247_v20 }
 0x1db   : > { %7204 = vmatprep.mubr.msk.bf16.mxu1 %vm2166_vm0, %v9248_v30  ;;  %v9316_v30 = vld [vmem:[%s11737_s3 + $0x1f0] ss:$8 sps:$4 sm:$0xff]  }
 0x1e2   : > { %2604 = vmatmul.mubr.bf16.gmra.mrb[84].mxu1 %v9250_v3  ;;  %v9319_v3 = vld [vmem:[%s11737_s3 + $0x204] ss:$8 sps:$4 sm:$0xff]  }
 0x1e3   : > { %7205 = vmatprep.mubr.msk.bf16.mxu1 %vm2166_vm0, %v9251_v47 }
 0x1ea   : > { %2612 = vmatmul.mubr.bf16.gmra.mrb[88].mxu1 %v9253_v50 }
 0x1eb   : > { %7206 = vmatprep.mubr.msk.bf16.mxu1 %vm2166_vm0, %v9254_v46 }
 0x1f2   : > { %2620 = vmatmul.mubr.bf16.gmra.mrb[92].mxu1 %v9256_v56 }
 0x1f3   : > { %7207 = vmatprep.mubr.msk.bf16.mxu1 %vm2166_vm0, %v9257_v42  ;;  %v9324_v42 = vld [vmem:[%s11737_s3 + $0x214] ss:$8 sps:$4 sm:$0xff]  }
 0x1fa   : > { %2628 = vmatmul.mubr.bf16.gmra.mrb[96].mxu1 %v9259_v58  ;;  %v9308_v58 = vld [vmem:[%s11738_s4 + $0x8] sm:$0xff]  }
 0x1fb   : > { %7208 = vmatprep.mubr.msk.bf16.mxu1 %vm2166_vm0, %v9260_v21 }
 0x202   : > { %2636 = vmatmul.mubr.bf16.gmra.mrb[100].mxu1 %v9262_v63  ;;  %v9312_v63 = vld [vmem:[%s11738_s4 + $0x10] sm:$0xff]  }
 0x203   : > { %7209 = vmatprep.mubr.msk.bf16.mxu1 %vm2166_vm0, %v9263_v8 }
 0x20a   : > { %2644 = vmatmul.mubr.bf16.gmra.mrb[104].mxu1 %v9265_v13 }
 0x20b   : > { %7210 = vmatprep.mubr.msk.bf16.mxu1 %vm2166_vm0, %v9266_v45  ;;  %v9326_v45 = vld [vmem:[%s11737_s3 + $0x210] ss:$8 sps:$4 sm:$0xff]  }
 0x212   : > { %2652 = vmatmul.mubr.bf16.gmra.mrb[108].mxu1 %v9268_v29 }
 0x213   : > { %7211 = vmatprep.mubr.msk.bf16.mxu1 %vm2166_vm0, %v9269_v62  ;;  %v9329_v62 = vld [vmem:[%s11737_s3 + $0x224] ss:$8 sps:$4 sm:$0xff]  }
 0x21a   : > { %2660 = vmatmul.mubr.bf16.gmra.mrb[112].mxu1 %v9271_v10 }
 0x21b   : > { %7212 = vmatprep.mubr.msk.bf16.mxu1 %vm2166_vm0, %v9272_v48  ;;  %v9313_v48 = vld [vmem:[%s11738_s4 + $0x18] sm:$0xff]  }
 0x222   : > { %2668 = vmatmul.mubr.bf16.gmra.mrb[116].mxu1 %v9274_v22  ;;  %v9317_v22 = vld [vmem:[%s11738_s4 + $0x20] sm:$0xff]  }
 0x223   : > { %7213 = vmatprep.mubr.msk.bf16.mxu1 %vm2166_vm0, %v9275_v34 }
 0x22a   : > { %2676 = vmatmul.mubr.bf16.gmra.mrb[120].mxu1 %v9277_v61 }
 0x22b   : > { %7214 = vmatprep.mubr.msk.bf16.mxu1 %vm2166_vm0, %v9279_v15  ;;  %v9331_v15 = vld [vmem:[%s11737_s3 + $0x220] ss:$8 sps:$4 sm:$0xff]  }
 0x232   : > { %2684 = vmatmul.mubr.bf16.gmra.mrb[124].mxu1 %v9281_v19 }
 0x233   : > { %7215 = vmatprep.mubr.msk.bf16.mxu1 %vm2166_vm0, %v9282_v33 }
 0x23a   : > { %2692 = vmatmul.mubr.bf16.gmra.mrb[128].mxu1 %v9285_v38  ;;  %v9318_v38 = vld [vmem:[%s11738_s4 + $0x28] sm:$0xff]  }
 0x23b   : > { %7216 = vmatprep.mubr.msk.bf16.mxu1 %vm2166_vm0, %v9286_v43  ;;  %v9334_v43 = vld [vmem:[%s11737_s3 + $0x234] ss:$8 sps:$4 sm:$0xff]  }
 0x242   : > { %2700 = vmatmul.mubr.bf16.gmra.mrb[132].mxu1 %v9288_v53 }
 0x243   : > { %7217 = vmatprep.mubr.msk.bf16.mxu1 %vm2166_vm0, %v9290_v1  ;;  %v9322_v1 = vld [vmem:[%s11738_s4 + $0x30] sm:$0xff]  }
 0x24a   : > { %2708 = vmatmul.mubr.bf16.gmra.mrb[136].mxu1 %v9292_v37 }
 0x24b   : > { %7218 = vmatprep.mubr.msk.bf16.mxu1 %vm2166_vm0, %v9294_v7  ;;  %v9336_v7 = vld [vmem:[%s11737_s3 + $0x230] ss:$8 sps:$4 sm:$0xff]  }
 0x24d   : > { %v10423_v28 = vpop.f32.mrb[32].mxu1 }
 0x24e   : > { %v2503_v6 = vpop.f32.mrb[33].mxu1 }
 0x24f   : > { %v10428_v27 = vpop.f32.mrb[34].mxu1 }
 0x250   : > { %v3300_v11 = vpack.c.bf16 %v10428_v27, %v10423_v28  ;;  %v2506_v32 = vpop.f32.mrb[35].mxu1  ;;  %v9323_v27 = vld [vmem:[%s11738_s4 + $0x38] sm:$0xff]  }
 0x251   : > { %v9327_v32 = vld [vmem:[%s11738_s4 + $0x80] sm:$0xff]  }
 0x252   : > { %2716 = vmatmul.mubr.bf16.gmra.mrb[140].mxu1 %v9296_v12  ;;  %v9339_v12 = vld [vmem:[%s11737_s3 + $0x244] ss:$8 sps:$4 sm:$0xff]  }
 0x253   : > { %7219 = vmatprep.mubr.msk.bf16.mxu1 %vm2166_vm0, %v9299_v36 }
 0x255   : > { %v10436_v51 = vpop.f32.mrb[36].mxu1 }
 0x256   : > { %v2511_v5 = vpop.f32.mrb[37].mxu1 }
 0x257   : > { %v10441_v23 = vpop.f32.mrb[38].mxu1 }
 0x258   : > { %v3301_v44 = vpack.c.bf16 %v10441_v23, %v10436_v51  ;;  %v2514_v52 = vpop.f32.mrb[39].mxu1 }
 0x25a   : > { %2724 = vmatmul.mubr.bf16.gmra.mrb[144].mxu1 %v9301_v60  ;;  %v9341_v60 = vld [vmem:[%s11737_s3 + $0x240] ss:$8 sps:$4 sm:$0xff]  }
 0x25b   : > { %7220 = vmatprep.mubr.msk.bf16.mxu1 %vm2166_vm0, %v9304_v17 }
 0x25d   : > { %v10449_v55 = vpop.f32.mrb[40].mxu1 }
 0x25e   : > { %v2519_v59 = vpop.f32.mrb[41].mxu1 }
 0x25f   : > { %v10454_v35 = vpop.f32.mrb[42].mxu1  ;;  %v9328_v59 = vld [vmem:[%s11738_s4 + $0x88] sm:$0xff]  }
 0x260   : > { %v3302_v39 = vpack.c.bf16 %v10454_v35, %v10449_v55  ;;  %v2522_v14 = vpop.f32.mrb[43].mxu1  ;;  %v9349_v55 = vld [vmem:[%s11737_s3 + $0x264] ss:$8 sps:$4 sm:$0xff]  }
 0x262   : > { %2732 = vmatmul.mubr.bf16.gmra.mrb[148].mxu1 %v9306_v49 }
 0x263   : > { %7221 = vmatprep.mubr.msk.bf16.mxu1 %vm2166_vm0, %v9309_v18  ;;  %v9344_v18 = vld [vmem:[%s11737_s3 + $0x254] ss:$8 sps:$4 sm:$0xff]  }
 0x265   : > { %v10462_v2 = vpop.f32.mrb[44].mxu1 }
 0x266   : > { %v2527_v24 = vpop.f32.mrb[45].mxu1 }
 0x267   : > { %v10467_v31 = vpop.f32.mrb[46].mxu1  ;;  %v9332_v24 = vld [vmem:[%s11738_s4 + $0x90] sm:$0xff]  }
 0x268   : > { %v3303_v16 = vpack.c.bf16 %v10467_v31, %v10462_v2  ;;  %v2530_v4 = vpop.f32.mrb[47].mxu1  ;;  %v9354_v2 = vld [vmem:[%s11737_s3 + $0x274] ss:$8 sps:$4 sm:$0xff]  }
 0x269   : > { %v9337_v4 = vld [vmem:[%s11738_s4 + $0xa0] sm:$0xff]  }
 0x26a   : > { %2740 = vmatmul.mubr.bf16.gmra.mrb[152].mxu1 %v9311_v41 }
 0x26b   : > { %7222 = vmatprep.mubr.msk.bf16.mxu1 %vm2166_vm0, %v9314_v40  ;;  %v9346_v40 = vld [vmem:[%s11737_s3 + $0x250] ss:$8 sps:$4 sm:$0xff]  }
 0x26d   : > { %v2533_v54 = vpop.f32.mrb[48].mxu1 }
 0x26e   : > { %v2535_v20 = vpop.f32.mrb[49].mxu1 }
 0x26f   : > { %v2536_v26 = vpop.f32.mrb[50].mxu1  ;;  %v9351_v20 = vld [vmem:[%s11737_s3 + $0x260] ss:$8 sps:$4 sm:$0xff]  }
 0x270   : > { %v3320_v47 = vpack.c.bf16 %v2536_v26, %v2533_v54  ;;  %v2538_v9 = vpop.f32.mrb[51].mxu1 }
 0x272   : > { %8330 = vmatprep.mubr.bf16.mxu0 %v3320_v47  ;;  %2748 = vmatmul.mubr.bf16.gmra.mrb[156].mxu1 %v9316_v30  ;;  %v9342_v47 = vld [vmem:[%s11738_s4 + $0xb0] sm:$0xff]  }
 0x273   : > { %7223 = vmatprep.mubr.msk.bf16.mxu1 %vm2166_vm0, %v9319_v3 }
 0x275   : > { %v2541_v50 = vpop.f32.mrb[52].mxu1 }
 0x276   : > { %v2543_v46 = vpop.f32.mrb[53].mxu1 }
 0x277   : > { %v2544_v56 = vpop.f32.mrb[54].mxu1 }
 0x278   : > { %v3321_v25 = vpack.c.bf16 %v2544_v56, %v2541_v50  ;;  %v2546_v21 = vpop.f32.mrb[55].mxu1  ;;  %v9356_v50 = vld [vmem:[%s11737_s3 + $0x270] ss:$8 sps:$4 sm:$0xff]  }
 0x279   : > { %v9347_v21 = vld [vmem:[%s11738_s4 + $0xc0] sm:$0xff]  }
 0x27a   : > { %8331 = vmatmul.mubr.bf16.vlgmr.msra.gmra.mrb[40].mxu0 %v3321_v25  ;;  %2756 = vmatmul.mubr.bf16.gmra.mrb[160].mxu1 %v9321_v57  ;;  %v9359_v57 = vld [vmem:[%s11737_s3 + $0x284] ss:$8 sps:$4 sm:$0xff]  }
 0x27b   : > { %8339 = vmatpush3.bf16.msra.mxu0 %v10349_v0  ;;  %7224 = vmatprep.mubr.msk.bf16.mxu1 %vm2166_vm0, %v9324_v42  ;;  %v9343_v42 = vld [vmem:[%s11738_s4 + $0xb8] sm:$0xff]  }
 0x27c   : > { %8340 = vmatprep.subr.bf16.mxu0 %v9308_v58 }
 0x27d   : > { %v2549_v8 = vpop.f32.mrb[56].mxu1 }
 0x27e   : > { %v2551_v13 = vpop.f32.mrb[57].mxu1 }
 0x27f   : > { %8341 = vmatpush3.bf16.msra.mxu0 %v9308_v58  ;;  %v2552_v29 = vpop.f32.mrb[58].mxu1 }
 0x280   : > { %8342 = vmatprep.subr.bf16.mxu0 %v9312_v63  ;;  %v3322_v0 = vpack.c.bf16 %v2552_v29, %v2549_v8  ;;  %v2554_v10 = vpop.f32.mrb[59].mxu1  ;;  %v9361_v8 = vld [vmem:[%s11737_s3 + $0x280] ss:$8 sps:$4 sm:$0xff]  }
 0x281   : > { %v9348_v29 = vld [vmem:[%s11738_s4 + $0xc8] sm:$0xff]  }
 0x282   : > { %8334 = vmatprep.mubr.bf16.mxu0 %v3322_v0  ;;  %2764 = vmatmul.mubr.bf16.gmra.mrb[164].mxu1 %v9326_v45  ;;  %v9364_v0 = vld [vmem:[%s11737_s3 + $0x294] ss:$8 sps:$4 sm:$0xff]  }
 0x283   : > { %8343 = vmatpush3.bf16.msra.mxu0 %v9312_v63  ;;  %7225 = vmatprep.mubr.msk.bf16.mxu1 %vm2166_vm0, %v9329_v62 }
 0x284   : > { %8344 = vmatprep.subr.bf16.mxu0 %v9313_v48 }
 0x285   : > { %v2557_v34 = vpop.f32.mrb[60].mxu1 }
 0x286   : > { %v2559_v61 = vpop.f32.mrb[61].mxu1 }
 0x287   : > { %8345 = vmatpush3.bf16.msra.mxu0 %v9313_v48  ;;  %v2560_v19 = vpop.f32.mrb[62].mxu1  ;;  %v9352_v48 = vld [vmem:[%s11738_s4 + $0xd0] sm:$0xff]  }
 0x288   : > { %v3323_v33 = vpack.c.bf16 %v2560_v19, %v2557_v34  ;;  %8346 = vmatprep.subr.bf16.mxu0 %v9317_v22  ;;  %v2562_v53 = vpop.f32.mrb[63].mxu1  ;;  %v9366_v34 = vld [vmem:[%s11737_s3 + $0x290] ss:$8 sps:$4 sm:$0xff]  }
 0x289   : > { %v9353_v19 = vld [vmem:[%s11738_s4 + $0xd8] sm:$0xff]   ;;  %v9357_v53 = vld [vmem:[%s11738_s4 + $0xe0] sm:$0xff]  }
 0x28a   : > { %8335 = vmatmul.mubr.bf16.gmra.mrb[44].mxu0 %v3323_v33  ;;  %2772 = vmatmul.mubr.bf16.gmra.mrb[168].mxu1 %v9331_v15  ;;  %v9369_v33 = vld [vmem:[%s11737_s3 + $0x2a4] ss:$8 sps:$4 sm:$0xff]  }
 0x28b   : > { %8347 = vmatpush3.bf16.msra.mxu0 %v9317_v22  ;;  %8354 = vmatprep.mubr.bf16.mxu0 %v3300_v11 }
 0x28c   : > { %8348 = vmatprep.subr.bf16.mxu0 %v9318_v38  ;;  %7226 = vmatprep.mubr.msk.bf16.mxu1 %vm2166_vm0, %v9334_v43 }
 0x28d   : > { %v2565_v37 = vpop.f32.mrb[64].mxu1 }
 0x28e   : > { %v2567_v6 = vpop.f32.mrb[65].mxu1 }
 0x28f   : > { %8349 = vmatpush3.bf16.msra.mxu0 %v9318_v38  ;;  %v2568_v28 = vpop.f32.mrb[66].mxu1  ;;  %v9374_v6 = vld [vmem:[%s11737_s3 + $0x2b4] ss:$8 sps:$4 sm:$0xff]  }
 0x290   : > { %8350 = vmatprep.subr.bf16.mxu0 %v9322_v1  ;;  %v3567_v36 = vpack.c.bf16 %v2568_v28, %v2565_v37  ;;  %v2570_v11 = vpop.f32.mrb[67].mxu1  ;;  %v9371_v37 = vld [vmem:[%s11737_s3 + $0x2a0] ss:$8 sps:$4 sm:$0xff]  }
 0x291   : > { %v9358_v28 = vld [vmem:[%s11738_s4 + $0xe8] sm:$0xff]   ;;  %v9362_v11 = vld [vmem:[%s11738_s4 + $0xf0] sm:$0xff]  }
 0x292   : > { %2780 = vmatmul.mubr.bf16.gmra.mrb[172].mxu1 %v9336_v7 }
 0x293   : > { %8351 = vmatpush3.bf16.msra.mxu0 %v9322_v1  ;;  %7227 = vmatprep.mubr.msk.bf16.mxu1 %vm2166_vm0, %v9339_v12 }
 0x294   : > { %8352 = vmatprep.subr.bf16.mxu0 %v9323_v27 }
 0x295   : > { %v10538_v5 = vpop.f32.mrb[68].mxu1 }
 0x296   : > { %v2575_v17 = vpop.f32.mrb[69].mxu1 }
 0x297   : > { %8353 = vmatpush3.bf16.msra.mxu0 %v9323_v27  ;;  %v10543_v52 = vpop.f32.mrb[70].mxu1  ;;  %v9379_v17 = vld [vmem:[%s11737_s3 + $0x2c4] ss:$8 sps:$4 sm:$0xff]  }
 0x298   : > { %8362 = vmatprep.subr.bf16.mxu0 %v9327_v32  ;;  %v3568_v49 = vpack.c.bf16 %v10543_v52, %v10538_v5  ;;  %v2578_v14 = vpop.f32.mrb[71].mxu1  ;;  %v9376_v5 = vld [vmem:[%s11737_s3 + $0x2b0] ss:$8 sps:$4 sm:$0xff]  }
 0x299   : > { %v9367_v14 = vld [vmem:[%s11738_s4 + $0x100] sm:$0xff]  }
 0x29a   : > { %8355 = vmatmul.mubr.bf16.vlgmr.msra.gmra.mrb[40].mxu0 %v3301_v44  ;;  %2788 = vmatmul.mubr.bf16.gmra.mrb[176].mxu1 %v9341_v60  ;;  %v9333_v44 = vld [vmem:[%s11738_s4 + $0x98] sm:$0xff]  }
 0x29b   : > { %8358 = vmatprep.mubr.bf16.mxu0 %v3302_v39  ;;  %8363 = vmatpush3.bf16.msra.mxu0 %v9327_v32 }
 0x29c   : > { %8364 = vmatprep.subr.bf16.mxu0 %v9328_v59  ;;  %7228 = vmatprep.mubr.msk.bf16.mxu1 %vm2166_vm0, %v9344_v18 }
 0x29d   : > { %v2581_v41 = vpop.f32.mrb[72].mxu1 }
 0x29e   : > { %v2583_v51 = vpop.f32.mrb[73].mxu1 }
 0x29f   : > { %8365 = vmatpush3.bf16.msra.mxu0 %v9328_v59  ;;  %v2584_v23 = vpop.f32.mrb[74].mxu1  ;;  %v9363_v59 = vld [vmem:[%s11738_s4 + $0xf8] sm:$0xff]  }
 0x2a0   : > { %8366 = vmatprep.subr.bf16.mxu0 %v9332_v24  ;;  %v3569_v35 = vpack.c.bf16 %v2584_v23, %v2581_v41  ;;  %v2586_v39 = vpop.f32.mrb[75].mxu1  ;;  %v9381_v41 = vld [vmem:[%s11737_s3 + $0x2c0] ss:$8 sps:$4 sm:$0xff]  }
 0x2a1   : > { %v9368_v23 = vld [vmem:[%s11738_s4 + $0x108] sm:$0xff]   ;;  %v9372_v39 = vld [vmem:[%s11738_s4 + $0x110] sm:$0xff]  }
 0x2a2   : > { %8359 = vmatmul.mubr.bf16.gmra.mrb[44].mxu0 %v3303_v16  ;;  %2796 = vmatmul.mubr.bf16.gmra.mrb[180].mxu1 %v9346_v40  ;;  %v9338_v16 = vld [vmem:[%s11738_s4 + $0xa8] sm:$0xff]  }
 0x2a3   : > { %8367 = vmatpush3.bf16.msra.mxu0 %v9332_v24  ;;  %8378 = vmatprep.mubr.bf16.mxu0 %v3567_v36 }
 0x2a4   : > { %8368 = vmatprep.subr.bf16.mxu0 %v9333_v44  ;;  %7229 = vmatprep.mubr.msk.bf16.mxu1 %vm2166_vm0, %v9349_v55  ;;  %v9384_v55 = vld [vmem:[%s11737_s3 + $0x2d4] ss:$8 sps:$4 sm:$0xff]  }
 0x2a5   : > { %v2589_v54 = vpop.f32.mrb[76].mxu1 }
 0x2a6   : > { %v2591_v30 = vpop.f32.mrb[77].mxu1 }
 0x2a7   : > { %8369 = vmatpush3.bf16.msra.mxu0 %v9333_v44  ;;  %v2592_v31 = vpop.f32.mrb[78].mxu1 }
 0x2a8   : > { %8370 = vmatprep.subr.bf16.mxu0 %v9337_v4  ;;  %v3570_v26 = vpack.c.bf16 %v2592_v31, %v2589_v54  ;;  %v2594_v3 = vpop.f32.mrb[79].mxu1  ;;  %v9386_v54 = vld [vmem:[%s11737_s3 + $0x2d0] ss:$8 sps:$4 sm:$0xff]   ;;  %v9389_v31 = vld [vmem:[%s11737_s3 + $0x2e4] ss:$8 sps:$4 sm:$0xff]  }
 0x2a9   : > { %v9377_v3 = vld [vmem:[%s11738_s4 + $0x120] sm:$0xff]  }
 0x2aa   : > { %2804 = vmatmul.mubr.bf16.gmra.mrb[184].mxu1 %v9351_v20 }
 0x2ab   : > { %8371 = vmatpush3.bf16.msra.mxu0 %v9337_v4  ;;  %7230 = vmatprep.mubr.msk.bf16.mxu1 %vm2166_vm0, %v9354_v2  ;;  %v9373_v2 = vld [vmem:[%s11738_s4 + $0x118] sm:$0xff]  }
 0x2ac   : > { %8372 = vmatprep.subr.bf16.mxu0 %v9338_v16 }
 0x2ad   : > { %v2597_v9 = vpop.f32.mrb[80].mxu1 }
 0x2ae   : > { %v2599_v46 = vpop.f32.mrb[81].mxu1 }
 0x2af   : > { %8373 = vmatpush3.bf16.msra.mxu0 %v9338_v16  ;;  %v2600_v56 = vpop.f32.mrb[82].mxu1  ;;  %v9394_v46 = vld [vmem:[%s11737_s3 + $0x2f4] ss:$8 sps:$4 sm:$0xff]  }
 0x2b0   : > { %8374 = vmatprep.subr.bf16.mxu0 %v9342_v47  ;;  %v3709_v25 = vpack.c.bf16 %v2600_v56, %v2597_v9  ;;  %v2602_v58 = vpop.f32.mrb[83].mxu1  ;;  %v9391_v9 = vld [vmem:[%s11737_s3 + $0x2e0] ss:$8 sps:$4 sm:$0xff]  }
 0x2b1   : > { %v9378_v56 = vld [vmem:[%s11738_s4 + $0x128] sm:$0xff]   ;;  %v9382_v58 = vld [vmem:[%s11738_s4 + $0x130] sm:$0xff]  }
 0x2b2   : > { %2812 = vmatmul.mubr.bf16.gmra.mrb[188].mxu1 %v9356_v50 }
 0x2b3   : > { %8375 = vmatpush3.bf16.msra.mxu0 %v9342_v47  ;;  %7231 = vmatprep.mubr.msk.bf16.mxu1 %vm2166_vm0, %v9359_v57 }
 0x2b4   : > { %8376 = vmatprep.subr.bf16.mxu0 %v9343_v42 }
 0x2b5   : > { %v10605_v63 = vpop.f32.mrb[84].mxu1 }
 0x2b6   : > { %v2607_v13 = vpop.f32.mrb[85].mxu1 }
 0x2b7   : > { %8377 = vmatpush3.bf16.msra.mxu0 %v9343_v42  ;;  %v10610_v45 = vpop.f32.mrb[86].mxu1  ;;  %v9399_v13 = vld [vmem:[%s11737_s3 + $0x304] ss:$8 sps:$4 sm:$0xff]  }
 0x2b8   : > { %8386 = vmatprep.subr.bf16.mxu0 %v9347_v21  ;;  %v3710_v62 = vpack.c.bf16 %v10610_v45, %v10605_v63  ;;  %v2610_v10 = vpop.f32.mrb[87].mxu1  ;;  %v9396_v63 = vld [vmem:[%s11737_s3 + $0x2f0] ss:$8 sps:$4 sm:$0xff]  }
 0x2b9   : > { %v9387_v10 = vld [vmem:[%s11738_s4 + $0x140] sm:$0xff]  }
 0x2ba   : > { %8379 = vmatmul.mubr.bf16.vlgmr.msra.gmra.mrb[40].mxu0 %v3568_v49  ;;  %2820 = vmatmul.mubr.bf16.gmra.mrb[192].mxu1 %v9361_v8 }
 0x2bb   : > { %8387 = vmatpush3.bf16.msra.mxu0 %v9347_v21  ;;  %8382 = vmatprep.mubr.bf16.mxu0 %v3569_v35 }
 0x2bc   : > { %8388 = vmatprep.subr.bf16.mxu0 %v9348_v29  ;;  %7232 = vmatprep.mubr.msk.bf16.mxu1 %vm2166_vm0, %v9364_v0 }
 0x2bd   : > { %v2613_v22 = vpop.f32.mrb[88].mxu1 }
 0x2be   : > { %v2615_v61 = vpop.f32.mrb[89].mxu1 }
 0x2bf   : > { %8389 = vmatpush3.bf16.msra.mxu0 %v9348_v29  ;;  %v2616_v15 = vpop.f32.mrb[90].mxu1  ;;  %v9383_v29 = vld [vmem:[%s11738_s4 + $0x138] sm:$0xff]  }
 0x2c0   : > { %8390 = vmatprep.subr.bf16.mxu0 %v9352_v48  ;;  %v3711_v38 = vpack.c.bf16 %v2616_v15, %v2613_v22  ;;  %v2618_v43 = vpop.f32.mrb[91].mxu1  ;;  %v9401_v22 = vld [vmem:[%s11737_s3 + $0x300] ss:$8 sps:$4 sm:$0xff]  }
 0x2c1   : > { %v9388_v15 = vld [vmem:[%s11738_s4 + $0x148] sm:$0xff]   ;;  %v9392_v43 = vld [vmem:[%s11738_s4 + $0x150] sm:$0xff]  }
 0x2c2   : > { %8383 = vmatmul.mubr.bf16.gmra.mrb[44].mxu0 %v3570_v26  ;;  %2828 = vmatmul.mubr.bf16.gmra.mrb[196].mxu1 %v9366_v34 }
 0x2c3   : > { %8391 = vmatpush3.bf16.msra.mxu0 %v9352_v48  ;;  %8402 = vmatprep.mubr.bf16.mxu0 %v3709_v25 }
 0x2c4   : > { %8392 = vmatprep.subr.bf16.mxu0 %v9353_v19  ;;  %7233 = vmatprep.mubr.msk.bf16.mxu1 %vm2166_vm0, %v9369_v33  ;;  %v9404_v33 = vld [vmem:[%s11737_s3 + $0x314] ss:$8 sps:$4 sm:$0xff]  }
 0x2c5   : > { %v2621_v1 = vpop.f32.mrb[92].mxu1 }
 0x2c6   : > { %v2623_v7 = vpop.f32.mrb[93].mxu1 }
 0x2c7   : > { %8393 = vmatpush3.bf16.msra.mxu0 %v9353_v19  ;;  %v2624_v12 = vpop.f32.mrb[94].mxu1 }
 0x2c8   : > { %8394 = vmatprep.subr.bf16.mxu0 %v9357_v53  ;;  %v3712_v27 = vpack.c.bf16 %v2624_v12, %v2621_v1  ;;  %v2626_v36 = vpop.f32.mrb[95].mxu1  ;;  %v9406_v1 = vld [vmem:[%s11737_s3 + $0x310] ss:$8 sps:$4 sm:$0xff]   ;;  %v9409_v12 = vld [vmem:[%s11737_s3 + $0x324] ss:$8 sps:$4 sm:$0xff]  }
 0x2c9   : > { %v9397_v36 = vld [vmem:[%s11738_s4 + $0x160] sm:$0xff]  }
 0x2ca   : > { %2836 = vmatmul.mubr.bf16.gmra.mrb[200].mxu1 %v9371_v37 }
 0x2cb   : > { %8395 = vmatpush3.bf16.msra.mxu0 %v9357_v53  ;;  %7234 = vmatprep.mubr.msk.bf16.mxu1 %vm2166_vm0, %v9374_v6  ;;  %v9393_v6 = vld [vmem:[%s11738_s4 + $0x158] sm:$0xff]  }
 0x2cc   : > { %8396 = vmatprep.subr.bf16.mxu0 %v9358_v28 }
 0x2cd   : > { %v2629_v32 = vpop.f32.mrb[96].mxu1 }
 0x2ce   : > { %v2631_v60 = vpop.f32.mrb[97].mxu1 }
 0x2cf   : > { %8397 = vmatpush3.bf16.msra.mxu0 %v9358_v28  ;;  %v2632_v52 = vpop.f32.mrb[98].mxu1  ;;  %v9414_v60 = vld [vmem:[%s11737_s3 + $0x334] ss:$8 sps:$4 sm:$0xff]  }
 0x2d0   : > { %8398 = vmatprep.subr.bf16.mxu0 %v9362_v11  ;;  %v3851_v49 = vpack.c.bf16 %v2632_v52, %v2629_v32  ;;  %v2634_v18 = vpop.f32.mrb[99].mxu1  ;;  %v9411_v32 = vld [vmem:[%s11737_s3 + $0x320] ss:$8 sps:$4 sm:$0xff]  }
 0x2d1   : > { %v9398_v52 = vld [vmem:[%s11738_s4 + $0x168] sm:$0xff]   ;;  %v9402_v18 = vld [vmem:[%s11738_s4 + $0x170] sm:$0xff]  }
 0x2d2   : > { %2844 = vmatmul.mubr.bf16.gmra.mrb[204].mxu1 %v9376_v5 }
 0x2d3   : > { %8399 = vmatpush3.bf16.msra.mxu0 %v9362_v11  ;;  %7235 = vmatprep.mubr.msk.bf16.mxu1 %vm2166_vm0, %v9379_v17 }
 0x2d4   : > { %8400 = vmatprep.subr.bf16.mxu0 %v9363_v59 }
 0x2d5   : > { %v10666_v24 = vpop.f32.mrb[100].mxu1 }
 0x2d6   : > { %v2639_v40 = vpop.f32.mrb[101].mxu1 }
 0x2d7   : > { %8401 = vmatpush3.bf16.msra.mxu0 %v9363_v59  ;;  %v10671_v51 = vpop.f32.mrb[102].mxu1  ;;  %v9419_v40 = vld [vmem:[%s11737_s3 + $0x344] ss:$8 sps:$4 sm:$0xff]  }
 0x2d8   : > { %8410 = vmatprep.subr.bf16.mxu0 %v9367_v14  ;;  %v3852_v44 = vpack.c.bf16 %v10671_v51, %v10666_v24  ;;  %v2642_v35 = vpop.f32.mrb[103].mxu1  ;;  %v9416_v24 = vld [vmem:[%s11737_s3 + $0x330] ss:$8 sps:$4 sm:$0xff]  }
 0x2d9   : > { %v9407_v35 = vld [vmem:[%s11738_s4 + $0x180] sm:$0xff]  }
 0x2da   : > { %8403 = vmatmul.mubr.bf16.vlgmr.msra.gmra.mrb[40].mxu0 %v3710_v62  ;;  %2852 = vmatmul.mubr.bf16.gmra.mrb[208].mxu1 %v9381_v41 }
 0x2db   : > { %8411 = vmatpush3.bf16.msra.mxu0 %v9367_v14  ;;  %8406 = vmatprep.mubr.bf16.mxu0 %v3711_v38 }
 0x2dc   : > { %8412 = vmatprep.subr.bf16.mxu0 %v9368_v23  ;;  %7236 = vmatprep.mubr.msk.bf16.mxu1 %vm2166_vm0, %v9384_v55 }
 0x2dd   : > { %v2645_v4 = vpop.f32.mrb[104].mxu1 }
 0x2de   : > { %v2647_v20 = vpop.f32.mrb[105].mxu1 }
 0x2df   : > { %8413 = vmatpush3.bf16.msra.mxu0 %v9368_v23  ;;  %v2648_v30 = vpop.f32.mrb[106].mxu1  ;;  %v9403_v23 = vld [vmem:[%s11738_s4 + $0x178] sm:$0xff]  }
 0x2e0   : > { %8414 = vmatprep.subr.bf16.mxu0 %v9372_v39  ;;  %v3853_v16 = vpack.c.bf16 %v2648_v30, %v2645_v4  ;;  %v2650_v26 = vpop.f32.mrb[107].mxu1  ;;  %v9421_v4 = vld [vmem:[%s11737_s3 + $0x340] ss:$8 sps:$4 sm:$0xff]  }
 0x2e1   : > { %v9408_v30 = vld [vmem:[%s11738_s4 + $0x188] sm:$0xff]   ;;  %v9412_v26 = vld [vmem:[%s11738_s4 + $0x190] sm:$0xff]  }
 0x2e2   : > { %8407 = vmatmul.mubr.bf16.gmra.mrb[44].mxu0 %v3712_v27  ;;  %2860 = vmatmul.mubr.bf16.gmra.mrb[212].mxu1 %v9386_v54 }
 0x2e3   : > { %8415 = vmatpush3.bf16.msra.mxu0 %v9372_v39  ;;  %8426 = vmatprep.mubr.bf16.mxu0 %v3851_v49 }
 0x2e4   : > { %8416 = vmatprep.subr.bf16.mxu0 %v9373_v2  ;;  %7237 = vmatprep.mubr.msk.bf16.mxu1 %vm2166_vm0, %v9389_v31  ;;  %v9424_v31 = vld [vmem:[%s11737_s3 + $0x354] ss:$8 sps:$4 sm:$0xff]  }
 0x2e5   : > { %v2653_v47 = vpop.f32.mrb[108].mxu1 }
 0x2e6   : > { %v2655_v50 = vpop.f32.mrb[109].mxu1 }
 0x2e7   : > { %8417 = vmatpush3.bf16.msra.mxu0 %v9373_v2  ;;  %v2656_v57 = vpop.f32.mrb[110].mxu1 }
 0x2e8   : > { %8418 = vmatprep.subr.bf16.mxu0 %v9377_v3  ;;  %v3854_v42 = vpack.c.bf16 %v2656_v57, %v2653_v47  ;;  %v2658_v25 = vpop.f32.mrb[111].mxu1  ;;  %v9426_v47 = vld [vmem:[%s11737_s3 + $0x350] ss:$8 sps:$4 sm:$0xff]   ;;  %v9429_v57 = vld [vmem:[%s11737_s3 + $0x364] ss:$8 sps:$4 sm:$0xff]  }
 0x2e9   : > { %v9417_v25 = vld [vmem:[%s11738_s4 + $0x1a0] sm:$0xff]  }
 0x2ea   : > { %2868 = vmatmul.mubr.bf16.gmra.mrb[216].mxu1 %v9391_v9 }
 0x2eb   : > { %8419 = vmatpush3.bf16.msra.mxu0 %v9377_v3  ;;  %7238 = vmatprep.mubr.msk.bf16.mxu1 %vm2166_vm0, %v9394_v46  ;;  %v9413_v46 = vld [vmem:[%s11738_s4 + $0x198] sm:$0xff]  }
 0x2ec   : > { %8420 = vmatprep.subr.bf16.mxu0 %v9378_v56 }
 0x2ed   : > { %v2661_v21 = vpop.f32.mrb[112].mxu1 }
 0x2ee   : > { %v2663_v8 = vpop.f32.mrb[113].mxu1 }
 0x2ef   : > { %8421 = vmatpush3.bf16.msra.mxu0 %v9378_v56  ;;  %v2664_v45 = vpop.f32.mrb[114].mxu1  ;;  %v9434_v8 = vld [vmem:[%s11737_s3 + $0x374] ss:$8 sps:$4 sm:$0xff]  }
 0x2f0   : > { %8422 = vmatprep.subr.bf16.mxu0 %v9382_v58  ;;  %v3993_v62 = vpack.c.bf16 %v2664_v45, %v2661_v21  ;;  %v2666_v0 = vpop.f32.mrb[115].mxu1  ;;  %v9431_v21 = vld [vmem:[%s11737_s3 + $0x360] ss:$8 sps:$4 sm:$0xff]  }
 0x2f1   : > { %v9418_v45 = vld [vmem:[%s11738_s4 + $0x1a8] sm:$0xff]   ;;  %v9422_v0 = vld [vmem:[%s11738_s4 + $0x1b0] sm:$0xff]  }
 0x2f2   : > { %2876 = vmatmul.mubr.bf16.gmra.mrb[220].mxu1 %v9396_v63 }
 0x2f3   : > { %8423 = vmatpush3.bf16.msra.mxu0 %v9382_v58  ;;  %7239 = vmatprep.mubr.msk.bf16.mxu1 %vm2166_vm0, %v9399_v13 }
 0x2f4   : > { %8424 = vmatprep.subr.bf16.mxu0 %v9383_v29 }
 0x2f5   : > { %v10727_v48 = vpop.f32.mrb[116].mxu1 }
 0x2f6   : > { %v2671_v34 = vpop.f32.mrb[117].mxu1 }
 0x2f7   : > { %8425 = vmatpush3.bf16.msra.mxu0 %v9383_v29  ;;  %v10732_v61 = vpop.f32.mrb[118].mxu1  ;;  %v9441_v34 = vld [vmem:[%s11737_s3 + $0x384] ss:$8 sps:$4 sm:$0xff]  }
 0x2f8   : > { %8434 = vmatprep.subr.bf16.mxu0 %v9387_v10  ;;  %v3994_v19 = vpack.c.bf16 %v10732_v61, %v10727_v48  ;;  %v2674_v38 = vpop.f32.mrb[119].mxu1  ;;  %v9436_v48 = vld [vmem:[%s11737_s3 + $0x370] ss:$8 sps:$4 sm:$0xff]  }
 0x2f9   : > { %v9427_v38 = vld [vmem:[%s11738_s4 + $0x1c0] sm:$0xff]  }
 0x2fa   : > { %8427 = vmatmul.mubr.bf16.vlgmr.msra.gmra.mrb[40].mxu0 %v3852_v44  ;;  %2884 = vmatmul.mubr.bf16.gmra.mrb[224].mxu1 %v9401_v22 }
 0x2fb   : > { %8435 = vmatpush3.bf16.msra.mxu0 %v9387_v10  ;;  %8430 = vmatprep.mubr.bf16.mxu0 %v3853_v16 }
 0x2fc   : > { %8436 = vmatprep.subr.bf16.mxu0 %v9388_v15  ;;  %7240 = vmatprep.mubr.msk.bf16.mxu1 %vm2166_vm0, %v9404_v33 }
 0x2fd   : > { %v2677_v53 = vpop.f32.mrb[120].mxu1 }
 0x2fe   : > { %v2679_v37 = vpop.f32.mrb[121].mxu1 }
 0x2ff   : > { %8437 = vmatpush3.bf16.msra.mxu0 %v9388_v15  ;;  %v2680_v7 = vpop.f32.mrb[122].mxu1  ;;  %v9423_v15 = vld [vmem:[%s11738_s4 + $0x1b8] sm:$0xff]  }
 0x300   : > { %8438 = vmatprep.subr.bf16.mxu0 %v9392_v43  ;;  %v3995_v28 = vpack.c.bf16 %v2680_v7, %v2677_v53  ;;  %v2682_v27 = vpop.f32.mrb[123].mxu1  ;;  %v9439_v53 = vld [vmem:[%s11737_s3 + $0x380] ss:$8 sps:$4 sm:$0xff]  }
 0x301   : > { %v9428_v7 = vld [vmem:[%s11738_s4 + $0x1c8] sm:$0xff]   ;;  %v9432_v27 = vld [vmem:[%s11738_s4 + $0x1d0] sm:$0xff]  }
 0x302   : > { %8431 = vmatmul.mubr.bf16.gmra.mrb[44].mxu0 %v3854_v42  ;;  %2892 = vmatmul.mubr.bf16.gmra.mrb[228].mxu1 %v9406_v1 }
 0x303   : > { %8439 = vmatpush3.bf16.msra.mxu0 %v9392_v43  ;;  %8450 = vmatprep.mubr.bf16.mxu0 %v3993_v62 }
 0x304   : > { %8440 = vmatprep.subr.bf16.mxu0 %v9393_v6  ;;  %7241 = vmatprep.mubr.msk.bf16.mxu1 %vm2166_vm0, %v9409_v12  ;;  %v9446_v12 = vld [vmem:[%s11737_s3 + $0x394] ss:$8 sps:$4 sm:$0xff]  }
 0x305   : > { %v2685_v11 = vpop.f32.mrb[124].mxu1 }
 0x306   : > { %v2687_v5 = vpop.f32.mrb[125].mxu1 }
 0x307   : > { %8441 = vmatpush3.bf16.msra.mxu0 %v9393_v6  ;;  %v2688_v17 = vpop.f32.mrb[126].mxu1 }
 0x308   : > { %8442 = vmatprep.subr.bf16.mxu0 %v9397_v36  ;;  %v3996_v59 = vpack.c.bf16 %v2688_v17, %v2685_v11  ;;  %v2690_v49 = vpop.f32.mrb[127].mxu1  ;;  %v9444_v11 = vld [vmem:[%s11737_s3 + $0x390] ss:$8 sps:$4 sm:$0xff]   ;;  %v9451_v17 = vld [vmem:[%s11737_s3 + $0x3a4] ss:$8 sps:$4 sm:$0xff]  }
 0x309   : > { %v9437_v49 = vld [vmem:[%s11738_s4 + $0x1e0] sm:$0xff]  }
 0x30a   : > { %2900 = vmatmul.mubr.bf16.gmra.mrb[232].mxu1 %v9411_v32 }
 0x30b   : > { %8443 = vmatpush3.bf16.msra.mxu0 %v9397_v36  ;;  %7242 = vmatprep.mubr.msk.bf16.mxu1 %vm2166_vm0, %v9414_v60  ;;  %v9433_v60 = vld [vmem:[%s11738_s4 + $0x1d8] sm:$0xff]  }
 0x30c   : > { %8444 = vmatprep.subr.bf16.mxu0 %v9398_v52 }
 0x30d   : > { %v2693_v14 = vpop.f32.mrb[128].mxu1 }
 0x30e   : > { %v2695_v41 = vpop.f32.mrb[129].mxu1 }
 0x30f   : > { %8445 = vmatpush3.bf16.msra.mxu0 %v9398_v52  ;;  %v2696_v51 = vpop.f32.mrb[130].mxu1  ;;  %v9456_v41 = vld [vmem:[%s11737_s3 + $0x3b4] ss:$8 sps:$4 sm:$0xff]  }
 0x310   : > { %8446 = vmatprep.subr.bf16.mxu0 %v9402_v18  ;;  %v4135_v44 = vpack.c.bf16 %v2696_v51, %v2693_v14  ;;  %v2698_v55 = vpop.f32.mrb[131].mxu1  ;;  %v9449_v14 = vld [vmem:[%s11737_s3 + $0x3a0] ss:$8 sps:$4 sm:$0xff]  }
 0x311   : > { %v9438_v51 = vld [vmem:[%s11738_s4 + $0x1e8] sm:$0xff]   ;;  %v9442_v55 = vld [vmem:[%s11738_s4 + $0x1f0] sm:$0xff]  }
 0x312   : > { %2908 = vmatmul.mubr.bf16.gmra.mrb[236].mxu1 %v9416_v24 }
 0x313   : > { %8447 = vmatpush3.bf16.msra.mxu0 %v9402_v18  ;;  %7243 = vmatprep.mubr.msk.bf16.mxu1 %vm2166_vm0, %v9419_v40 }
 0x314   : > { %8448 = vmatprep.subr.bf16.mxu0 %v9403_v23 }
 0x315   : > { %v10788_v39 = vpop.f32.mrb[132].mxu1 }
 0x316   : > { %v2703_v54 = vpop.f32.mrb[133].mxu1 }
 0x317   : > { %8449 = vmatpush3.bf16.msra.mxu0 %v9403_v23  ;;  %v10793_v20 = vpop.f32.mrb[134].mxu1  ;;  %v9461_v54 = vld [vmem:[%s11737_s3 + $0x3c4] ss:$8 sps:$4 sm:$0xff]  }
 0x318   : > { %8458 = vmatprep.subr.bf16.mxu0 %v9407_v35  ;;  %v4136_v2 = vpack.c.bf16 %v10793_v20, %v10788_v39  ;;  %v2706_v16 = vpop.f32.mrb[135].mxu1  ;;  %v9454_v39 = vld [vmem:[%s11737_s3 + $0x3b0] ss:$8 sps:$4 sm:$0xff]  }
 0x319   : > { %v9447_v16 = vld [vmem:[%s11738_s4 + $0x200] sm:$0xff]  }
 0x31a   : > { %8451 = vmatmul.mubr.bf16.vlgmr.msra.gmra.mrb[40].mxu0 %v3994_v19  ;;  %2916 = vmatmul.mubr.bf16.gmra.mrb[240].mxu1 %v9421_v4 }
 0x31b   : > { %8459 = vmatpush3.bf16.msra.mxu0 %v9407_v35  ;;  %8454 = vmatprep.mubr.bf16.mxu0 %v3995_v28 }
 0x31c   : > { %8460 = vmatprep.subr.bf16.mxu0 %v9408_v30  ;;  %7244 = vmatprep.mubr.msk.bf16.mxu1 %vm2166_vm0, %v9424_v31 }
 0x31d   : > { %v2709_v3 = vpop.f32.mrb[136].mxu1 }
 0x31e   : > { %v2711_v9 = vpop.f32.mrb[137].mxu1 }
 0x31f   : > { %8461 = vmatpush3.bf16.msra.mxu0 %v9408_v30  ;;  %v2712_v50 = vpop.f32.mrb[138].mxu1  ;;  %v9443_v30 = vld [vmem:[%s11738_s4 + $0x1f8] sm:$0xff]  }
 0x320   : > { %8462 = vmatprep.subr.bf16.mxu0 %v9412_v26  ;;  %v4137_v56 = vpack.c.bf16 %v2712_v50, %v2709_v3  ;;  %v2714_v42 = vpop.f32.mrb[139].mxu1  ;;  %v9459_v3 = vld [vmem:[%s11737_s3 + $0x3c0] ss:$8 sps:$4 sm:$0xff]  }
 0x321   : > { %v9448_v50 = vld [vmem:[%s11738_s4 + $0x208] sm:$0xff]   ;;  %v9452_v42 = vld [vmem:[%s11738_s4 + $0x210] sm:$0xff]  }
 0x322   : > { %8455 = vmatmul.mubr.bf16.gmra.mrb[44].mxu0 %v3996_v59  ;;  %2924 = vmatmul.mubr.bf16.gmra.mrb[244].mxu1 %v9426_v47 }
 0x323   : > { %8463 = vmatpush3.bf16.msra.mxu0 %v9412_v26  ;;  %8474 = vmatprep.mubr.bf16.mxu0 %v4135_v44 }
 0x324   : > { %8464 = vmatprep.subr.bf16.mxu0 %v9413_v46  ;;  %7245 = vmatprep.mubr.msk.bf16.mxu1 %vm2166_vm0, %v9429_v57  ;;  %v9466_v57 = vld [vmem:[%s11737_s3 + $0x3d4] ss:$8 sps:$4 sm:$0xff]  }
 0x325   : > { %v2717_v58 = vpop.f32.mrb[140].mxu1 }
 0x326   : > { %v2719_v63 = vpop.f32.mrb[141].mxu1 }
 0x327   : > { %8465 = vmatpush3.bf16.msra.mxu0 %v9413_v46  ;;  %v2720_v13 = vpop.f32.mrb[142].mxu1 }
 0x328   : > { %8466 = vmatprep.subr.bf16.mxu0 %v9417_v25  ;;  %v4138_v29 = vpack.c.bf16 %v2720_v13, %v2717_v58  ;;  %v2722_v62 = vpop.f32.mrb[143].mxu1  ;;  %v9464_v58 = vld [vmem:[%s11737_s3 + $0x3d0] ss:$8 sps:$4 sm:$0xff]   ;;  %v9471_v13 = vld [vmem:[%s11737_s3 + $0x3e4] ss:$8 sps:$4 sm:$0xff]  }
 0x329   : > { %v9457_v62 = vld [vmem:[%s11738_s4 + $0x220] sm:$0xff]  }
 0x32a   : > { %2932 = vmatmul.mubr.bf16.gmra.mrb[248].mxu1 %v9431_v21 }
 0x32b   : > { %8467 = vmatpush3.bf16.msra.mxu0 %v9417_v25  ;;  %7246 = vmatprep.mubr.msk.bf16.mxu1 %vm2166_vm0, %v9434_v8  ;;  %v9453_v8 = vld [vmem:[%s11738_s4 + $0x218] sm:$0xff]  }
 0x32c   : > { %8468 = vmatprep.subr.bf16.mxu0 %v9418_v45 }
 0x32d   : > { %v2725_v10 = vpop.f32.mrb[144].mxu1 }
 0x32e   : > { %v2727_v22 = vpop.f32.mrb[145].mxu1 }
 0x32f   : > { %8469 = vmatpush3.bf16.msra.mxu0 %v9418_v45  ;;  %v2728_v61 = vpop.f32.mrb[146].mxu1  ;;  %v9476_v22 = vld [vmem:[%s11737_s3 + $0x3f4] ss:$8 sps:$4 sm:$0xff]  }
 0x330   : > { %8470 = vmatprep.subr.bf16.mxu0 %v9422_v0  ;;  %v4277_v19 = vpack.c.bf16 %v2728_v61, %v2725_v10  ;;  %v2730_v33 = vpop.f32.mrb[147].mxu1  ;;  %v9469_v10 = vld [vmem:[%s11737_s3 + $0x3e0] ss:$8 sps:$4 sm:$0xff]  }
 0x331   : > { %v9458_v61 = vld [vmem:[%s11738_s4 + $0x228] sm:$0xff]   ;;  %v9462_v33 = vld [vmem:[%s11738_s4 + $0x230] sm:$0xff]  }
 0x332   : > { %2940 = vmatmul.mubr.bf16.gmra.mrb[252].mxu1 %v9436_v48 }
 0x333   : > { %8471 = vmatpush3.bf16.msra.mxu0 %v9422_v0  ;;  %7247 = vmatprep.mubr.msk.bf16.mxu1 %vm2166_vm0, %v9441_v34 }
 0x334   : > { %8472 = vmatprep.subr.bf16.mxu0 %v9423_v15 }
 0x335   : > { %v10849_v43 = vpop.f32.mrb[148].mxu1 }
 0x336   : > { %v2735_v1 = vpop.f32.mrb[149].mxu1 }
 0x337   : > { %8473 = vmatpush3.bf16.msra.mxu0 %v9423_v15  ;;  %v10854_v37 = vpop.f32.mrb[150].mxu1  ;;  %v9481_v1 = vld [vmem:[%s11737_s3 + $0x404] ss:$8 sps:$4 sm:$0xff]  }
 0x338   : > { %8482 = vmatprep.subr.bf16.mxu0 %v9427_v38  ;;  %v4278_v6 = vpack.c.bf16 %v10854_v37, %v10849_v43  ;;  %v2738_v28 = vpop.f32.mrb[151].mxu1  ;;  %v9474_v43 = vld [vmem:[%s11737_s3 + $0x3f0] ss:$8 sps:$4 sm:$0xff]  }
 0x339   : > { %v9467_v28 = vld [vmem:[%s11738_s4 + $0x240] sm:$0xff]  }
 0x33a   : > { %8475 = vmatmul.mubr.bf16.vlgmr.msra.gmra.mrb[40].mxu0 %v4136_v2  ;;  %2948 = vmatmul.mubr.bf16.gmra.mrb[0].mxu1 %v9439_v53 }
 0x33b   : > { %8483 = vmatpush3.bf16.msra.mxu0 %v9427_v38  ;;  %8478 = vmatprep.mubr.bf16.mxu0 %v4137_v56 }
 0x33c   : > { %8484 = vmatprep.subr.bf16.mxu0 %v9428_v7  ;;  %7248 = vmatprep.mubr.msk.bf16.mxu1 %vm2166_vm0, %v9446_v12 }
 0x33d   : > { %v2741_v36 = vpop.f32.mrb[152].mxu1 }
 0x33e   : > { %v2743_v32 = vpop.f32.mrb[153].mxu1 }
 0x33f   : > { %8485 = vmatpush3.bf16.msra.mxu0 %v9428_v7  ;;  %v2744_v5 = vpop.f32.mrb[154].mxu1  ;;  %v9463_v7 = vld [vmem:[%s11738_s4 + $0x238] sm:$0xff]  }
 0x340   : > { %8486 = vmatprep.subr.bf16.mxu0 %v9432_v27  ;;  %v4279_v52 = vpack.c.bf16 %v2744_v5, %v2741_v36  ;;  %v2746_v59 = vpop.f32.mrb[155].mxu1  ;;  %v9479_v36 = vld [vmem:[%s11737_s3 + $0x400] ss:$8 sps:$4 sm:$0xff]  }
 0x341   : > { %v9468_v5 = vld [vmem:[%s11738_s4 + $0x248] sm:$0xff]   ;;  %v9472_v59 = vld [vmem:[%s11738_s4 + $0x250] sm:$0xff]  }
 0x342   : > { %8479 = vmatmul.mubr.bf16.gmra.mrb[44].mxu0 %v4138_v29  ;;  %2956 = vmatmul.mubr.bf16.gmra.mrb[4].mxu1 %v9444_v11 }
 0x343   : > { %8487 = vmatpush3.bf16.msra.mxu0 %v9432_v27  ;;  %8498 = vmatprep.mubr.bf16.mxu0 %v4277_v19 }
 0x344   : > { %8488 = vmatprep.subr.bf16.mxu0 %v9433_v60  ;;  %7249 = vmatprep.mubr.msk.bf16.mxu1 %vm2166_vm0, %v9451_v17  ;;  %v9486_v17 = vld [vmem:[%s11737_s3 + $0x414] ss:$8 sps:$4 sm:$0xff]  }
 0x345   : > { %v2749_v18 = vpop.f32.mrb[156].mxu1 }
 0x346   : > { %v2751_v24 = vpop.f32.mrb[157].mxu1 }
 0x347   : > { %8489 = vmatpush3.bf16.msra.mxu0 %v9433_v60  ;;  %v2752_v40 = vpop.f32.mrb[158].mxu1 }
 0x348   : > { %8490 = vmatprep.subr.bf16.mxu0 %v9437_v49  ;;  %v4280_v23 = vpack.c.bf16 %v2752_v40, %v2749_v18  ;;  %v2754_v44 = vpop.f32.mrb[159].mxu1  ;;  %v9484_v18 = vld [vmem:[%s11737_s3 + $0x410] ss:$8 sps:$4 sm:$0xff]   ;;  %v9491_v40 = vld [vmem:[%s11737_s3 + $0x424] ss:$8 sps:$4 sm:$0xff]  }
 0x349   : > { %v9477_v44 = vld [vmem:[%s11738_s4 + $0x260] sm:$0xff]  }
 0x34a   : > { %2964 = vmatmul.mubr.bf16.gmra.mrb[8].mxu1 %v9449_v14 }
 0x34b   : > { %8491 = vmatpush3.bf16.msra.mxu0 %v9437_v49  ;;  %7250 = vmatprep.mubr.msk.bf16.mxu1 %vm2166_vm0, %v9456_v41  ;;  %v9473_v41 = vld [vmem:[%s11738_s4 + $0x258] sm:$0xff]  }
 0x34c   : > { %8492 = vmatprep.subr.bf16.mxu0 %v9438_v51 }
 0x34d   : > { %v2757_v35 = vpop.f32.mrb[160].mxu1 }
 0x34e   : > { %v2759_v4 = vpop.f32.mrb[161].mxu1 }
 0x34f   : > { %8493 = vmatpush3.bf16.msra.mxu0 %v9438_v51  ;;  %v2760_v20 = vpop.f32.mrb[162].mxu1  ;;  %v9496_v4 = vld [vmem:[%s11737_s3 + $0x434] ss:$8 sps:$4 sm:$0xff]  }
 0x350   : > { %8494 = vmatprep.subr.bf16.mxu0 %v9442_v55  ;;  %v4419_v2 = vpack.c.bf16 %v2760_v20, %v2757_v35  ;;  %v2762_v31 = vpop.f32.mrb[163].mxu1  ;;  %v9489_v35 = vld [vmem:[%s11737_s3 + $0x420] ss:$8 sps:$4 sm:$0xff]  }
 0x351   : > { %v9478_v20 = vld [vmem:[%s11738_s4 + $0x268] sm:$0xff]   ;;  %v9482_v31 = vld [vmem:[%s11738_s4 + $0x270] sm:$0xff]  }
 0x352   : > { %2972 = vmatmul.mubr.bf16.gmra.mrb[12].mxu1 %v9454_v39 }
 0x353   : > { %8495 = vmatpush3.bf16.msra.mxu0 %v9442_v55  ;;  %7251 = vmatprep.mubr.msk.bf16.mxu1 %vm2166_vm0, %v9461_v54 }
 0x354   : > { %8496 = vmatprep.subr.bf16.mxu0 %v9443_v30 }
 0x355   : > { %v10910_v26 = vpop.f32.mrb[164].mxu1 }
 0x356   : > { %v2767_v47 = vpop.f32.mrb[165].mxu1 }
 0x357   : > { %8497 = vmatpush3.bf16.msra.mxu0 %v9443_v30  ;;  %v10915_v9 = vpop.f32.mrb[166].mxu1  ;;  %v9501_v47 = vld [vmem:[%s11737_s3 + $0x444] ss:$8 sps:$4 sm:$0xff]  }
 0x358   : > { %8506 = vmatprep.subr.bf16.mxu0 %v9447_v16  ;;  %v4420_v46 = vpack.c.bf16 %v10915_v9, %v10910_v26  ;;  %v2770_v56 = vpop.f32.mrb[167].mxu1  ;;  %v9494_v26 = vld [vmem:[%s11737_s3 + $0x430] ss:$8 sps:$4 sm:$0xff]  }
 0x359   : > { %v9487_v56 = vld [vmem:[%s11738_s4 + $0x280] sm:$0xff]  }
 0x35a   : > { %8499 = vmatmul.mubr.bf16.vlgmr.msra.gmra.mrb[40].mxu0 %v4278_v6  ;;  %2980 = vmatmul.mubr.bf16.gmra.mrb[16].mxu1 %v9459_v3 }
 0x35b   : > { %8507 = vmatpush3.bf16.msra.mxu0 %v9447_v16  ;;  %8502 = vmatprep.mubr.bf16.mxu0 %v4279_v52 }
 0x35c   : > { %8508 = vmatprep.subr.bf16.mxu0 %v9448_v50  ;;  %7252 = vmatprep.mubr.msk.bf16.mxu1 %vm2166_vm0, %v9466_v57 }
 0x35d   : > { %v2773_v25 = vpop.f32.mrb[168].mxu1 }
 0x35e   : > { %v2775_v21 = vpop.f32.mrb[169].mxu1 }
 0x35f   : > { %8509 = vmatpush3.bf16.msra.mxu0 %v9448_v50  ;;  %v2776_v63 = vpop.f32.mrb[170].mxu1  ;;  %v9483_v50 = vld [vmem:[%s11738_s4 + $0x278] sm:$0xff]  }
 0x360   : > { %8510 = vmatprep.subr.bf16.mxu0 %v9452_v42  ;;  %v4421_v45 = vpack.c.bf16 %v2776_v63, %v2773_v25  ;;  %v2778_v29 = vpop.f32.mrb[171].mxu1  ;;  %v9499_v25 = vld [vmem:[%s11737_s3 + $0x440] ss:$8 sps:$4 sm:$0xff]  }
 0x361   : > { %v9488_v63 = vld [vmem:[%s11738_s4 + $0x288] sm:$0xff]   ;;  %v9492_v29 = vld [vmem:[%s11738_s4 + $0x290] sm:$0xff]  }
 0x362   : > { %8503 = vmatmul.mubr.bf16.gmra.mrb[44].mxu0 %v4280_v23  ;;  %2988 = vmatmul.mubr.bf16.gmra.mrb[20].mxu1 %v9464_v58 }
 0x363   : > { %8511 = vmatpush3.bf16.msra.mxu0 %v9452_v42  ;;  %8522 = vmatprep.mubr.bf16.mxu0 %v4419_v2 }
 0x364   : > { %8512 = vmatprep.subr.bf16.mxu0 %v9453_v8  ;;  %7253 = vmatprep.mubr.msk.bf16.mxu1 %vm2166_vm0, %v9471_v13  ;;  %v9506_v13 = vld [vmem:[%s11737_s3 + $0x454] ss:$8 sps:$4 sm:$0xff]  }
 0x365   : > { %v2781_v0 = vpop.f32.mrb[172].mxu1 }
 0x366   : > { %v2783_v48 = vpop.f32.mrb[173].mxu1 }
 0x367   : > { %8513 = vmatpush3.bf16.msra.mxu0 %v9453_v8  ;;  %v2784_v34 = vpop.f32.mrb[174].mxu1 }
 0x368   : > { %8514 = vmatprep.subr.bf16.mxu0 %v9457_v62  ;;  %v4422_v15 = vpack.c.bf16 %v2784_v34, %v2781_v0  ;;  %v2786_v19 = vpop.f32.mrb[175].mxu1  ;;  %v9504_v0 = vld [vmem:[%s11737_s3 + $0x450] ss:$8 sps:$4 sm:$0xff]   ;;  %v9511_v34 = vld [vmem:[%s11737_s3 + $0x464] ss:$8 sps:$4 sm:$0xff]  }
 0x369   : > { %v9497_v19 = vld [vmem:[%s11738_s4 + $0x2a0] sm:$0xff]  }
 0x36a   : > { %2996 = vmatmul.mubr.bf16.gmra.mrb[24].mxu1 %v9469_v10 }
 0x36b   : > { %8515 = vmatpush3.bf16.msra.mxu0 %v9457_v62  ;;  %7254 = vmatprep.mubr.msk.bf16.mxu1 %vm2166_vm0, %v9476_v22  ;;  %v9493_v22 = vld [vmem:[%s11738_s4 + $0x298] sm:$0xff]  }
 0x36c   : > { %8516 = vmatprep.subr.bf16.mxu0 %v9458_v61 }
 0x36d   : > { %v2789_v38 = vpop.f32.mrb[176].mxu1 }
 0x36e   : > { %v2791_v53 = vpop.f32.mrb[177].mxu1 }
 0x36f   : > { %8517 = vmatpush3.bf16.msra.mxu0 %v9458_v61  ;;  %v2792_v37 = vpop.f32.mrb[178].mxu1  ;;  %v9516_v53 = vld [vmem:[%s11737_s3 + $0x474] ss:$8 sps:$4 sm:$0xff]  }
 0x370   : > { %8518 = vmatprep.subr.bf16.mxu0 %v9462_v33  ;;  %v4561_v6 = vpack.c.bf16 %v2792_v37, %v2789_v38  ;;  %v2794_v12 = vpop.f32.mrb[179].mxu1  ;;  %v9509_v38 = vld [vmem:[%s11737_s3 + $0x460] ss:$8 sps:$4 sm:$0xff]  }
 0x371   : > { %v9498_v37 = vld [vmem:[%s11738_s4 + $0x2a8] sm:$0xff]   ;;  %v9502_v12 = vld [vmem:[%s11738_s4 + $0x2b0] sm:$0xff]  }
 0x372   : > { %3004 = vmatmul.mubr.bf16.gmra.mrb[28].mxu1 %v9474_v43 }
 0x373   : > { %8519 = vmatpush3.bf16.msra.mxu0 %v9462_v33  ;;  %7255 = vmatprep.mubr.msk.bf16.mxu1 %vm2166_vm0, %v9481_v1 }
 0x374   : > { %8520 = vmatprep.subr.bf16.mxu0 %v9463_v7 }
 0x375   : > { %v10971_v27 = vpop.f32.mrb[180].mxu1 }
 0x376   : > { %v2799_v11 = vpop.f32.mrb[181].mxu1 }
 0x377   : > { %8521 = vmatpush3.bf16.msra.mxu0 %v9463_v7  ;;  %v10976_v32 = vpop.f32.mrb[182].mxu1  ;;  %v9521_v11 = vld [vmem:[%s11737_s3 + $0x484] ss:$8 sps:$4 sm:$0xff]  }
 0x378   : > { %8530 = vmatprep.subr.bf16.mxu0 %v9467_v28  ;;  %v4562_v60 = vpack.c.bf16 %v10976_v32, %v10971_v27  ;;  %v2802_v52 = vpop.f32.mrb[183].mxu1  ;;  %v9514_v27 = vld [vmem:[%s11737_s3 + $0x470] ss:$8 sps:$4 sm:$0xff]  }
 0x379   : > { %v9507_v52 = vld [vmem:[%s11738_s4 + $0x2c0] sm:$0xff]  }
 0x37a   : > { %8523 = vmatmul.mubr.bf16.vlgmr.msra.gmra.mrb[40].mxu0 %v4420_v46  ;;  %3012 = vmatmul.mubr.bf16.gmra.mrb[32].mxu1 %v9479_v36 }
 0x37b   : > { %8531 = vmatpush3.bf16.msra.mxu0 %v9467_v28  ;;  %8526 = vmatprep.mubr.bf16.mxu0 %v4421_v45 }
 0x37c   : > { %8532 = vmatprep.subr.bf16.mxu0 %v9468_v5  ;;  %7256 = vmatprep.mubr.msk.bf16.mxu1 %vm2166_vm0, %v9486_v17 }
 0x37d   : > { %v2805_v49 = vpop.f32.mrb[184].mxu1 }
 0x37e   : > { %v2807_v14 = vpop.f32.mrb[185].mxu1 }
 0x37f   : > { %8533 = vmatpush3.bf16.msra.mxu0 %v9468_v5  ;;  %v2808_v24 = vpop.f32.mrb[186].mxu1  ;;  %v9503_v5 = vld [vmem:[%s11738_s4 + $0x2b8] sm:$0xff]  }
 0x380   : > { %8534 = vmatprep.subr.bf16.mxu0 %v9472_v59  ;;  %v4563_v51 = vpack.c.bf16 %v2808_v24, %v2805_v49  ;;  %v2810_v23 = vpop.f32.mrb[187].mxu1  ;;  %v9519_v49 = vld [vmem:[%s11737_s3 + $0x480] ss:$8 sps:$4 sm:$0xff]  }
 0x381   : > { %v9508_v24 = vld [vmem:[%s11738_s4 + $0x2c8] sm:$0xff]   ;;  %v9512_v23 = vld [vmem:[%s11738_s4 + $0x2d0] sm:$0xff]  }
 0x382   : > { %8527 = vmatmul.mubr.bf16.gmra.mrb[44].mxu0 %v4422_v15  ;;  %3020 = vmatmul.mubr.bf16.gmra.mrb[36].mxu1 %v9484_v18 }
 0x383   : > { %8535 = vmatpush3.bf16.msra.mxu0 %v9472_v59  ;;  %8546 = vmatprep.mubr.bf16.mxu0 %v4561_v6 }
 0x384   : > { %8536 = vmatprep.subr.bf16.mxu0 %v9473_v41  ;;  %7257 = vmatprep.mubr.msk.bf16.mxu1 %vm2166_vm0, %v9491_v40  ;;  %v9526_v40 = vld [vmem:[%s11737_s3 + $0x494] ss:$8 sps:$4 sm:$0xff]  }
 0x385   : > { %v2813_v55 = vpop.f32.mrb[188].mxu1 }
 0x386   : > { %v2815_v39 = vpop.f32.mrb[189].mxu1 }
 0x387   : > { %8537 = vmatpush3.bf16.msra.mxu0 %v9473_v41  ;;  %v2816_v54 = vpop.f32.mrb[190].mxu1 }
 0x388   : > { %8538 = vmatprep.subr.bf16.mxu0 %v9477_v44  ;;  %v4564_v30 = vpack.c.bf16 %v2816_v54, %v2813_v55  ;;  %v2818_v2 = vpop.f32.mrb[191].mxu1  ;;  %v9524_v55 = vld [vmem:[%s11737_s3 + $0x490] ss:$8 sps:$4 sm:$0xff]   ;;  %v9531_v54 = vld [vmem:[%s11737_s3 + $0x4a4] ss:$8 sps:$4 sm:$0xff]  }
 0x389   : > { %v9517_v2 = vld [vmem:[%s11738_s4 + $0x2e0] sm:$0xff]  }
 0x38a   : > { %3028 = vmatmul.mubr.bf16.gmra.mrb[40].mxu1 %v9489_v35 }
 0x38b   : > { %8539 = vmatpush3.bf16.msra.mxu0 %v9477_v44  ;;  %7258 = vmatprep.mubr.msk.bf16.mxu1 %vm2166_vm0, %v9496_v4  ;;  %v9513_v4 = vld [vmem:[%s11738_s4 + $0x2d8] sm:$0xff]  }
 0x38c   : > { %8540 = vmatprep.subr.bf16.mxu0 %v9478_v20 }
 0x38d   : > { %v2821_v16 = vpop.f32.mrb[192].mxu1 }
 0x38e   : > { %v2823_v3 = vpop.f32.mrb[193].mxu1 }
 0x38f   : > { %8541 = vmatpush3.bf16.msra.mxu0 %v9478_v20  ;;  %v2824_v9 = vpop.f32.mrb[194].mxu1  ;;  %v9536_v3 = vld [vmem:[%s11737_s3 + $0x4b4] ss:$8 sps:$4 sm:$0xff]  }
 0x390   : > { %8542 = vmatprep.subr.bf16.mxu0 %v9482_v31  ;;  %v4703_v46 = vpack.c.bf16 %v2824_v9, %v2821_v16  ;;  %v2826_v57 = vpop.f32.mrb[195].mxu1  ;;  %v9529_v16 = vld [vmem:[%s11737_s3 + $0x4a0] ss:$8 sps:$4 sm:$0xff]  }
 0x391   : > { %v9518_v9 = vld [vmem:[%s11738_s4 + $0x2e8] sm:$0xff]   ;;  %v9522_v57 = vld [vmem:[%s11738_s4 + $0x2f0] sm:$0xff]  }
 0x392   : > { %3036 = vmatmul.mubr.bf16.gmra.mrb[44].mxu1 %v9494_v26 }
 0x393   : > { %8543 = vmatpush3.bf16.msra.mxu0 %v9482_v31  ;;  %7259 = vmatprep.mubr.msk.bf16.mxu1 %vm2166_vm0, %v9501_v47 }
 0x394   : > { %8544 = vmatprep.subr.bf16.mxu0 %v9483_v50 }
 0x395   : > { %v11032_v42 = vpop.f32.mrb[196].mxu1 }
 0x396   : > { %v2831_v58 = vpop.f32.mrb[197].mxu1 }
 0x397   : > { %8545 = vmatpush3.bf16.msra.mxu0 %v9483_v50  ;;  %v11037_v21 = vpop.f32.mrb[198].mxu1  ;;  %v9541_v58 = vld [vmem:[%s11737_s3 + $0x4c4] ss:$8 sps:$4 sm:$0xff]  }
 0x398   : > { %8554 = vmatprep.subr.bf16.mxu0 %v9487_v56  ;;  %v4704_v8 = vpack.c.bf16 %v11037_v21, %v11032_v42  ;;  %v2834_v45 = vpop.f32.mrb[199].mxu1  ;;  %v9534_v42 = vld [vmem:[%s11737_s3 + $0x4b0] ss:$8 sps:$4 sm:$0xff]  }
 0x399   : > { %v9527_v45 = vld [vmem:[%s11738_s4 + $0x300] sm:$0xff]  }
 0x39a   : > { %8547 = vmatmul.mubr.bf16.vlgmr.msra.gmra.mrb[40].mxu0 %v4562_v60  ;;  %3044 = vmatmul.mubr.bf16.gmra.mrb[48].mxu1 %v9499_v25 }
 0x39b   : > { %8555 = vmatpush3.bf16.msra.mxu0 %v9487_v56  ;;  %8550 = vmatprep.mubr.bf16.mxu0 %v4563_v51 }
 0x39c   : > { %8556 = vmatprep.subr.bf16.mxu0 %v9488_v63  ;;  %7260 = vmatprep.mubr.msk.bf16.mxu1 %vm2166_vm0, %v9506_v13 }
 0x39d   : > { %v2837_v62 = vpop.f32.mrb[200].mxu1 }
 0x39e   : > { %v2839_v10 = vpop.f32.mrb[201].mxu1 }
 0x39f   : > { %8557 = vmatpush3.bf16.msra.mxu0 %v9488_v63  ;;  %v2840_v48 = vpop.f32.mrb[202].mxu1  ;;  %v9523_v63 = vld [vmem:[%s11738_s4 + $0x2f8] sm:$0xff]  }
 0x3a0   : > { %8558 = vmatprep.subr.bf16.mxu0 %v9492_v29  ;;  %v4705_v61 = vpack.c.bf16 %v2840_v48, %v2837_v62  ;;  %v2842_v15 = vpop.f32.mrb[203].mxu1  ;;  %v9539_v62 = vld [vmem:[%s11737_s3 + $0x4c0] ss:$8 sps:$4 sm:$0xff]  }
 0x3a1   : > { %v9528_v48 = vld [vmem:[%s11738_s4 + $0x308] sm:$0xff]   ;;  %v9532_v15 = vld [vmem:[%s11738_s4 + $0x310] sm:$0xff]  }
 0x3a2   : > { %8551 = vmatmul.mubr.bf16.gmra.mrb[44].mxu0 %v4564_v30  ;;  %3052 = vmatmul.mubr.bf16.gmra.mrb[52].mxu1 %v9504_v0 }
 0x3a3   : > { %8559 = vmatpush3.bf16.msra.mxu0 %v9492_v29  ;;  %8570 = vmatprep.mubr.bf16.mxu0 %v4703_v46 }
 0x3a4   : > { %8560 = vmatprep.subr.bf16.mxu0 %v9493_v22  ;;  %7261 = vmatprep.mubr.msk.bf16.mxu1 %vm2166_vm0, %v9511_v34  ;;  %v9546_v34 = vld [vmem:[%s11737_s3 + $0x4d4] ss:$8 sps:$4 sm:$0xff]  }
 0x3a5   : > { %v2845_v33 = vpop.f32.mrb[204].mxu1 }
 0x3a6   : > { %v2847_v43 = vpop.f32.mrb[205].mxu1 }
 0x3a7   : > { %8561 = vmatpush3.bf16.msra.mxu0 %v9493_v22  ;;  %v2848_v1 = vpop.f32.mrb[206].mxu1 }
 0x3a8   : > { %8562 = vmatprep.subr.bf16.mxu0 %v9497_v19  ;;  %v4706_v7 = vpack.c.bf16 %v2848_v1, %v2845_v33  ;;  %v2850_v6 = vpop.f32.mrb[207].mxu1  ;;  %v9544_v33 = vld [vmem:[%s11737_s3 + $0x4d0] ss:$8 sps:$4 sm:$0xff]   ;;  %v9551_v1 = vld [vmem:[%s11737_s3 + $0x4e4] ss:$8 sps:$4 sm:$0xff]  }
 0x3a9   : > { %v9537_v6 = vld [vmem:[%s11738_s4 + $0x320] sm:$0xff]  }
 0x3aa   : > { %3060 = vmatmul.mubr.bf16.gmra.mrb[56].mxu1 %v9509_v38 }
 0x3ab   : > { %8563 = vmatpush3.bf16.msra.mxu0 %v9497_v19  ;;  %7262 = vmatprep.mubr.msk.bf16.mxu1 %vm2166_vm0, %v9516_v53  ;;  %v9533_v53 = vld [vmem:[%s11738_s4 + $0x318] sm:$0xff]  }
 0x3ac   : > { %8564 = vmatprep.subr.bf16.mxu0 %v9498_v37 }
 0x3ad   : > { %v2853_v28 = vpop.f32.mrb[208].mxu1 }
 0x3ae   : > { %v2855_v36 = vpop.f32.mrb[209].mxu1 }
 0x3af   : > { %8565 = vmatpush3.bf16.msra.mxu0 %v9498_v37  ;;  %v2856_v32 = vpop.f32.mrb[210].mxu1  ;;  %v9556_v36 = vld [vmem:[%s11737_s3 + $0x4f4] ss:$8 sps:$4 sm:$0xff]  }
 0x3b0   : > { %8566 = vmatprep.subr.bf16.mxu0 %v9502_v12  ;;  %v4845_v60 = vpack.c.bf16 %v2856_v32, %v2853_v28  ;;  %v2858_v17 = vpop.f32.mrb[211].mxu1  ;;  %v9549_v28 = vld [vmem:[%s11737_s3 + $0x4e0] ss:$8 sps:$4 sm:$0xff]  }
 0x3b1   : > { %v9538_v32 = vld [vmem:[%s11738_s4 + $0x328] sm:$0xff]   ;;  %v9542_v17 = vld [vmem:[%s11738_s4 + $0x330] sm:$0xff]  }
 0x3b2   : > { %3068 = vmatmul.mubr.bf16.gmra.mrb[60].mxu1 %v9514_v27 }
 0x3b3   : > { %8567 = vmatpush3.bf16.msra.mxu0 %v9502_v12  ;;  %7263 = vmatprep.mubr.msk.bf16.mxu1 %vm2166_vm0, %v9521_v11 }
 0x3b4   : > { %8568 = vmatprep.subr.bf16.mxu0 %v9503_v5 }
 0x3b5   : > { %v11093_v59 = vpop.f32.mrb[212].mxu1 }
 0x3b6   : > { %v2863_v18 = vpop.f32.mrb[213].mxu1 }
 0x3b7   : > { %8569 = vmatpush3.bf16.msra.mxu0 %v9503_v5  ;;  %v11098_v14 = vpop.f32.mrb[214].mxu1  ;;  %v9561_v18 = vld [vmem:[%s11737_s3 + $0x504] ss:$8 sps:$4 sm:$0xff]  }
 0x3b8   : > { %8578 = vmatprep.subr.bf16.mxu0 %v9507_v52  ;;  %v4846_v41 = vpack.c.bf16 %v11098_v14, %v11093_v59  ;;  %v2866_v51 = vpop.f32.mrb[215].mxu1  ;;  %v9554_v59 = vld [vmem:[%s11737_s3 + $0x4f0] ss:$8 sps:$4 sm:$0xff]  }
 0x3b9   : > { %v9547_v51 = vld [vmem:[%s11738_s4 + $0x340] sm:$0xff]  }
 0x3ba   : > { %8571 = vmatmul.mubr.bf16.vlgmr.msra.gmra.mrb[40].mxu0 %v4704_v8  ;;  %3076 = vmatmul.mubr.bf16.gmra.mrb[64].mxu1 %v9519_v49 }
 0x3bb   : > { %8579 = vmatpush3.bf16.msra.mxu0 %v9507_v52  ;;  %8574 = vmatprep.mubr.bf16.mxu0 %v4705_v61 }
 0x3bc   : > { %8580 = vmatprep.subr.bf16.mxu0 %v9508_v24  ;;  %7264 = vmatprep.mubr.msk.bf16.mxu1 %vm2166_vm0, %v9526_v40 }
 0x3bd   : > { %v2869_v44 = vpop.f32.mrb[216].mxu1 }
 0x3be   : > { %v2871_v35 = vpop.f32.mrb[217].mxu1 }
 0x3bf   : > { %8581 = vmatpush3.bf16.msra.mxu0 %v9508_v24  ;;  %v2872_v39 = vpop.f32.mrb[218].mxu1  ;;  %v9543_v24 = vld [vmem:[%s11738_s4 + $0x338] sm:$0xff]  }
 0x3c0   : > { %8582 = vmatprep.subr.bf16.mxu0 %v9512_v23  ;;  %v4847_v20 = vpack.c.bf16 %v2872_v39, %v2869_v44  ;;  %v2874_v30 = vpop.f32.mrb[219].mxu1  ;;  %v9559_v44 = vld [vmem:[%s11737_s3 + $0x500] ss:$8 sps:$4 sm:$0xff]  }
 0x3c1   : > { %v9548_v39 = vld [vmem:[%s11738_s4 + $0x348] sm:$0xff]   ;;  %v9552_v30 = vld [vmem:[%s11738_s4 + $0x350] sm:$0xff]  }
 0x3c2   : > { %8575 = vmatmul.mubr.bf16.gmra.mrb[44].mxu0 %v4706_v7  ;;  %3084 = vmatmul.mubr.bf16.gmra.mrb[68].mxu1 %v9524_v55 }
 0x3c3   : > { %8583 = vmatpush3.bf16.msra.mxu0 %v9512_v23  ;;  %8594 = vmatprep.mubr.bf16.mxu0 %v4845_v60 }
 0x3c4   : > { %8584 = vmatprep.subr.bf16.mxu0 %v9513_v4  ;;  %7265 = vmatprep.mubr.msk.bf16.mxu1 %vm2166_vm0, %v9531_v54  ;;  %v9566_v54 = vld [vmem:[%s11737_s3 + $0x514] ss:$8 sps:$4 sm:$0xff]  }
 0x3c5   : > { %v2877_v31 = vpop.f32.mrb[220].mxu1 }
 0x3c6   : > { %v2879_v26 = vpop.f32.mrb[221].mxu1 }
 0x3c7   : > { %8585 = vmatpush3.bf16.msra.mxu0 %v9513_v4  ;;  %v2880_v47 = vpop.f32.mrb[222].mxu1 }
 0x3c8   : > { %8586 = vmatprep.subr.bf16.mxu0 %v9517_v2  ;;  %v4848_v50 = vpack.c.bf16 %v2880_v47, %v2877_v31  ;;  %v2882_v46 = vpop.f32.mrb[223].mxu1  ;;  %v9564_v31 = vld [vmem:[%s11737_s3 + $0x510] ss:$8 sps:$4 sm:$0xff]   ;;  %v9571_v47 = vld [vmem:[%s11737_s3 + $0x524] ss:$8 sps:$4 sm:$0xff]  }
 0x3c9   : > { %v9557_v46 = vld [vmem:[%s11738_s4 + $0x360] sm:$0xff]  }
 0x3ca   : > { %3092 = vmatmul.mubr.bf16.gmra.mrb[72].mxu1 %v9529_v16 }
 0x3cb   : > { %8587 = vmatpush3.bf16.msra.mxu0 %v9517_v2  ;;  %7266 = vmatprep.mubr.msk.bf16.mxu1 %vm2166_vm0, %v9536_v3  ;;  %v9553_v3 = vld [vmem:[%s11738_s4 + $0x358] sm:$0xff]  }
 0x3cc   : > { %8588 = vmatprep.subr.bf16.mxu0 %v9518_v9 }
 0x3cd   : > { %v2885_v56 = vpop.f32.mrb[224].mxu1 }
 0x3ce   : > { %v2887_v25 = vpop.f32.mrb[225].mxu1 }
 0x3cf   : > { %8589 = vmatpush3.bf16.msra.mxu0 %v9518_v9  ;;  %v2888_v21 = vpop.f32.mrb[226].mxu1  ;;  %v9576_v25 = vld [vmem:[%s11737_s3 + $0x534] ss:$8 sps:$4 sm:$0xff]  }
 0x3d0   : > { %8590 = vmatprep.subr.bf16.mxu0 %v9522_v57  ;;  %v4987_v8 = vpack.c.bf16 %v2888_v21, %v2885_v56  ;;  %v2890_v13 = vpop.f32.mrb[227].mxu1  ;;  %v9569_v56 = vld [vmem:[%s11737_s3 + $0x520] ss:$8 sps:$4 sm:$0xff]  }
 0x3d1   : > { %v9558_v21 = vld [vmem:[%s11738_s4 + $0x368] sm:$0xff]   ;;  %v9562_v13 = vld [vmem:[%s11738_s4 + $0x370] sm:$0xff]  }
 0x3d2   : > { %3100 = vmatmul.mubr.bf16.gmra.mrb[76].mxu1 %v9534_v42 }
 0x3d3   : > { %8591 = vmatpush3.bf16.msra.mxu0 %v9522_v57  ;;  %7267 = vmatprep.mubr.msk.bf16.mxu1 %vm2166_vm0, %v9541_v58 }
 0x3d4   : > { %8592 = vmatprep.subr.bf16.mxu0 %v9523_v63 }
 0x3d5   : > { %v11154_v29 = vpop.f32.mrb[228].mxu1 }
 0x3d6   : > { %v2895_v0 = vpop.f32.mrb[229].mxu1 }
 0x3d7   : > { %8593 = vmatpush3.bf16.msra.mxu0 %v9523_v63  ;;  %v11159_v10 = vpop.f32.mrb[230].mxu1  ;;  %v9581_v0 = vld [vmem:[%s11737_s3 + $0x544] ss:$8 sps:$4 sm:$0xff]  }
 0x3d8   : > { %8602 = vmatprep.subr.bf16.mxu0 %v9527_v45  ;;  %v4988_v22 = vpack.c.bf16 %v11159_v10, %v11154_v29  ;;  %v2898_v61 = vpop.f32.mrb[231].mxu1  ;;  %v9574_v29 = vld [vmem:[%s11737_s3 + $0x530] ss:$8 sps:$4 sm:$0xff]  }
 0x3d9   : > { %v9567_v61 = vld [vmem:[%s11738_s4 + $0x380] sm:$0xff]  }
 0x3da   : > { %8595 = vmatmul.mubr.bf16.vlgmr.msra.gmra.mrb[40].mxu0 %v4846_v41  ;;  %3108 = vmatmul.mubr.bf16.gmra.mrb[80].mxu1 %v9539_v62 }
 0x3db   : > { %8603 = vmatpush3.bf16.msra.mxu0 %v9527_v45  ;;  %8598 = vmatprep.mubr.bf16.mxu0 %v4847_v20 }
 0x3dc   : > { %8604 = vmatprep.subr.bf16.mxu0 %v9528_v48  ;;  %7268 = vmatprep.mubr.msk.bf16.mxu1 %vm2166_vm0, %v9546_v34 }
 0x3dd   : > { %v2901_v19 = vpop.f32.mrb[232].mxu1 }
 0x3de   : > { %v2903_v38 = vpop.f32.mrb[233].mxu1 }
 0x3df   : > { %8605 = vmatpush3.bf16.msra.mxu0 %v9528_v48  ;;  %v2904_v43 = vpop.f32.mrb[234].mxu1  ;;  %v9563_v48 = vld [vmem:[%s11738_s4 + $0x378] sm:$0xff]  }
 0x3e0   : > { %8606 = vmatprep.subr.bf16.mxu0 %v9532_v15  ;;  %v4989_v37 = vpack.c.bf16 %v2904_v43, %v2901_v19  ;;  %v2906_v7 = vpop.f32.mrb[235].mxu1  ;;  %v9579_v19 = vld [vmem:[%s11737_s3 + $0x540] ss:$8 sps:$4 sm:$0xff]  }
 0x3e1   : > { %v9568_v43 = vld [vmem:[%s11738_s4 + $0x388] sm:$0xff]   ;;  %v9572_v7 = vld [vmem:[%s11738_s4 + $0x390] sm:$0xff]  }
 0x3e2   : > { %8599 = vmatmul.mubr.bf16.gmra.mrb[44].mxu0 %v4848_v50  ;;  %3116 = vmatmul.mubr.bf16.gmra.mrb[84].mxu1 %v9544_v33 }
 0x3e3   : > { %8607 = vmatpush3.bf16.msra.mxu0 %v9532_v15  ;;  %8618 = vmatprep.mubr.bf16.mxu0 %v4987_v8 }
 0x3e4   : > { %8608 = vmatprep.subr.bf16.mxu0 %v9533_v53  ;;  %7269 = vmatprep.mubr.msk.bf16.mxu1 %vm2166_vm0, %v9551_v1  ;;  %v9586_v1 = vld [vmem:[%s11737_s3 + $0x554] ss:$8 sps:$4 sm:$0xff]  }
 0x3e5   : > { %v2909_v12 = vpop.f32.mrb[236].mxu1 }
 0x3e6   : > { %v2911_v27 = vpop.f32.mrb[237].mxu1 }
 0x3e7   : > { %8609 = vmatpush3.bf16.msra.mxu0 %v9533_v53  ;;  %v2912_v11 = vpop.f32.mrb[238].mxu1 }
 0x3e8   : > { %8610 = vmatprep.subr.bf16.mxu0 %v9537_v6  ;;  %v4990_v5 = vpack.c.bf16 %v2912_v11, %v2909_v12  ;;  %v2914_v60 = vpop.f32.mrb[239].mxu1  ;;  %v9584_v12 = vld [vmem:[%s11737_s3 + $0x550] ss:$8 sps:$4 sm:$0xff]   ;;  %v9591_v11 = vld [vmem:[%s11737_s3 + $0x564] ss:$8 sps:$4 sm:$0xff]  }
 0x3e9   : > { %v9577_v60 = vld [vmem:[%s11738_s4 + $0x3a0] sm:$0xff]  }
 0x3ea   : > { %3124 = vmatmul.mubr.bf16.gmra.mrb[88].mxu1 %v9549_v28 }
 0x3eb   : > { %8611 = vmatpush3.bf16.msra.mxu0 %v9537_v6  ;;  %7270 = vmatprep.mubr.msk.bf16.mxu1 %vm2166_vm0, %v9556_v36  ;;  %v9573_v36 = vld [vmem:[%s11738_s4 + $0x398] sm:$0xff]  }
 0x3ec   : > { %8612 = vmatprep.subr.bf16.mxu0 %v9538_v32 }
 0x3ed   : > { %v2917_v52 = vpop.f32.mrb[240].mxu1 }
 0x3ee   : > { %v2919_v49 = vpop.f32.mrb[241].mxu1 }
 0x3ef   : > { %8613 = vmatpush3.bf16.msra.mxu0 %v9538_v32  ;;  %v2920_v14 = vpop.f32.mrb[242].mxu1  ;;  %v9596_v49 = vld [vmem:[%s11737_s3 + $0x574] ss:$8 sps:$4 sm:$0xff]  }
 0x3f0   : > { %8614 = vmatprep.subr.bf16.mxu0 %v9542_v17  ;;  %v5129_v41 = vpack.c.bf16 %v2920_v14, %v2917_v52  ;;  %v2922_v40 = vpop.f32.mrb[243].mxu1  ;;  %v9589_v52 = vld [vmem:[%s11737_s3 + $0x560] ss:$8 sps:$4 sm:$0xff]  }
 0x3f1   : > { %v9578_v14 = vld [vmem:[%s11738_s4 + $0x3a8] sm:$0xff]   ;;  %v9582_v40 = vld [vmem:[%s11738_s4 + $0x3b0] sm:$0xff]  }
 0x3f2   : > { %3132 = vmatmul.mubr.bf16.gmra.mrb[92].mxu1 %v9554_v59 }
 0x3f3   : > { %8615 = vmatpush3.bf16.msra.mxu0 %v9542_v17  ;;  %7271 = vmatprep.mubr.msk.bf16.mxu1 %vm2166_vm0, %v9561_v18 }
 0x3f4   : > { %8616 = vmatprep.subr.bf16.mxu0 %v9543_v24 }
 0x3f5   : > { %v11215_v23 = vpop.f32.mrb[244].mxu1 }
 0x3f6   : > { %v2927_v55 = vpop.f32.mrb[245].mxu1 }
 0x3f7   : > { %8617 = vmatpush3.bf16.msra.mxu0 %v9543_v24  ;;  %v11220_v35 = vpop.f32.mrb[246].mxu1  ;;  %v9601_v55 = vld [vmem:[%s11737_s3 + $0x584] ss:$8 sps:$4 sm:$0xff]  }
 0x3f8   : > { %8626 = vmatprep.subr.bf16.mxu0 %v9547_v51  ;;  %v5130_v4 = vpack.c.bf16 %v11220_v35, %v11215_v23  ;;  %v2930_v20 = vpop.f32.mrb[247].mxu1  ;;  %v9594_v23 = vld [vmem:[%s11737_s3 + $0x570] ss:$8 sps:$4 sm:$0xff]  }
 0x3f9   : > { %v9587_v20 = vld [vmem:[%s11738_s4 + $0x3c0] sm:$0xff]  }
 0x3fa   : > { %8619 = vmatmul.mubr.bf16.vlgmr.msra.gmra.mrb[40].mxu0 %v4988_v22  ;;  %3140 = vmatmul.mubr.bf16.gmra.mrb[96].mxu1 %v9559_v44 }
 0x3fb   : > { %8627 = vmatpush3.bf16.msra.mxu0 %v9547_v51  ;;  %8622 = vmatprep.mubr.bf16.mxu0 %v4989_v37 }
 0x3fc   : > { %8628 = vmatprep.subr.bf16.mxu0 %v9548_v39  ;;  %7272 = vmatprep.mubr.msk.bf16.mxu1 %vm2166_vm0, %v9566_v54 }
 0x3fd   : > { %v2933_v2 = vpop.f32.mrb[248].mxu1 }
 0x3fe   : > { %v2935_v16 = vpop.f32.mrb[249].mxu1 }
 0x3ff   : > { %8629 = vmatpush3.bf16.msra.mxu0 %v9548_v39  ;;  %v2936_v26 = vpop.f32.mrb[250].mxu1  ;;  %v9583_v39 = vld [vmem:[%s11738_s4 + $0x3b8] sm:$0xff]  }
 0x400   : > { %8630 = vmatprep.subr.bf16.mxu0 %v9552_v30  ;;  %v5131_v9 = vpack.c.bf16 %v2936_v26, %v2933_v2  ;;  %v2938_v50 = vpop.f32.mrb[251].mxu1  ;;  %v9599_v2 = vld [vmem:[%s11737_s3 + $0x580] ss:$8 sps:$4 sm:$0xff]  }
 0x401   : > { %v9588_v26 = vld [vmem:[%s11738_s4 + $0x3c8] sm:$0xff]   ;;  %v9592_v50 = vld [vmem:[%s11738_s4 + $0x3d0] sm:$0xff]  }
 0x402   : > { %8623 = vmatmul.mubr.bf16.gmra.mrb[44].mxu0 %v4990_v5  ;;  %3148 = vmatmul.mubr.bf16.gmra.mrb[100].mxu1 %v9564_v31 }
 0x403   : > { %8631 = vmatpush3.bf16.msra.mxu0 %v9552_v30  ;;  %8642 = vmatprep.mubr.bf16.mxu0 %v5129_v41 }
 0x404   : > { %8632 = vmatprep.subr.bf16.mxu0 %v9553_v3  ;;  %7273 = vmatprep.mubr.msk.bf16.mxu1 %vm2166_vm0, %v9571_v47  ;;  %v9606_v47 = vld [vmem:[%s11737_s3 + $0x594] ss:$8 sps:$4 sm:$0xff]  }
 0x405   : > { %v2941_v57 = vpop.f32.mrb[252].mxu1 }
 0x406   : > { %v2943_v42 = vpop.f32.mrb[253].mxu1 }
 0x407   : > { %8633 = vmatpush3.bf16.msra.mxu0 %v9553_v3  ;;  %v2944_v58 = vpop.f32.mrb[254].mxu1 }
 0x408   : > { %8634 = vmatprep.subr.bf16.mxu0 %v9557_v46  ;;  %v5132_v63 = vpack.c.bf16 %v2944_v58, %v2941_v57  ;;  %v2946_v8 = vpop.f32.mrb[255].mxu1  ;;  %v9604_v57 = vld [vmem:[%s11737_s3 + $0x590] ss:$8 sps:$4 sm:$0xff]   ;;  %v9611_v58 = vld [vmem:[%s11737_s3 + $0x5a4] ss:$8 sps:$4 sm:$0xff]  }
 0x409   : > { %v9597_v8 = vld [vmem:[%s11738_s4 + $0x3e0] sm:$0xff]  }
 0x40a   : > { %3156 = vmatmul.mubr.bf16.gmra.mrb[104].mxu1 %v9569_v56 }
 0x40b   : > { %8635 = vmatpush3.bf16.msra.mxu0 %v9557_v46  ;;  %7274 = vmatprep.mubr.msk.bf16.mxu1 %vm2166_vm0, %v9576_v25  ;;  %v9593_v25 = vld [vmem:[%s11738_s4 + $0x3d8] sm:$0xff]  }
 0x40c   : > { %8636 = vmatprep.subr.bf16.mxu0 %v9558_v21 }
 0x40d   : > { %v2949_v45 = vpop.f32.mrb[0].mxu1 }
 0x40e   : > { %v2951_v62 = vpop.f32.mrb[1].mxu1 }
 0x40f   : > { %8637 = vmatpush3.bf16.msra.mxu0 %v9558_v21  ;;  %v2952_v10 = vpop.f32.mrb[2].mxu1  ;;  %v9616_v62 = vld [vmem:[%s11737_s3 + $0x5b4] ss:$8 sps:$4 sm:$0xff]  }
 0x410   : > { %8638 = vmatprep.subr.bf16.mxu0 %v9562_v13  ;;  %v5271_v22 = vpack.c.bf16 %v2952_v10, %v2949_v45  ;;  %v2954_v34 = vpop.f32.mrb[3].mxu1  ;;  %v9609_v45 = vld [vmem:[%s11737_s3 + $0x5a0] ss:$8 sps:$4 sm:$0xff]  }
 0x411   : > { %v9598_v10 = vld [vmem:[%s11738_s4 + $0x3e8] sm:$0xff]   ;;  %v9602_v34 = vld [vmem:[%s11738_s4 + $0x3f0] sm:$0xff]  }
 0x412   : > { %3164 = vmatmul.mubr.bf16.gmra.mrb[108].mxu1 %v9574_v29 }
 0x413   : > { %8639 = vmatpush3.bf16.msra.mxu0 %v9562_v13  ;;  %7275 = vmatprep.mubr.msk.bf16.mxu1 %vm2166_vm0, %v9581_v0 }
 0x414   : > { %8640 = vmatprep.subr.bf16.mxu0 %v9563_v48 }
 0x415   : > { %v11276_v15 = vpop.f32.mrb[4].mxu1 }
 0x416   : > { %v2959_v33 = vpop.f32.mrb[5].mxu1 }
 0x417   : > { %8641 = vmatpush3.bf16.msra.mxu0 %v9563_v48  ;;  %v11281_v38 = vpop.f32.mrb[6].mxu1  ;;  %v9621_v33 = vld [vmem:[%s11737_s3 + $0x5c4] ss:$8 sps:$4 sm:$0xff]  }
 0x418   : > { %8650 = vmatprep.subr.bf16.mxu0 %v9567_v61  ;;  %v5272_v53 = vpack.c.bf16 %v11281_v38, %v11276_v15  ;;  %v2962_v37 = vpop.f32.mrb[7].mxu1  ;;  %v9614_v15 = vld [vmem:[%s11737_s3 + $0x5b0] ss:$8 sps:$4 sm:$0xff]  }
 0x419   : > { %v9607_v37 = vld [vmem:[%s11738_s4 + $0x400] sm:$0xff]  }
 0x41a   : > { %8643 = vmatmul.mubr.bf16.vlgmr.msra.gmra.mrb[40].mxu0 %v5130_v4  ;;  %3172 = vmatmul.mubr.bf16.gmra.mrb[112].mxu1 %v9579_v19 }
 0x41b   : > { %8651 = vmatpush3.bf16.msra.mxu0 %v9567_v61  ;;  %8646 = vmatprep.mubr.bf16.mxu0 %v5131_v9 }
 0x41c   : > { %8652 = vmatprep.subr.bf16.mxu0 %v9568_v43  ;;  %7276 = vmatprep.mubr.msk.bf16.mxu1 %vm2166_vm0, %v9586_v1 }
 0x41d   : > { %v2965_v6 = vpop.f32.mrb[8].mxu1 }
 0x41e   : > { %v2967_v28 = vpop.f32.mrb[9].mxu1 }
 0x41f   : > { %8653 = vmatpush3.bf16.msra.mxu0 %v9568_v43  ;;  %v2968_v27 = vpop.f32.mrb[10].mxu1  ;;  %v9603_v43 = vld [vmem:[%s11738_s4 + $0x3f8] sm:$0xff]  }
 0x420   : > { %8654 = vmatprep.subr.bf16.mxu0 %v9572_v7  ;;  %v5273_v32 = vpack.c.bf16 %v2968_v27, %v2965_v6  ;;  %v2970_v5 = vpop.f32.mrb[11].mxu1  ;;  %v9619_v6 = vld [vmem:[%s11737_s3 + $0x5c0] ss:$8 sps:$4 sm:$0xff]  }
 0x421   : > { %v9608_v27 = vld [vmem:[%s11738_s4 + $0x408] sm:$0xff]   ;;  %v9612_v5 = vld [vmem:[%s11738_s4 + $0x410] sm:$0xff]  }
 0x422   : > { %8647 = vmatmul.mubr.bf16.gmra.mrb[44].mxu0 %v5132_v63  ;;  %3180 = vmatmul.mubr.bf16.gmra.mrb[116].mxu1 %v9584_v12 }
 0x423   : > { %8655 = vmatpush3.bf16.msra.mxu0 %v9572_v7  ;;  %8666 = vmatprep.mubr.bf16.mxu0 %v5271_v22 }
 0x424   : > { %8656 = vmatprep.subr.bf16.mxu0 %v9573_v36  ;;  %7277 = vmatprep.mubr.msk.bf16.mxu1 %vm2166_vm0, %v9591_v11  ;;  %v9626_v11 = vld [vmem:[%s11737_s3 + $0x5d4] ss:$8 sps:$4 sm:$0xff]  }
 0x425   : > { %v2973_v17 = vpop.f32.mrb[12].mxu1 }
 0x426   : > { %v2975_v59 = vpop.f32.mrb[13].mxu1 }
 0x427   : > { %8657 = vmatpush3.bf16.msra.mxu0 %v9573_v36  ;;  %v2976_v18 = vpop.f32.mrb[14].mxu1 }
 0x428   : > { %8658 = vmatprep.subr.bf16.mxu0 %v9577_v60  ;;  %v5274_v24 = vpack.c.bf16 %v2976_v18, %v2973_v17  ;;  %v2978_v41 = vpop.f32.mrb[15].mxu1  ;;  %v9624_v17 = vld [vmem:[%s11737_s3 + $0x5d0] ss:$8 sps:$4 sm:$0xff]   ;;  %v9631_v18 = vld [vmem:[%s11737_s3 + $0x5e4] ss:$8 sps:$4 sm:$0xff]  }
 0x429   : > { %v9617_v41 = vld [vmem:[%s11738_s4 + $0x420] sm:$0xff]  }
 0x42a   : > { %3188 = vmatmul.mubr.bf16.gmra.mrb[120].mxu1 %v9589_v52 }
 0x42b   : > { %8659 = vmatpush3.bf16.msra.mxu0 %v9577_v60  ;;  %7278 = vmatprep.mubr.msk.bf16.mxu1 %vm2166_vm0, %v9596_v49  ;;  %v9613_v49 = vld [vmem:[%s11738_s4 + $0x418] sm:$0xff]  }
 0x42c   : > { %8660 = vmatprep.subr.bf16.mxu0 %v9578_v14 }
 0x42d   : > { %v2981_v51 = vpop.f32.mrb[16].mxu1 }
 0x42e   : > { %v2983_v44 = vpop.f32.mrb[17].mxu1 }
 0x42f   : > { %8661 = vmatpush3.bf16.msra.mxu0 %v9578_v14  ;;  %v2984_v35 = vpop.f32.mrb[18].mxu1  ;;  %v9636_v44 = vld [vmem:[%s11737_s3 + $0x5f4] ss:$8 sps:$4 sm:$0xff]  }
 0x430   : > { %8662 = vmatprep.subr.bf16.mxu0 %v9582_v40  ;;  %v5413_v4 = vpack.c.bf16 %v2984_v35, %v2981_v51  ;;  %v2986_v54 = vpop.f32.mrb[19].mxu1  ;;  %v9629_v51 = vld [vmem:[%s11737_s3 + $0x5e0] ss:$8 sps:$4 sm:$0xff]  }
 0x431   : > { %v9618_v35 = vld [vmem:[%s11738_s4 + $0x428] sm:$0xff]   ;;  %v9622_v54 = vld [vmem:[%s11738_s4 + $0x430] sm:$0xff]  }
 0x432   : > { %3196 = vmatmul.mubr.bf16.gmra.mrb[124].mxu1 %v9594_v23 }
 0x433   : > { %8663 = vmatpush3.bf16.msra.mxu0 %v9582_v40  ;;  %7279 = vmatprep.mubr.msk.bf16.mxu1 %vm2166_vm0, %v9601_v55 }
 0x434   : > { %8664 = vmatprep.subr.bf16.mxu0 %v9583_v39 }
 0x435   : > { %v11337_v30 = vpop.f32.mrb[20].mxu1 }
 0x436   : > { %v2991_v31 = vpop.f32.mrb[21].mxu1 }
 0x437   : > { %8665 = vmatpush3.bf16.msra.mxu0 %v9583_v39  ;;  %v11342_v16 = vpop.f32.mrb[22].mxu1  ;;  %v9641_v31 = vld [vmem:[%s11737_s3 + $0x604] ss:$8 sps:$4 sm:$0xff]  }
 0x438   : > { %8674 = vmatprep.subr.bf16.mxu0 %v9587_v20  ;;  %v5414_v3 = vpack.c.bf16 %v11342_v16, %v11337_v30  ;;  %v2994_v9 = vpop.f32.mrb[23].mxu1  ;;  %v9634_v30 = vld [vmem:[%s11737_s3 + $0x5f0] ss:$8 sps:$4 sm:$0xff]  }
 0x439   : > { %v9627_v9 = vld [vmem:[%s11738_s4 + $0x440] sm:$0xff]  }
 0x43a   : > { %8667 = vmatmul.mubr.bf16.vlgmr.msra.gmra.mrb[40].mxu0 %v5272_v53  ;;  %3204 = vmatmul.mubr.bf16.gmra.mrb[128].mxu1 %v9599_v2 }
 0x43b   : > { %8675 = vmatpush3.bf16.msra.mxu0 %v9587_v20  ;;  %8670 = vmatprep.mubr.bf16.mxu0 %v5273_v32 }
 0x43c   : > { %8676 = vmatprep.subr.bf16.mxu0 %v9588_v26  ;;  %7280 = vmatprep.mubr.msk.bf16.mxu1 %vm2166_vm0, %v9606_v47 }
 0x43d   : > { %v2997_v46 = vpop.f32.mrb[24].mxu1 }
 0x43e   : > { %v2999_v56 = vpop.f32.mrb[25].mxu1 }
 0x43f   : > { %8677 = vmatpush3.bf16.msra.mxu0 %v9588_v26  ;;  %v3000_v42 = vpop.f32.mrb[26].mxu1  ;;  %v9623_v26 = vld [vmem:[%s11738_s4 + $0x438] sm:$0xff]  }
 0x440   : > { %8678 = vmatprep.subr.bf16.mxu0 %v9592_v50  ;;  %v5415_v21 = vpack.c.bf16 %v3000_v42, %v2997_v46  ;;  %v3002_v63 = vpop.f32.mrb[27].mxu1  ;;  %v9639_v46 = vld [vmem:[%s11737_s3 + $0x600] ss:$8 sps:$4 sm:$0xff]  }
 0x441   : > { %v9628_v42 = vld [vmem:[%s11738_s4 + $0x448] sm:$0xff]   ;;  %v9632_v63 = vld [vmem:[%s11738_s4 + $0x450] sm:$0xff]  }
 0x442   : > { %8671 = vmatmul.mubr.bf16.gmra.mrb[44].mxu0 %v5274_v24  ;;  %3212 = vmatmul.mubr.bf16.gmra.mrb[132].mxu1 %v9604_v57 }
 0x443   : > { %8679 = vmatpush3.bf16.msra.mxu0 %v9592_v50  ;;  %8690 = vmatprep.mubr.bf16.mxu0 %v5413_v4 }
 0x444   : > { %8680 = vmatprep.subr.bf16.mxu0 %v9593_v25  ;;  %7281 = vmatprep.mubr.msk.bf16.mxu1 %vm2166_vm0, %v9611_v58  ;;  %v9646_v58 = vld [vmem:[%s11737_s3 + $0x614] ss:$8 sps:$4 sm:$0xff]  }
 0x445   : > { %v3005_v13 = vpop.f32.mrb[28].mxu1 }
 0x446   : > { %v3007_v29 = vpop.f32.mrb[29].mxu1 }
 0x447   : > { %8681 = vmatpush3.bf16.msra.mxu0 %v9593_v25  ;;  %v3008_v0 = vpop.f32.mrb[30].mxu1 }
 0x448   : > { %8682 = vmatprep.subr.bf16.mxu0 %v9597_v8  ;;  %v5416_v48 = vpack.c.bf16 %v3008_v0, %v3005_v13  ;;  %v3010_v22 = vpop.f32.mrb[31].mxu1  ;;  %v9644_v13 = vld [vmem:[%s11737_s3 + $0x610] ss:$8 sps:$4 sm:$0xff]   ;;  %v9651_v0 = vld [vmem:[%s11737_s3 + $0x624] ss:$8 sps:$4 sm:$0xff]  }
 0x449   : > { %v9637_v22 = vld [vmem:[%s11738_s4 + $0x460] sm:$0xff]  }
 0x44a   : > { %3220 = vmatmul.mubr.bf16.gmra.mrb[136].mxu1 %v9609_v45 }
 0x44b   : > { %8683 = vmatpush3.bf16.msra.mxu0 %v9597_v8  ;;  %7282 = vmatprep.mubr.msk.bf16.mxu1 %vm2166_vm0, %v9616_v62  ;;  %v9633_v62 = vld [vmem:[%s11738_s4 + $0x458] sm:$0xff]  }
 0x44c   : > { %8684 = vmatprep.subr.bf16.mxu0 %v9598_v10 }
 0x44d   : > { %v3013_v61 = vpop.f32.mrb[32].mxu1 }
 0x44e   : > { %v3015_v19 = vpop.f32.mrb[33].mxu1 }
 0x44f   : > { %8685 = vmatpush3.bf16.msra.mxu0 %v9598_v10  ;;  %v3016_v38 = vpop.f32.mrb[34].mxu1  ;;  %v9656_v19 = vld [vmem:[%s11737_s3 + $0x634] ss:$8 sps:$4 sm:$0xff]  }
 0x450   : > { %8686 = vmatprep.subr.bf16.mxu0 %v9602_v34  ;;  %v5555_v53 = vpack.c.bf16 %v3016_v38, %v3013_v61  ;;  %v3018_v1 = vpop.f32.mrb[35].mxu1  ;;  %v9649_v61 = vld [vmem:[%s11737_s3 + $0x620] ss:$8 sps:$4 sm:$0xff]  }
 0x451   : > { %v9638_v38 = vld [vmem:[%s11738_s4 + $0x468] sm:$0xff]   ;;  %v9642_v1 = vld [vmem:[%s11738_s4 + $0x470] sm:$0xff]  }
 0x452   : > { %3228 = vmatmul.mubr.bf16.gmra.mrb[140].mxu1 %v9614_v15 }
 0x453   : > { %8687 = vmatpush3.bf16.msra.mxu0 %v9602_v34  ;;  %7283 = vmatprep.mubr.msk.bf16.mxu1 %vm2166_vm0, %v9621_v33 }
 0x454   : > { %8688 = vmatprep.subr.bf16.mxu0 %v9603_v43 }
 0x455   : > { %v11398_v7 = vpop.f32.mrb[36].mxu1 }
 0x456   : > { %v3023_v12 = vpop.f32.mrb[37].mxu1 }
 0x457   : > { %8689 = vmatpush3.bf16.msra.mxu0 %v9603_v43  ;;  %v11403_v28 = vpop.f32.mrb[38].mxu1 }
 0x458   : > { %8698 = vmatprep.subr.bf16.mxu0 %v9607_v37  ;;  %v5556_v36 = vpack.c.bf16 %v11403_v28, %v11398_v7  ;;  %v3026_v32 = vpop.f32.mrb[39].mxu1  ;;  %v9654_v7 = vld [vmem:[%s11737_s3 + $0x630] ss:$8 sps:$4 sm:$0xff]  }
 0x459   : > { %v9643_v28 = vld [vmem:[%s11738_s4 + $0x478] sm:$0xff]  }
 0x45a   : > { %8691 = vmatmul.mubr.bf16.vlgmr.msra.gmra.mrb[40].mxu0 %v5414_v3  ;;  %3236 = vmatmul.mubr.bf16.gmra.mrb[144].mxu1 %v9619_v6 }
 0x45b   : > { %8699 = vmatpush3.bf16.msra.mxu0 %v9607_v37  ;;  %8694 = vmatprep.mubr.bf16.mxu0 %v5415_v21 }
 0x45c   : > { %8700 = vmatprep.subr.bf16.mxu0 %v9608_v27  ;;  %7284 = vmatprep.mubr.msk.bf16.mxu1 %vm2166_vm0, %v9626_v11  ;;  %v9647_v11 = vld [vmem:[%s11738_s4 + $0x480] sm:$0xff]  }
 0x45d   : > { %v3029_v60 = vpop.f32.mrb[40].mxu1 }
 0x45e   : > { %v3031_v52 = vpop.f32.mrb[41].mxu1 }
 0x45f   : > { %8701 = vmatpush3.bf16.msra.mxu0 %v9608_v27  ;;  %v3032_v59 = vpop.f32.mrb[42].mxu1 }
 0x460   : > { %8702 = vmatprep.subr.bf16.mxu0 %v9612_v5  ;;  %v5557_v14 = vpack.c.bf16 %v3032_v59, %v3029_v60  ;;  %v3034_v24 = vpop.f32.mrb[43].mxu1 }
 0x462   : > { %8695 = vmatmul.mubr.bf16.gmra.mrb[44].mxu0 %v5416_v48  ;;  %3244 = vmatmul.mubr.bf16.gmra.mrb[148].mxu1 %v9624_v17  ;;  %v9648_v17 = vld [vmem:[%s11738_s4 + $0x488] sm:$0xff]  }
 0x463   : > { %8703 = vmatpush3.bf16.msra.mxu0 %v9612_v5  ;;  %8714 = vmatprep.mubr.bf16.mxu0 %v5555_v53 }
 0x464   : > { %8704 = vmatprep.subr.bf16.mxu0 %v9613_v49  ;;  %7285 = vmatprep.mubr.msk.bf16.mxu1 %vm2166_vm0, %v9631_v18 }
 0x465   : > { %v3037_v40 = vpop.f32.mrb[44].mxu1 }
 0x466   : > { %v3039_v23 = vpop.f32.mrb[45].mxu1 }
 0x467   : > { %8705 = vmatpush3.bf16.msra.mxu0 %v9613_v49  ;;  %v3040_v55 = vpop.f32.mrb[46].mxu1  ;;  %v9652_v49 = vld [vmem:[%s11738_s4 + $0x490] sm:$0xff]   ;;  %v9657_v23 = vld [vmem:[%s11738_s4 + $0x4a0] sm:$0xff]  }
 0x468   : > { %8706 = vmatprep.subr.bf16.mxu0 %v9617_v41  ;;  %v5558_v39 = vpack.c.bf16 %v3040_v55, %v3037_v40  ;;  %v3042_v4 = vpop.f32.mrb[47].mxu1 }
 0x46a   : > { %3252 = vmatmul.mubr.bf16.gmra.mrb[152].mxu1 %v9629_v51 }
 0x46b   : > { %8707 = vmatpush3.bf16.msra.mxu0 %v9617_v41  ;;  %7286 = vmatprep.mubr.msk.bf16.mxu1 %vm2166_vm0, %v9636_v44  ;;  %v9653_v41 = vld [vmem:[%s11738_s4 + $0x498] sm:$0xff]  }
 0x46c   : > { %8708 = vmatprep.subr.bf16.mxu0 %v9618_v35 }
 0x46d   : > { %v3045_v20 = vpop.f32.mrb[48].mxu1 }
 0x46e   : > { %v3047_v2 = vpop.f32.mrb[49].mxu1 }
 0x46f   : > { %8709 = vmatpush3.bf16.msra.mxu0 %v9618_v35  ;;  %v3048_v16 = vpop.f32.mrb[50].mxu1 }
 0x470   : > { %8710 = vmatprep.subr.bf16.mxu0 %v9622_v54  ;;  %v5697_v3 = vpack.c.bf16 %v3048_v16, %v3045_v20  ;;  %v3050_v47 = vpop.f32.mrb[51].mxu1  ;;  %v9659_v20 = vld [vmem:[%s11738_s4 + $0x4b0] sm:$0xff]   ;;  %v9660_v16 = vld [vmem:[%s11738_s4 + $0x4b8] sm:$0xff]  }
 0x471   : > { %v9661_v47 = vld [vmem:[%s11738_s4 + $0x4c0] sm:$0xff]  }
 0x472   : > { %3260 = vmatmul.mubr.bf16.gmra.mrb[156].mxu1 %v9634_v30 }
 0x473   : > { %8711 = vmatpush3.bf16.msra.mxu0 %v9622_v54  ;;  %7287 = vmatprep.mubr.msk.bf16.mxu1 %vm2166_vm0, %v9641_v31 }
 0x474   : > { %8712 = vmatprep.subr.bf16.mxu0 %v9623_v26 }
 0x475   : > { %v11459_v50 = vpop.f32.mrb[52].mxu1 }
 0x476   : > { %v3055_v57 = vpop.f32.mrb[53].mxu1 }
 0x477   : > { %8713 = vmatpush3.bf16.msra.mxu0 %v9623_v26  ;;  %v11464_v56 = vpop.f32.mrb[54].mxu1  ;;  %v9662_v57 = vld [vmem:[%s11738_s4 + $0x4c8] sm:$0xff]  }
 0x478   : > { %8722 = vmatprep.subr.bf16.mxu0 %v9627_v9  ;;  %v5698_v25 = vpack.c.bf16 %v11464_v56, %v11459_v50  ;;  %v3058_v21 = vpop.f32.mrb[55].mxu1 }
 0x47a   : > { %8715 = vmatmul.mubr.bf16.vlgmr.msra.gmra.mrb[40].mxu0 %v5556_v36  ;;  %3268 = vmatmul.mubr.bf16.gmra.mrb[160].mxu1 %v9639_v46 }
 0x47b   : > { %8723 = vmatpush3.bf16.msra.mxu0 %v9627_v9  ;;  %8718 = vmatprep.mubr.bf16.mxu0 %v5557_v14 }
 0x47c   : > { %8724 = vmatprep.subr.bf16.mxu0 %v9628_v42  ;;  %7288 = vmatprep.mubr.msk.bf16.mxu1 %vm2166_vm0, %v9646_v58 }
 0x47d   : > { %v3061_v8 = vpop.f32.mrb[56].mxu1 }
 0x47e   : > { %v3063_v45 = vpop.f32.mrb[57].mxu1 }
 0x47f   : > { %8725 = vmatpush3.bf16.msra.mxu0 %v9628_v42  ;;  %v3064_v29 = vpop.f32.mrb[58].mxu1 }
 0x480   : > { %8726 = vmatprep.subr.bf16.mxu0 %v9632_v63  ;;  %v5699_v10 = vpack.c.bf16 %v3064_v29, %v3061_v8  ;;  %v3066_v48 = vpop.f32.mrb[59].mxu1  ;;  %v9664_v8 = vld [vmem:[%s11738_s4 + $0x4d8] sm:$0xff]   ;;  %v9665_v29 = vld [vmem:[%s11738_s4 + $0x4e0] sm:$0xff]  }
 0x481   : > { %v9666_v48 = vld [vmem:[%s11738_s4 + $0x4e8] sm:$0xff]  }
 0x482   : > { %8719 = vmatmul.mubr.bf16.gmra.mrb[44].mxu0 %v5558_v39  ;;  %3276 = vmatmul.mubr.bf16.gmra.mrb[164].mxu1 %v9644_v13  ;;  %v9658_v39 = vld [vmem:[%s11738_s4 + $0x4a8] sm:$0xff]  }
 0x483   : > { %8727 = vmatpush3.bf16.msra.mxu0 %v9632_v63  ;;  %8738 = vmatprep.mubr.bf16.mxu0 %v5697_v3 }
 0x484   : > { %8728 = vmatprep.subr.bf16.mxu0 %v9633_v62  ;;  %7289 = vmatprep.mubr.msk.bf16.mxu1 %vm2166_vm0, %v9651_v0 }
 0x485   : > { %v3069_v34 = vpop.f32.mrb[60].mxu1 }
 0x486   : > { %v3071_v15 = vpop.f32.mrb[61].mxu1 }
 0x487   : > { %8729 = vmatpush3.bf16.msra.mxu0 %v9633_v62  ;;  %v3072_v33 = vpop.f32.mrb[62].mxu1 }
 0x488   : > { %8730 = vmatprep.subr.bf16.mxu0 %v9637_v22  ;;  %v5700_v43 = vpack.c.bf16 %v3072_v33, %v3069_v34  ;;  %v3074_v53 = vpop.f32.mrb[63].mxu1 }
 0x48a   : > { %3284 = vmatmul.mubr.bf16.gmra.mrb[168].mxu1 %v9649_v61  ;;  %v9667_v61 = vld [vmem:[%s11738_s4 + $0x4f0] sm:$0xff]  }
 0x48b   : > { %8731 = vmatpush3.bf16.msra.mxu0 %v9637_v22  ;;  %7290 = vmatprep.mubr.msk.bf16.mxu1 %vm2166_vm0, %v9656_v19 }
 0x48c   : > { %8732 = vmatprep.subr.bf16.mxu0 %v9638_v38 }
 0x48d   : > { %v3077_v37 = vpop.f32.mrb[64].mxu1 }
 0x48e   : > { %v3079_v6 = vpop.f32.mrb[65].mxu1 }
 0x48f   : > { %8733 = vmatpush3.bf16.msra.mxu0 %v9638_v38  ;;  %v3080_v12 = vpop.f32.mrb[66].mxu1  ;;  %v9668_v38 = vld [vmem:[%s11738_s4 + $0x4f8] sm:$0xff]  }
 0x490   : > { %8734 = vmatprep.subr.bf16.mxu0 %v9642_v1  ;;  %v5839_v27 = vpack.c.bf16 %v3080_v12, %v3077_v37  ;;  %v3082_v36 = vpop.f32.mrb[67].mxu1  ;;  %v9670_v12 = vld [vmem:[%s11738_s4 + $0x508] sm:$0xff]  }
 0x491   : > { %v9671_v36 = vld [vmem:[%s11738_s4 + $0x510] sm:$0xff]  }
 0x492   : > { %3292 = vmatmul.mubr.bf16.gmra.mrb[172].mxu1 %v9654_v7 }
 0x493   : > { %8735 = vmatpush3.bf16.msra.mxu0 %v9642_v1  ;;  %v9669_v1 = vld [vmem:[%s11738_s4 + $0x500] sm:$0xff]  }
 0x494   : > { %8736 = vmatprep.subr.bf16.mxu0 %v9643_v28 }
 0x495   : > { %v3085_v32 = vpop.f32.mrb[68].mxu1 }
 0x496   : > { %v3087_v5 = vpop.f32.mrb[69].mxu1 }
 0x497   : > { %8737 = vmatpush3.bf16.msra.mxu0 %v9643_v28  ;;  %v3088_v60 = vpop.f32.mrb[70].mxu1 }
 0x498   : > { %8746 = vmatprep.subr.bf16.mxu0 %v9647_v11  ;;  %v5840_v52 = vpack.c.bf16 %v3088_v60, %v3085_v32  ;;  %v3090_v59 = vpop.f32.mrb[71].mxu1  ;;  %v9672_v60 = vld [vmem:[%s11738_s4 + $0x518] sm:$0xff]  }
 0x499   : > { %v9673_v59 = vld [vmem:[%s11738_s4 + $0x520] sm:$0xff]  }
 0x49a   : > { %8739 = vmatmul.mubr.bf16.vlgmr.msra.gmra.mrb[40].mxu0 %v5698_v25  ;;  %v9663_v25 = vld [vmem:[%s11738_s4 + $0x4d0] sm:$0xff]  }
 0x49b   : > { %8747 = vmatpush3.bf16.msra.mxu0 %v9647_v11  ;;  %8742 = vmatprep.mubr.bf16.mxu0 %v5699_v10 }
 0x49c   : > { %8748 = vmatprep.subr.bf16.mxu0 %v9648_v17 }
 0x49d   : > { %v3093_v18 = vpop.f32.mrb[72].mxu1 }
 0x49e   : > { %v3095_v14 = vpop.f32.mrb[73].mxu1 }
 0x49f   : > { %8749 = vmatpush3.bf16.msra.mxu0 %v9648_v17  ;;  %v3096_v24 = vpop.f32.mrb[74].mxu1 }
 0x4a0   : > { %8750 = vmatprep.subr.bf16.mxu0 %v9652_v49  ;;  %v5841_v40 = vpack.c.bf16 %v3096_v24, %v3093_v18  ;;  %v3098_v51 = vpop.f32.mrb[75].mxu1  ;;  %v9674_v24 = vld [vmem:[%s11738_s4 + $0x528] sm:$0xff]  }
 0x4a1   : > { %v9675_v51 = vld [vmem:[%s11738_s4 + $0x530] sm:$0xff]  }
 0x4a2   : > { %8743 = vmatmul.mubr.bf16.gmra.mrb[44].mxu0 %v5700_v43 }
 0x4a3   : > { %8751 = vmatpush3.bf16.msra.mxu0 %v9652_v49  ;;  %8762 = vmatprep.mubr.bf16.mxu0 %v5839_v27 }
 0x4a4   : > { %8752 = vmatprep.subr.bf16.mxu0 %v9653_v41 }
 0x4a5   : > { %v3101_v44 = vpop.f32.mrb[76].mxu1 }
 0x4a6   : > { %v3103_v55 = vpop.f32.mrb[77].mxu1 }
 0x4a7   : > { %8753 = vmatpush3.bf16.msra.mxu0 %v9653_v41  ;;  %v3104_v35 = vpop.f32.mrb[78].mxu1 }
 0x4a8   : > { %8754 = vmatprep.subr.bf16.mxu0 %v9657_v23  ;;  %v5842_v4 = vpack.c.bf16 %v3104_v35, %v3101_v44  ;;  %v3106_v54 = vpop.f32.mrb[79].mxu1  ;;  %v9676_v35 = vld [vmem:[%s11738_s4 + $0x538] sm:$0xff]  }
 0x4a9   : > { %v9677_v54 = vld [vmem:[%s11738_s4 + $0x540] sm:$0xff]  }
 0x4ab   : > { %8755 = vmatpush3.bf16.msra.mxu0 %v9657_v23 }
 0x4ac   : > { %8756 = vmatprep.subr.bf16.mxu0 %v9658_v39 }
 0x4ad   : > { %v3109_v30 = vpop.f32.mrb[80].mxu1 }
 0x4ae   : > { %v3111_v2 = vpop.f32.mrb[81].mxu1 }
 0x4af   : > { %8757 = vmatpush3.bf16.msra.mxu0 %v9658_v39  ;;  %v3112_v31 = vpop.f32.mrb[82].mxu1 }
 0x4b0   : > { %8758 = vmatprep.subr.bf16.mxu0 %v9659_v20  ;;  %v5981_v26 = vpack.c.bf16 %v3112_v31, %v3109_v30  ;;  %v3114_v3 = vpop.f32.mrb[83].mxu1  ;;  %v9678_v31 = vld [vmem:[%s11738_s4 + $0x548] sm:$0xff]  }
 0x4b1   : > { %v9679_v3 = vld [vmem:[%s11738_s4 + $0x550] sm:$0xff]  }
 0x4b3   : > { %8759 = vmatpush3.bf16.msra.mxu0 %v9659_v20 }
 0x4b4   : > { %8760 = vmatprep.subr.bf16.mxu0 %v9660_v16 }
 0x4b5   : > { %v3117_v9 = vpop.f32.mrb[84].mxu1 }
 0x4b6   : > { %v3119_v50 = vpop.f32.mrb[85].mxu1 }
 0x4b7   : > { %8761 = vmatpush3.bf16.msra.mxu0 %v9660_v16  ;;  %v3120_v46 = vpop.f32.mrb[86].mxu1 }
 0x4b8   : > { %8770 = vmatprep.subr.bf16.mxu0 %v9661_v47  ;;  %v5982_v56 = vpack.c.bf16 %v3120_v46, %v3117_v9  ;;  %v3122_v42 = vpop.f32.mrb[87].mxu1  ;;  %v9680_v46 = vld [vmem:[%s11738_s4 + $0x558] sm:$0xff]  }
 0x4b9   : > { %v9681_v42 = vld [vmem:[%s11738_s4 + $0x560] sm:$0xff]  }
 0x4ba   : > { %8763 = vmatmul.mubr.bf16.vlgmr.msra.gmra.mrb[40].mxu0 %v5840_v52 }
 0x4bb   : > { %8771 = vmatpush3.bf16.msra.mxu0 %v9661_v47  ;;  %8766 = vmatprep.mubr.bf16.mxu0 %v5841_v40 }
 0x4bc   : > { %8772 = vmatprep.subr.bf16.mxu0 %v9662_v57 }
 0x4bd   : > { %v3125_v58 = vpop.f32.mrb[88].mxu1 }
 0x4be   : > { %v3127_v21 = vpop.f32.mrb[89].mxu1 }
 0x4bf   : > { %8773 = vmatpush3.bf16.msra.mxu0 %v9662_v57  ;;  %v3128_v63 = vpop.f32.mrb[90].mxu1 }
 0x4c0   : > { %8774 = vmatprep.subr.bf16.mxu0 %v9663_v25  ;;  %v5983_v13 = vpack.c.bf16 %v3128_v63, %v3125_v58  ;;  %v3130_v45 = vpop.f32.mrb[91].mxu1  ;;  %v9682_v63 = vld [vmem:[%s11738_s4 + $0x568] sm:$0xff]  }
 0x4c1   : > { %v9683_v45 = vld [vmem:[%s11738_s4 + $0x570] sm:$0xff]  }
 0x4c2   : > { %8767 = vmatmul.mubr.bf16.gmra.mrb[44].mxu0 %v5842_v4 }
 0x4c3   : > { %8775 = vmatpush3.bf16.msra.mxu0 %v9663_v25  ;;  %8786 = vmatprep.mubr.bf16.mxu0 %v5981_v26 }
 0x4c4   : > { %8776 = vmatprep.subr.bf16.mxu0 %v9664_v8 }
 0x4c5   : > { %v3133_v62 = vpop.f32.mrb[92].mxu1 }
 0x4c6   : > { %v3135_v0 = vpop.f32.mrb[93].mxu1 }
 0x4c7   : > { %8777 = vmatpush3.bf16.msra.mxu0 %v9664_v8  ;;  %v3136_v10 = vpop.f32.mrb[94].mxu1 }
 0x4c8   : > { %8778 = vmatprep.subr.bf16.mxu0 %v9665_v29  ;;  %v5984_v22 = vpack.c.bf16 %v3136_v10, %v3133_v62  ;;  %v3138_v34 = vpop.f32.mrb[95].mxu1  ;;  %v9684_v10 = vld [vmem:[%s11738_s4 + $0x578] sm:$0xff]  }
 0x4c9   : > { %v9685_v34 = vld [vmem:[%s11738_s4 + $0x580] sm:$0xff]  }
 0x4cb   : > { %8779 = vmatpush3.bf16.msra.mxu0 %v9665_v29 }
 0x4cc   : > { %8780 = vmatprep.subr.bf16.mxu0 %v9666_v48 }
 0x4cd   : > { %v3141_v15 = vpop.f32.mrb[96].mxu1 }
 0x4ce   : > { %v3143_v19 = vpop.f32.mrb[97].mxu1 }
 0x4cf   : > { %8781 = vmatpush3.bf16.msra.mxu0 %v9666_v48  ;;  %v3144_v33 = vpop.f32.mrb[98].mxu1 }
 0x4d0   : > { %8782 = vmatprep.subr.bf16.mxu0 %v9667_v61  ;;  %v6123_v43 = vpack.c.bf16 %v3144_v33, %v3141_v15  ;;  %v3146_v53 = vpop.f32.mrb[99].mxu1  ;;  %v9686_v33 = vld [vmem:[%s11738_s4 + $0x588] sm:$0xff]  }
 0x4d1   : > { %v9687_v53 = vld [vmem:[%s11738_s4 + $0x590] sm:$0xff]  }
 0x4d3   : > { %8783 = vmatpush3.bf16.msra.mxu0 %v9667_v61 }
 0x4d4   : > { %8784 = vmatprep.subr.bf16.mxu0 %v9668_v38 }
 0x4d5   : > { %v3149_v37 = vpop.f32.mrb[100].mxu1 }
 0x4d6   : > { %v3151_v7 = vpop.f32.mrb[101].mxu1 }
 0x4d7   : > { %8785 = vmatpush3.bf16.msra.mxu0 %v9668_v38  ;;  %v3152_v6 = vpop.f32.mrb[102].mxu1 }
 0x4d8   : > { %8794 = vmatprep.subr.bf16.mxu0 %v9669_v1  ;;  %v6124_v28 = vpack.c.bf16 %v3152_v6, %v3149_v37  ;;  %v3154_v27 = vpop.f32.mrb[103].mxu1  ;;  %v9688_v6 = vld [vmem:[%s11738_s4 + $0x598] sm:$0xff]  }
 0x4d9   : > { %v9689_v27 = vld [vmem:[%s11738_s4 + $0x5a0] sm:$0xff]  }
 0x4da   : > { %8787 = vmatmul.mubr.bf16.vlgmr.msra.gmra.mrb[40].mxu0 %v5982_v56 }
 0x4db   : > { %8795 = vmatpush3.bf16.msra.mxu0 %v9669_v1  ;;  %8790 = vmatprep.mubr.bf16.mxu0 %v5983_v13 }
 0x4dc   : > { %8796 = vmatprep.subr.bf16.mxu0 %v9670_v12 }
 0x4dd   : > { %v3157_v11 = vpop.f32.mrb[104].mxu1 }
 0x4de   : > { %v3159_v32 = vpop.f32.mrb[105].mxu1 }
 0x4df   : > { %8797 = vmatpush3.bf16.msra.mxu0 %v9670_v12  ;;  %v3160_v5 = vpop.f32.mrb[106].mxu1 }
 0x4e0   : > { %8798 = vmatprep.subr.bf16.mxu0 %v9671_v36  ;;  %v6125_v17 = vpack.c.bf16 %v3160_v5, %v3157_v11  ;;  %v3162_v52 = vpop.f32.mrb[107].mxu1  ;;  %v9690_v5 = vld [vmem:[%s11738_s4 + $0x5a8] sm:$0xff]  }
 0x4e1   : > { %v9691_v52 = vld [vmem:[%s11738_s4 + $0x5b0] sm:$0xff]  }
 0x4e2   : > { %8791 = vmatmul.mubr.bf16.gmra.mrb[44].mxu0 %v5984_v22 }
 0x4e3   : > { %8799 = vmatpush3.bf16.msra.mxu0 %v9671_v36  ;;  %8810 = vmatprep.mubr.bf16.mxu0 %v6123_v43 }
 0x4e4   : > { %8800 = vmatprep.subr.bf16.mxu0 %v9672_v60 }
 0x4e5   : > { %v3165_v49 = vpop.f32.mrb[108].mxu1 }
 0x4e6   : > { %v3167_v18 = vpop.f32.mrb[109].mxu1 }
 0x4e7   : > { %8801 = vmatpush3.bf16.msra.mxu0 %v9672_v60  ;;  %v3168_v14 = vpop.f32.mrb[110].mxu1 }
 0x4e8   : > { %8802 = vmatprep.subr.bf16.mxu0 %v9673_v59  ;;  %v6126_v41 = vpack.c.bf16 %v3168_v14, %v3165_v49  ;;  %v3170_v40 = vpop.f32.mrb[111].mxu1  ;;  %v9692_v14 = vld [vmem:[%s11738_s4 + $0x5b8] sm:$0xff]  }
 0x4e9   : > { %v9693_v40 = vld [vmem:[%s11738_s4 + $0x5c0] sm:$0xff]  }
 0x4eb   : > { %8803 = vmatpush3.bf16.msra.mxu0 %v9673_v59 }
 0x4ec   : > { %8804 = vmatprep.subr.bf16.mxu0 %v9674_v24 }
 0x4ed   : > { %v3173_v23 = vpop.f32.mrb[112].mxu1 }
 0x4ee   : > { %v3175_v44 = vpop.f32.mrb[113].mxu1 }
 0x4ef   : > { %8805 = vmatpush3.bf16.msra.mxu0 %v9674_v24  ;;  %v3176_v55 = vpop.f32.mrb[114].mxu1 }
 0x4f0   : > { %8806 = vmatprep.subr.bf16.mxu0 %v9675_v51  ;;  %v6265_v39 = vpack.c.bf16 %v3176_v55, %v3173_v23  ;;  %v3178_v4 = vpop.f32.mrb[115].mxu1  ;;  %v9694_v55 = vld [vmem:[%s11738_s4 + $0x5c8] sm:$0xff]  }
 0x4f1   : > { %v9695_v4 = vld [vmem:[%s11738_s4 + $0x5d0] sm:$0xff]  }
 0x4f3   : > { %8807 = vmatpush3.bf16.msra.mxu0 %v9675_v51 }
 0x4f4   : > { %8808 = vmatprep.subr.bf16.mxu0 %v9676_v35 }
 0x4f5   : > { %v3181_v20 = vpop.f32.mrb[116].mxu1 }
 0x4f6   : > { %v3183_v30 = vpop.f32.mrb[117].mxu1 }
 0x4f7   : > { %8809 = vmatpush3.bf16.msra.mxu0 %v9676_v35  ;;  %v3184_v2 = vpop.f32.mrb[118].mxu1 }
 0x4f8   : > { %8818 = vmatprep.subr.bf16.mxu0 %v9677_v54  ;;  %v6266_v16 = vpack.c.bf16 %v3184_v2, %v3181_v20  ;;  %v3186_v26 = vpop.f32.mrb[119].mxu1  ;;  %v9696_v2 = vld [vmem:[%s11738_s4 + $0x5d8] sm:$0xff]  }
 0x4f9   : > { %v9697_v26 = vld [vmem:[%s11738_s4 + $0x5e0] sm:$0xff]  }
 0x4fa   : > { %8811 = vmatmul.mubr.bf16.vlgmr.msra.gmra.mrb[40].mxu0 %v6124_v28 }
 0x4fb   : > { %8819 = vmatpush3.bf16.msra.mxu0 %v9677_v54  ;;  %8814 = vmatprep.mubr.bf16.mxu0 %v6125_v17 }
 0x4fc   : > { %8820 = vmatprep.subr.bf16.mxu0 %v9678_v31 }
 0x4fd   : > { %v3189_v47 = vpop.f32.mrb[120].mxu1 }
 0x4fe   : > { %v3191_v9 = vpop.f32.mrb[121].mxu1 }
 0x4ff   : > { %8821 = vmatpush3.bf16.msra.mxu0 %v9678_v31  ;;  %v3192_v50 = vpop.f32.mrb[122].mxu1 }
 0x500   : > { %8822 = vmatprep.subr.bf16.mxu0 %v9679_v3  ;;  %v6267_v57 = vpack.c.bf16 %v3192_v50, %v3189_v47  ;;  %v3194_v56 = vpop.f32.mrb[123].mxu1  ;;  %v9698_v50 = vld [vmem:[%s11738_s4 + $0x5e8] sm:$0xff]  }
 0x501   : > { %v9699_v56 = vld [vmem:[%s11738_s4 + $0x5f0] sm:$0xff]  }
 0x502   : > { %8815 = vmatmul.mubr.bf16.gmra.mrb[44].mxu0 %v6126_v41 }
 0x503   : > { %8823 = vmatpush3.bf16.msra.mxu0 %v9679_v3  ;;  %8834 = vmatprep.mubr.bf16.mxu0 %v6265_v39 }
 0x504   : > { %8824 = vmatprep.subr.bf16.mxu0 %v9680_v46 }
 0x505   : > { %v3197_v25 = vpop.f32.mrb[124].mxu1 }
 0x506   : > { %v3199_v58 = vpop.f32.mrb[125].mxu1 }
 0x507   : > { %8825 = vmatpush3.bf16.msra.mxu0 %v9680_v46  ;;  %v3200_v21 = vpop.f32.mrb[126].mxu1 }
 0x508   : > { %8826 = vmatprep.subr.bf16.mxu0 %v9681_v42  ;;  %v6268_v8 = vpack.c.bf16 %v3200_v21, %v3197_v25  ;;  %v3202_v13 = vpop.f32.mrb[127].mxu1  ;;  %v9700_v21 = vld [vmem:[%s11738_s4 + $0x5f8] sm:$0xff]  }
 0x509   : > { %v9701_v13 = vld [vmem:[%s11738_s4 + $0x600] sm:$0xff]  }
 0x50b   : > { %8827 = vmatpush3.bf16.msra.mxu0 %v9681_v42 }
 0x50c   : > { %8828 = vmatprep.subr.bf16.mxu0 %v9682_v63 }
 0x50d   : > { %v3205_v29 = vpop.f32.mrb[128].mxu1 }
 0x50e   : > { %v3207_v62 = vpop.f32.mrb[129].mxu1 }
 0x50f   : > { %8829 = vmatpush3.bf16.msra.mxu0 %v9682_v63  ;;  %v3208_v0 = vpop.f32.mrb[130].mxu1 }
 0x510   : > { %8830 = vmatprep.subr.bf16.mxu0 %v9683_v45  ;;  %v6407_v48 = vpack.c.bf16 %v3208_v0, %v3205_v29  ;;  %v3210_v22 = vpop.f32.mrb[131].mxu1  ;;  %v9702_v0 = vld [vmem:[%s11738_s4 + $0x608] sm:$0xff]  }
 0x511   : > { %v9703_v22 = vld [vmem:[%s11738_s4 + $0x610] sm:$0xff]  }
 0x513   : > { %8831 = vmatpush3.bf16.msra.mxu0 %v9683_v45 }
 0x514   : > { %8832 = vmatprep.subr.bf16.mxu0 %v9684_v10 }
 0x515   : > { %v3213_v61 = vpop.f32.mrb[132].mxu1 }
 0x516   : > { %v3215_v15 = vpop.f32.mrb[133].mxu1 }
 0x517   : > { %8833 = vmatpush3.bf16.msra.mxu0 %v9684_v10  ;;  %v3216_v19 = vpop.f32.mrb[134].mxu1 }
 0x518   : > { %8842 = vmatprep.subr.bf16.mxu0 %v9685_v34  ;;  %v6408_v38 = vpack.c.bf16 %v3216_v19, %v3213_v61  ;;  %v3218_v43 = vpop.f32.mrb[135].mxu1  ;;  %v9704_v19 = vld [vmem:[%s11738_s4 + $0x618] sm:$0xff]  }
 0x519   : > { %v9705_v43 = vld [vmem:[%s11738_s4 + $0x620] sm:$0xff]  }
 0x51a   : > { %8835 = vmatmul.mubr.bf16.vlgmr.msra.gmra.mrb[40].mxu0 %v6266_v16 }
 0x51b   : > { %8843 = vmatpush3.bf16.msra.mxu0 %v9685_v34  ;;  %8838 = vmatprep.mubr.bf16.mxu0 %v6267_v57 }
 0x51c   : > { %8844 = vmatprep.subr.bf16.mxu0 %v9686_v33 }
 0x51d   : > { %v3221_v1 = vpop.f32.mrb[136].mxu1 }
 0x51e   : > { %v3223_v37 = vpop.f32.mrb[137].mxu1 }
 0x51f   : > { %8845 = vmatpush3.bf16.msra.mxu0 %v9686_v33  ;;  %v3224_v7 = vpop.f32.mrb[138].mxu1 }
 0x520   : > { %8846 = vmatprep.subr.bf16.mxu0 %v9687_v53  ;;  %v6409_v12 = vpack.c.bf16 %v3224_v7, %v3221_v1  ;;  %v3226_v28 = vpop.f32.mrb[139].mxu1  ;;  %v9706_v7 = vld [vmem:[%s11738_s4 + $0x628] sm:$0xff]  }
 0x521   : > { %v9707_v28 = vld [vmem:[%s11738_s4 + $0x630] sm:$0xff]  }
 0x522   : > { %8839 = vmatmul.mubr.bf16.gmra.mrb[44].mxu0 %v6268_v8 }
 0x523   : > { %8847 = vmatpush3.bf16.msra.mxu0 %v9687_v53  ;;  %8858 = vmatprep.mubr.bf16.mxu0 %v6407_v48 }
 0x524   : > { %8848 = vmatprep.subr.bf16.mxu0 %v9688_v6 }
 0x525   : > { %v3229_v36 = vpop.f32.mrb[140].mxu1 }
 0x526   : > { %v3231_v11 = vpop.f32.mrb[141].mxu1 }
 0x527   : > { %8849 = vmatpush3.bf16.msra.mxu0 %v9688_v6  ;;  %v3232_v32 = vpop.f32.mrb[142].mxu1 }
 0x528   : > { %8850 = vmatprep.subr.bf16.mxu0 %v9689_v27  ;;  %v6410_v60 = vpack.c.bf16 %v3232_v32, %v3229_v36  ;;  %v3234_v17 = vpop.f32.mrb[143].mxu1  ;;  %v7875_v36 = vld [vmem:[%s11739_s5] ss:$0 sm:$0xff] }
 0x52b   : > { %8851 = vmatpush3.bf16.msra.mxu0 %v9689_v27  ;;  %v9708_v27 = vld [vmem:[%s11738_s4 + $0x638] sm:$0xff]  }
 0x52c   : > { %8852 = vmatprep.subr.bf16.mxu0 %v9690_v5 }
 0x52d   : > { %v3237_v59 = vpop.f32.mrb[144].mxu1 }
 0x52e   : > { %v3239_v49 = vpop.f32.mrb[145].mxu1 }
 0x52f   : > { %8853 = vmatpush3.bf16.msra.mxu0 %v9690_v5  ;;  %v3240_v18 = vpop.f32.mrb[146].mxu1 }
 0x530   : > { %8854 = vmatprep.subr.bf16.mxu0 %v9691_v52  ;;  %v6549_v24 = vpack.c.bf16 %v3240_v18, %v3237_v59  ;;  %v3242_v41 = vpop.f32.mrb[147].mxu1 }
 0x533   : > { %8855 = vmatpush3.bf16.msra.mxu0 %v9691_v52 }
 0x534   : > { %8856 = vmatprep.subr.bf16.mxu0 %v9692_v14 }
 0x535   : > { %v3245_v51 = vpop.f32.mrb[148].mxu1 }
 0x536   : > { %v3247_v23 = vpop.f32.mrb[149].mxu1 }
 0x537   : > { %8857 = vmatpush3.bf16.msra.mxu0 %v9692_v14  ;;  %v3248_v44 = vpop.f32.mrb[150].mxu1 }
 0x538   : > { %8866 = vmatprep.subr.bf16.mxu0 %v9693_v40  ;;  %v6550_v35 = vpack.c.bf16 %v3248_v44, %v3245_v51  ;;  %v3250_v39 = vpop.f32.mrb[151].mxu1 }
 0x53a   : > { %8859 = vmatmul.mubr.bf16.vlgmr.msra.gmra.mrb[40].mxu0 %v6408_v38 }
 0x53b   : > { %8867 = vmatpush3.bf16.msra.mxu0 %v9693_v40  ;;  %8862 = vmatprep.mubr.bf16.mxu0 %v6409_v12 }
 0x53c   : > { %8868 = vmatprep.subr.bf16.mxu0 %v9694_v55 }
 0x53d   : > { %v3253_v54 = vpop.f32.mrb[152].mxu1 }
 0x53e   : > { %v3255_v20 = vpop.f32.mrb[153].mxu1 }
 0x53f   : > { %8869 = vmatpush3.bf16.msra.mxu0 %v9694_v55  ;;  %v3256_v30 = vpop.f32.mrb[154].mxu1 }
 0x540   : > { %8870 = vmatprep.subr.bf16.mxu0 %v9695_v4  ;;  %v6551_v31 = vpack.c.bf16 %v3256_v30, %v3253_v54  ;;  %v3258_v16 = vpop.f32.mrb[155].mxu1 }
 0x542   : > { %8863 = vmatmul.mubr.bf16.gmra.mrb[44].mxu0 %v6410_v60 }
 0x543   : > { %8871 = vmatpush3.bf16.msra.mxu0 %v9695_v4  ;;  %8882 = vmatprep.mubr.bf16.mxu0 %v6549_v24 }
 0x544   : > { %8872 = vmatprep.subr.bf16.mxu0 %v9696_v2 }
 0x545   : > { %v3261_v3 = vpop.f32.mrb[156].mxu1 }
 0x546   : > { %v3263_v47 = vpop.f32.mrb[157].mxu1 }
 0x547   : > { %8873 = vmatpush3.bf16.msra.mxu0 %v9696_v2  ;;  %v3264_v9 = vpop.f32.mrb[158].mxu1 }
 0x548   : > { %8874 = vmatprep.subr.bf16.mxu0 %v9697_v26  ;;  %v6552_v46 = vpack.c.bf16 %v3264_v9, %v3261_v3  ;;  %v3266_v57 = vpop.f32.mrb[159].mxu1 }
 0x54b   : > { %8875 = vmatpush3.bf16.msra.mxu0 %v9697_v26 }
 0x54c   : > { %8876 = vmatprep.subr.bf16.mxu0 %v9698_v50 }
 0x54d   : > { %v3269_v42 = vpop.f32.mrb[160].mxu1 }
 0x54e   : > { %v3271_v25 = vpop.f32.mrb[161].mxu1 }
 0x54f   : > { %8877 = vmatpush3.bf16.msra.mxu0 %v9698_v50  ;;  %v3272_v58 = vpop.f32.mrb[162].mxu1 }
 0x550   : > { %8878 = vmatprep.subr.bf16.mxu0 %v9699_v56  ;;  %v6691_v63 = vpack.c.bf16 %v3272_v58, %v3269_v42  ;;  %v3274_v8 = vpop.f32.mrb[163].mxu1 }
 0x553   : > { %8879 = vmatpush3.bf16.msra.mxu0 %v9699_v56 }
 0x554   : > { %8880 = vmatprep.subr.bf16.mxu0 %v9700_v21 }
 0x555   : > { %v3277_v45 = vpop.f32.mrb[164].mxu1 }
 0x556   : > { %v3279_v29 = vpop.f32.mrb[165].mxu1 }
 0x557   : > { %8881 = vmatpush3.bf16.msra.mxu0 %v9700_v21  ;;  %v3280_v62 = vpop.f32.mrb[166].mxu1 }
 0x558   : > { %8890 = vmatprep.subr.bf16.mxu0 %v9701_v13  ;;  %v6692_v10 = vpack.c.bf16 %v3280_v62, %v3277_v45  ;;  %v3282_v48 = vpop.f32.mrb[167].mxu1 }
 0x55a   : > { %8883 = vmatmul.mubr.bf16.vlgmr.msra.gmra.mrb[40].mxu0 %v6550_v35 }
 0x55b   : > { %8891 = vmatpush3.bf16.msra.mxu0 %v9701_v13  ;;  %8886 = vmatprep.mubr.bf16.mxu0 %v6551_v31 }
 0x55c   : > { %8892 = vmatprep.subr.bf16.mxu0 %v9702_v0 }
 0x55d   : > { %v3285_v34 = vpop.f32.mrb[168].mxu1 }
 0x55e   : > { %v3287_v61 = vpop.f32.mrb[169].mxu1 }
 0x55f   : > { %8893 = vmatpush3.bf16.msra.mxu0 %v9702_v0  ;;  %v3288_v15 = vpop.f32.mrb[170].mxu1 }
 0x560   : > { %8894 = vmatprep.subr.bf16.mxu0 %v9703_v22  ;;  %v6693_v33 = vpack.c.bf16 %v3288_v15, %v3285_v34  ;;  %v3290_v38 = vpop.f32.mrb[171].mxu1 }
 0x562   : > { %8887 = vmatmul.mubr.bf16.gmra.mrb[44].mxu0 %v6552_v46 }
 0x563   : > { %8895 = vmatpush3.bf16.msra.mxu0 %v9703_v22  ;;  %8906 = vmatprep.mubr.bf16.mxu0 %v6691_v63 }
 0x564   : > { %8896 = vmatprep.subr.bf16.mxu0 %v9704_v19 }
 0x565   : > { %v3293_v53 = vpop.f32.mrb[172].mxu1 }
 0x566   : > { %v3295_v1 = vpop.f32.mrb[173].mxu1 }
 0x567   : > { %8897 = vmatpush3.bf16.msra.mxu0 %v9704_v19  ;;  %v3296_v37 = vpop.f32.mrb[174].mxu1 }
 0x568   : > { %8898 = vmatprep.subr.bf16.mxu0 %v9705_v43  ;;  %v6694_v6 = vpack.c.bf16 %v3296_v37, %v3293_v53  ;;  %v3298_v12 = vpop.f32.mrb[175].mxu1 }
 0x56b   : > { %8899 = vmatpush3.bf16.msra.mxu0 %v9705_v43 }
 0x56c   : > { %8900 = vmatprep.subr.bf16.mxu0 %v9706_v7 }
 0x56f   : > { %8901 = vmatpush3.bf16.msra.mxu0 %v9706_v7 }
 0x570   : > { %8902 = vmatprep.subr.bf16.mxu0 %v9707_v28 }
 0x573   : > { %8903 = vmatpush3.bf16.msra.mxu0 %v9707_v28 }
 0x574   : > { %8904 = vmatprep.subr.bf16.mxu0 %v9708_v27 }
 0x577   : > { %8905 = vmatpush3.bf16.msra.mxu0 %v9708_v27 }
 0x57a   : > { %8907 = vmatmul.mubr.bf16.vlgmr.msra.gmra.mrb[40].mxu0 %v6692_v10 }
 0x57b   : > { %8910 = vmatprep.mubr.bf16.mxu0 %v6693_v33 }
 0x582   : > { %8911 = vmatmul.mubr.bf16.gmra.mrb[44].mxu0 %v6694_v6 }
 0x64d   : > { %v8908_v11 = vpop.f32.mrb[40].mxu0 }
 0x64e   : > { %v6842_v32 = vadd.f32 %v8908_v11, %v7875_v36  ;;  %v6794_v5 = vpop.f32.mrb[41].mxu0 }
 0x64f   : > { %v6840_v60 = vadd.f32 %v7875_v36, %v6794_v5  ;;  %v8909_v17 = vpop.f32.mrb[42].mxu0 }
 0x650   : > { %v6850_v52 = vmax.f32 %v6842_v32, 0.0  ;;  %v6843_v59 = vadd.f32 %v8909_v17, %v7875_v36  ;;  %v6797_v49 = vpop.f32.mrb[43].mxu0 }
 0x651   : > { %v6848_v18 = vmax.f32 %v6840_v60, 0.0  ;;  %v6841_v14 = vadd.f32 %v7875_v36, %v6797_v49 }
 0x652   : > { %v6851_v24 = vmax.f32 %v6843_v59, 0.0 }
 0x653   : > { %v6856_v41 = vmax.f32 %v6848_v18, %v6850_v52  ;;  %v6849_v40 = vmax.f32 %v6841_v14, 0.0 }
 0x655   : > { %v6857_v51 = vmax.f32 %v6849_v40, %v6851_v24  ;;  %v8912_v23 = vpop.f32.mrb[44].mxu0 }
 0x656   : > { %v6846_v44 = vadd.f32 %v8912_v23, %v7875_v36  ;;  %v6810_v55 = vpop.f32.mrb[45].mxu0 }
 0x657   : > { %v6844_v35 = vadd.f32 %v7875_v36, %v6810_v55  ;;  %v8913_v39 = vpop.f32.mrb[46].mxu0 }
 0x658   : > { %v6854_v4 = vmax.f32 %v6846_v44, 0.0  ;;  %v6847_v54 = vadd.f32 %v8913_v39, %v7875_v36  ;;  %v6813_v20 = vpop.f32.mrb[47].mxu0 }
 0x659   : > { %v6852_v30 = vmax.f32 %v6844_v35, 0.0  ;;  %v6845_v2 = vadd.f32 %v7875_v36, %v6813_v20 }
 0x65a   : > { %v6855_v31 = vmax.f32 %v6847_v54, 0.0 }
 0x65b   : > { %v6858_v16 = vmax.f32 %v6852_v30, %v6854_v4  ;;  %v6853_v26 = vmax.f32 %v6845_v2, 0.0 }
 0x65d   : > { %v6860_v3 = vmax.f32 %v6856_v41, %v6858_v16  ;;  %v6859_v47 = vmax.f32 %v6853_v26, %v6855_v31 }
 0x65f   : > { %6862 = vst [vmem:[%s244_s11] sm:$0xff] %v6860_v3  ;;  %v6861_v9 = vmax.f32 %v6857_v51, %v6859_v47 }
 0x661   : > { %6863 = vst [vmem:[%s244_s11 + $0x8] sm:$0xff] %v6861_v9 }
 0x662   : > { %9722 = shalt.err (!%p9719_p3)
}
 0x663   : > { %s9723_s26 = scalar_lea.hbm %s11689_s16, 256  ;;  %s9727_s9 = scalar_lea.hbm %s11740_s6, 512 }
 0x664   : > { %p9724_p4 = scmp.ne.s32.totalorder %s11689_s16, %s9723_s26  ;;  %p9728_p9 = scmp.lt.u32.totalorder %s11689_s16, %s11740_s6 }
 0x665   : > { %p9729_p10 = scmp.lt.u32.totalorder %s9727_s9, %s9723_s26  ;;  %p9731_p12 = scmp.lt.u32.totalorder %s9723_s26, %s11689_s16 }
 0x666   : > { %p9725_p7 = pnand %p9724_p4, %p9850_p5 }
 0x667   : > { %p9730_p11 = por %p9729_p10, %p9728_p9 }
 0x668   : > { %p9726_p8 = pneg %p9725_p7 }
 0x669   : > { %p9732_p13 = por %p9731_p12, %p9730_p11 }
 0x66b   : > { %p9733_p0 = pnand %p9732_p13, %p9726_p8 }
 0x66d   : > { %9736 = shalt.err (!%p9733_p0)
}
 0x66e   : > { %s9775_s13 = smov 128   ;;  %s9776_s14 = smov 8  }
 0x66f   : > { %9123 = dma.vmem_to_hbm [thread:$0]  (%p9850_p5), %s11691_s12, 256, %s11689_s16, %s11693_s17, %s9775_s13, %s9775_s13, %s9776_s14  }
 0x670 PF: > { %p9129_p1 = scmp.ge.s32.totalorder %s9771_s24, 2  ;;  %s6893_s15 = sand.u32 1, %s9759_s21  }
 0x671   : > { %s6894_s18 = scalar_lea.sflag [#allocation3], %s6893_s15 }
 0x672   : > { %p9126_p2 = pnand %p9129_p1, %p9854_p6 }
 0x674   : > { %9754 = dma.done.wait (!%p9126_p2), %s6894_s18, 256  }
 0x675   : > { %9756 = vsyncadd (!%p9126_p2), %s6894_s18, 4294967040  ;;  %p16_p3 = scmp.ge.s32.totalorder %s9837_s27, 4   ;;  %s11753_s21 = smov %s9763_s22 }
 0x676   : > { %s11754_s22 = smov %s9767_s23  ;;  %s11755_s23 = smov %s9848_s30 }
 0x677   : > { %s11756_s24 = smov %s9837_s27  ;;  %18 = sbr.rel (!%p16_p3) target bundleno = 3 (0x3), region = 103 }
 0x67e   :  { %6899 = vsyncpa [#allocation3], 1 }
 0x67f   :  { %6901 = vsyncpa [#allocation3 + $0x1], 1 }

</bundles_post_ra>
